<compile_context>
chip_gen: v6e
topology: v6e:2x2x1
jax: 0.10.0
libtpu: 0.0.40
codegen_flags: <defaults>
</compile_context>

<pallas_src>
import functools
import math

import jax
import jax.numpy as jnp
from jax.experimental import pallas as pl
from jax.experimental.pallas import tpu as pltpu

# ---- hyper-parameters from ViTConfig in the module (image shrunk for demo) ----
HIDDEN = 192
NUM_LAYERS = 12
NUM_HEADS = 3
HEAD_DIM = HIDDEN // NUM_HEADS          # 64
INTERMEDIATE = 768
PATCH = 16
IMAGE = 32                              # module uses 224; demo image -> 4 patches
CHANNELS = 3
LN_EPS = 1e-12                          # HF ViTConfig default layer_norm_eps

NUM_PATCHES = (IMAGE // PATCH) ** 2     # 4
SEQ = NUM_PATCHES + 1                   # 5 tokens incl. CLS
S_PAD = ((SEQ + 7) // 8) * 8            # 8: sublane-aligned token count
HEAD_PAD = 128                          # per-head lane-aligned q/k/v width
HP = NUM_HEADS * HEAD_PAD               # 384


# ---------------------------------------------------------------------------
# In-kernel math helpers (all f32)
# ---------------------------------------------------------------------------
def _erf(x):
    # Abramowitz & Stegun 7.1.26, max abs err ~1.5e-7 (~f32 eps), exp-only.
    # TODO(synk): exact lax.erf lowering is not guaranteed in Mosaic; this
    # polynomial reproduces torch's exact GELU to f32 resolution.
    a1, a2, a3, a4, a5 = 0.254829592, -0.284496736, 1.421413741, -1.453152027, 1.061405429
    p = 0.3275911
    ax = jnp.abs(x)
    t = 1.0 / (1.0 + p * ax)
    poly = ((((a5 * t + a4) * t + a3) * t + a2) * t + a1) * t
    y = 1.0 - poly * jnp.exp(-ax * ax)
    return jnp.where(x >= 0.0, y, -y)


def _gelu(x):  # exact GELU (erf form), same as HF ViT "gelu"
    return 0.5 * x * (1.0 + _erf(x * (1.0 / math.sqrt(2.0))))


def _layernorm(x, w, b):
    mu = jnp.mean(x, axis=-1, keepdims=True)
    d = x - mu
    var = jnp.mean(d * d, axis=-1, keepdims=True)
    return d * jax.lax.rsqrt(var + LN_EPS) * w + b


# ---------------------------------------------------------------------------
# Fused kernel: all 12 encoder layers (fori_loop) + token mean-pool, no grid.
# ---------------------------------------------------------------------------
def _vit_encoder_kernel(x0_ref, ln1w_ref, ln1b_ref, wqkv_ref, bqkv_ref,
                        wo_ref, bo_ref, ln2w_ref, ln2b_ref,
                        w1_ref, b1_ref, w2_ref, b2_ref,
                        o_ref, *, B, S, SP, D, H, dh, L):
    BS = B * SP
    scale = 1.0 / math.sqrt(dh)

    # Additive key-padding bias, built ONCE (constant across layers):
    # 0 for valid key positions, -1e30 (f32) for padded ones.
    key_valid = jax.lax.broadcasted_iota(jnp.int32, (1, 1, SP), 2) < S
    key_bias = jnp.where(key_valid, 0.0, -1e30).astype(jnp.float32)

    def layer(l, x):                                 # x: [B*SP, D] f32 residual stream
        # ---- self-attention block (pre-LN) ----
        h = _layernorm(x, ln1w_ref[l], ln1b_ref[l])              # layernorm_before
        qkv = jnp.dot(h.astype(jnp.bfloat16), wqkv_ref[l],
                      preferred_element_type=jnp.float32) + bqkv_ref[l]   # [BS, 3*HP]
        qkv3 = qkv.reshape(B, SP, 3 * HP)                        # per-image view
        wo = wo_ref[l]                                           # [HP, D] bf16
        attn = jnp.zeros((BS, D), jnp.float32)
        for hh in range(H):                                      # static, H=3
            q_h = qkv3[:, :, hh * HEAD_PAD:(hh + 1) * HEAD_PAD]
            k_h = qkv3[:, :, HP + hh * HEAD_PAD:HP + (hh + 1) * HEAD_PAD]
            v_h = qkv3[:, :, 2 * HP + hh * HEAD_PAD:2 * HP + (hh + 1) * HEAD_PAD]
            # bf16 operands, f32 accumulation; mask/softmax math stays f32.
            s = jnp.einsum('bqd,bkd->bqk',
                           q_h.astype(jnp.bfloat16), k_h.astype(jnp.bfloat16),
                           preferred_element_type=jnp.float32) * scale     # [B,SP,SP]
            s = s + key_bias
            s = s - jnp.max(s, axis=-1, keepdims=True)
            e = jnp.exp(s)
            p = e * pl.reciprocal(jnp.sum(e, axis=-1, keepdims=True), approx=True)
            ctx = jnp.einsum('bqk,bkd->bqd',
                             p.astype(jnp.bfloat16), v_h.astype(jnp.bfloat16),
                             preferred_element_type=jnp.float32)           # [B,SP,128]
            # fold head context through matching (zero-padded) rows of Wo
            attn = attn + jnp.dot(ctx.reshape(BS, HEAD_PAD).astype(jnp.bfloat16),
                                  wo[hh * HEAD_PAD:(hh + 1) * HEAD_PAD, :],
                                  preferred_element_type=jnp.float32)
        x = x + attn + bo_ref[l]                                 # residual 1

        # ---- MLP block (pre-LN) ----
        h2 = _layernorm(x, ln2w_ref[l], ln2b_ref[l])             # layernorm_after
        m = jnp.dot(h2.astype(jnp.bfloat16), w1_ref[l],
                    preferred_element_type=jnp.float32) + b1_ref[l]
        m = _gelu(m)
        m = jnp.dot(m.astype(jnp.bfloat16), w2_ref[l],
                    preferred_element_type=jnp.float32) + b2_ref[l]
        return x + m                                             # residual 2

    x = jax.lax.fori_loop(0, L, layer, x0_ref[...])

    # ---- mean over the S valid tokens only (runs exactly once) ----
    x3 = x.reshape(B, SP, D)
    tok = jax.lax.broadcasted_iota(jnp.int32, (B, SP, D), 1)
    xm = jnp.where(tok < S, x3, 0.0)
    o_ref[...] = jnp.sum(xm, axis=1) * (1.0 / S)                 # [B, D]


def vit_encoder(tokens, params):
    B, SP, D = tokens.shape
    kern = functools.partial(_vit_encoder_kernel, B=B, S=SEQ, SP=SP, D=D,
                             H=NUM_HEADS, dh=HEAD_DIM, L=NUM_LAYERS)
    names = ("ln1w", "ln1b", "wqkv", "bqkv", "wo", "bo",
             "ln2w", "ln2b", "w1", "b1", "w2", "b2")
    weights = [params[n] for n in names]
    # No grid: whole stacked-weight arrays are resident in VMEM (~14 MiB), the
    # layer loop lives inside the kernel -> one dispatch, no per-step overhead.
    return pl.pallas_call(
        kern,
        out_shape=jax.ShapeDtypeStruct((B, D), jnp.float32),
        compiler_params=pltpu.CompilerParams(
            vmem_limit_bytes=32 * 1024 * 1024),
    )(tokens.reshape(B * SP, D), *weights)


# ---------------------------------------------------------------------------
# Wrapper glue: patch extraction / embedding (plain jnp, XLA-fused), params
# ---------------------------------------------------------------------------
def extract_patches(x):
    # NCHW -> [B, num_patches, C*P*P], per-patch flatten order (c, ph, pw),
    # matching Conv2d(k=P, stride=P) weight.reshape(D, C*P*P).
    B, C, Hh, Ww = x.shape
    hp, wp = Hh // PATCH, Ww // PATCH
    x = x.reshape(B, C, hp, PATCH, wp, PATCH)
    x = jnp.transpose(x, (0, 2, 4, 1, 3, 5))
    return x.reshape(B, hp * wp, C * PATCH * PATCH)


def _normal(key, shape, scale=0.02):
    return scale * jax.random.normal(key, shape, dtype=jnp.float32)


def _pad_head_cols(w):
    # [L, D, H*dh] -> [L, D, H*128]: zero-pad each head's 64 cols to 128 so every
    # in-kernel head slice starts on a lane-tile boundary.
    L, D, _ = w.shape
    w = w.reshape(L, D, NUM_HEADS, HEAD_DIM)
    pad = jnp.zeros((L, D, NUM_HEADS, HEAD_PAD - HEAD_DIM), w.dtype)
    return jnp.concatenate([w, pad], axis=-1).reshape(L, D, NUM_HEADS * HEAD_PAD)


def _pad_head_rows(w):
    # [L, H*dh, D] -> [L, H*128, D]: matching zero rows for Wo.
    L, _, D = w.shape
    w = w.reshape(L, NUM_HEADS, HEAD_DIM, D)
    pad = jnp.zeros((L, NUM_HEADS, HEAD_PAD - HEAD_DIM, D), w.dtype)
    return jnp.concatenate([w, pad], axis=2).reshape(L, NUM_HEADS * HEAD_PAD, D)


def init_params(key):
    kpatch, kcls, kpos, kq, kk, kv, ko, k1, k2 = jax.random.split(key, 9)
    L, D, I = NUM_LAYERS, HIDDEN, INTERMEDIATE
    wq, wk, wv = (_normal(k, (L, D, D)) for k in (kq, kk, kv))
    wo = _normal(ko, (L, D, D))
    # fused, head-aligned QKV: columns = [Qpad(384) | Kpad(384) | Vpad(384)]
    wqkv = jnp.concatenate(
        [_pad_head_cols(wq), _pad_head_cols(wk), _pad_head_cols(wv)], axis=2)
    return {
        "patch_w": _normal(kpatch, (CHANNELS * PATCH * PATCH, D)),
        "patch_b": jnp.zeros((1, 1, D), jnp.float32),
        "cls": _normal(kcls, (1, 1, D)),
        "pos": _normal(kpos, (1, SEQ, D)),
        "ln1w": jnp.ones((L, 1, D), jnp.float32),
        "ln1b": jnp.zeros((L, 1, D), jnp.float32),
        "wqkv": wqkv.astype(jnp.bfloat16),
        # bias pad columns MUST stay zero (q/k pad lanes must not perturb q.k^T)
        "bqkv": jnp.zeros((L, 1, 3 * HP), jnp.float32),
        "wo": _pad_head_rows(wo).astype(jnp.bfloat16),
        "bo": jnp.zeros((L, 1, D), jnp.float32),
        "ln2w": jnp.ones((L, 1, D), jnp.float32),
        "ln2b": jnp.zeros((L, 1, D), jnp.float32),
        "w1": _normal(k1, (L, D, I)).astype(jnp.bfloat16),
        "b1": jnp.zeros((L, 1, I), jnp.float32),
        "w2": _normal(k2, (L, I, D)).astype(jnp.bfloat16),
        "b2": jnp.zeros((L, 1, D), jnp.float32),
    }


@jax.jit
def vit_backbone_forward(x, params):
    B = x.shape[0]
    patches = extract_patches(x)                                    # [B, N, C*P*P]
    # Conv2d(k=P, stride=P) == patch matmul; tiny op, kept in XLA per perf review.
    emb = jnp.dot(patches, params["patch_w"]) + params["patch_b"]   # [B, N, D]
    cls = jnp.broadcast_to(params["cls"], (B, 1, HIDDEN))
    tokens = jnp.concatenate([cls, emb], axis=1) + params["pos"]    # [B, SEQ, D]
    # pad token axis to a multiple of 8 (sublane alignment); padded keys are
    # masked in-kernel and padded rows are excluded from the mean.
    pad = jnp.zeros((B, S_PAD - SEQ, HIDDEN), tokens.dtype)
    tokens = jnp.concatenate([tokens, pad], axis=1)                 # [B, S_PAD, D]
    # hidden_states[-1] == last layer output (no final LayerNorm); mean over tokens.
    return vit_encoder(tokens, params)                              # [B, D]


if __name__ == "__main__":
    key = jax.random.PRNGKey(0)
    kx, kp = jax.random.split(key)
    x = jax.random.normal(kx, (2, CHANNELS, IMAGE, IMAGE), dtype=jnp.float32)
    params = init_params(kp)
    out = vit_backbone_forward(x, params)
    jax.block_until_ready(out)
    assert out.shape == (2, HIDDEN) and out.dtype == jnp.float32
    assert bool(jnp.all(jnp.isfinite(out)))
    print("KERNEL_OK")
</pallas_src>

<mosaic_0001>
module attributes {stable_mosaic.version = 11 : i64} {
  func.func @_vit_encoder_kernel(%arg0: memref<16x192xf32, #tpu.memory_space<vmem>>, %arg1: memref<12x1x192xf32, #tpu.memory_space<vmem>>, %arg2: memref<12x1x192xf32, #tpu.memory_space<vmem>>, %arg3: memref<12x192x1152xbf16, #tpu.memory_space<vmem>>, %arg4: memref<12x1x1152xf32, #tpu.memory_space<vmem>>, %arg5: memref<12x384x192xbf16, #tpu.memory_space<vmem>>, %arg6: memref<12x1x192xf32, #tpu.memory_space<vmem>>, %arg7: memref<12x1x192xf32, #tpu.memory_space<vmem>>, %arg8: memref<12x1x192xf32, #tpu.memory_space<vmem>>, %arg9: memref<12x192x768xbf16, #tpu.memory_space<vmem>>, %arg10: memref<12x1x768xf32, #tpu.memory_space<vmem>>, %arg11: memref<12x768x192xbf16, #tpu.memory_space<vmem>>, %arg12: memref<12x1x192xf32, #tpu.memory_space<vmem>>, %arg13: memref<2x192xf32, #tpu.memory_space<vmem>>) attributes {dimension_semantics = [], scalar_prefetch = 0 : i64, scratch_operands = 0 : i64, tpu.core_type = #tpu.core_type<tc>} {
    %0 = tpu.iota {dimensions = array<i32: 2>} : vector<1x1x8xi32>
    %c5_i32 = arith.constant 5 : i32
    %1 = vector.broadcast %c5_i32 : i32 to vector<1x1x8xi32>
    %2 = arith.cmpi slt, %0, %1 : vector<1x1x8xi32>
    %cst = arith.constant 0.000000e+00 : f32
    %cst_0 = arith.constant -1.000000e+30 : f32
    %3 = vector.broadcast %cst : f32 to vector<1x1x8xf32>
    %4 = vector.broadcast %cst_0 : f32 to vector<1x1x8xf32>
    %5 = arith.select %2, %3, %4 : vector<1x1x8xi1>, vector<1x1x8xf32>
    %c0 = arith.constant 0 : index
    %c0_1 = arith.constant 0 : index
    %6 = vector.load %arg0[%c0, %c0_1] : memref<16x192xf32, #tpu.memory_space<vmem>>, vector<16x192xf32>
    %c0_i32 = arith.constant 0 : i32
    %c12_i32 = arith.constant 12 : i32
    %7 = arith.addi %c0_i32, %c12_i32 : i32
    %c1_i32 = arith.constant 1 : i32
    %8 = scf.for %arg14 = %c0_i32 to %7 step %c1_i32 iter_args(%arg15 = %6) -> (vector<16x192xf32>)  : i32 {
      %19 = arith.index_cast %arg14 : i32 to index
      %c0_9 = arith.constant 0 : index
      %c0_10 = arith.constant 0 : index
      %20 = vector.load %arg1[%19, %c0_9, %c0_10] : memref<12x1x192xf32, #tpu.memory_space<vmem>>, vector<1x1x192xf32>
      %21 = vector.shape_cast %20 : vector<1x1x192xf32> to vector<1x192xf32>
      %22 = arith.index_cast %arg14 : i32 to index
      %c0_11 = arith.constant 0 : index
      %c0_12 = arith.constant 0 : index
      %23 = vector.load %arg2[%22, %c0_11, %c0_12] : memref<12x1x192xf32, #tpu.memory_space<vmem>>, vector<1x1x192xf32>
      %24 = vector.shape_cast %23 : vector<1x1x192xf32> to vector<1x192xf32>
      %cst_13 = arith.constant dense<0.000000e+00> : vector<16xf32>
      %25 = vector.multi_reduction <add>, %arg15, %cst_13 [1] : vector<16x192xf32> to vector<16xf32>
      %26 = vector.shape_cast %25 : vector<16xf32> to vector<16x1xf32>
      %cst_14 = arith.constant 1.920000e+02 : f32
      %27 = vector.broadcast %cst_14 : f32 to vector<16x1xf32>
      %28 = arith.divf %26, %27 : vector<16x1xf32>
      %29 = vector.broadcast %28 : vector<16x1xf32> to vector<16x192xf32>
      %30 = arith.subf %arg15, %29 : vector<16x192xf32>
      %31 = arith.mulf %30, %30 : vector<16x192xf32>
      %cst_15 = arith.constant dense<0.000000e+00> : vector<16xf32>
      %32 = vector.multi_reduction <add>, %31, %cst_15 [1] : vector<16x192xf32> to vector<16xf32>
      %33 = vector.shape_cast %32 : vector<16xf32> to vector<16x1xf32>
      %cst_16 = arith.constant 1.920000e+02 : f32
      %34 = vector.broadcast %cst_16 : f32 to vector<16x1xf32>
      %35 = arith.divf %33, %34 : vector<16x1xf32>
      %cst_17 = arith.constant 9.99999996E-13 : f32
      %36 = vector.broadcast %cst_17 : f32 to vector<16x1xf32>
      %37 = arith.addf %35, %36 : vector<16x1xf32>
      %38 = math.rsqrt %37 : vector<16x1xf32>
      %39 = vector.broadcast %38 : vector<16x1xf32> to vector<16x192xf32>
      %40 = arith.mulf %30, %39 : vector<16x192xf32>
      %41 = vector.broadcast %21 : vector<1x192xf32> to vector<16x192xf32>
      %42 = arith.mulf %40, %41 : vector<16x192xf32>
      %43 = vector.broadcast %24 : vector<1x192xf32> to vector<16x192xf32>
      %44 = arith.addf %42, %43 : vector<16x192xf32>
      %45 = arith.truncf %44 : vector<16x192xf32> to vector<16x192xbf16>
      %46 = arith.index_cast %arg14 : i32 to index
      %c0_18 = arith.constant 0 : index
      %c0_19 = arith.constant 0 : index
      %47 = vector.load %arg3[%46, %c0_18, %c0_19] : memref<12x192x1152xbf16, #tpu.memory_space<vmem>>, vector<1x192x1152xbf16>
      %48 = vector.shape_cast %47 : vector<1x192x1152xbf16> to vector<192x1152xbf16>
      %cst_20 = arith.constant dense<0.000000e+00> : vector<16x1152xf32>
      %49 = tpu.matmul %45, %48, %cst_20 {dimension_numbers = #tpu.dot_dimension_numbers<[1], [0], [0], [1], [0, 0, 1, 1], [], []>} : vector<16x192xbf16>, vector<192x1152xbf16>, vector<16x1152xf32> -> vector<16x1152xf32>
      %50 = arith.index_cast %arg14 : i32 to index
      %c0_21 = arith.constant 0 : index
      %c0_22 = arith.constant 0 : index
      %51 = vector.load %arg4[%50, %c0_21, %c0_22] : memref<12x1x1152xf32, #tpu.memory_space<vmem>>, vector<1x1x1152xf32>
      %52 = vector.shape_cast %51 : vector<1x1x1152xf32> to vector<1x1152xf32>
      %53 = vector.broadcast %52 : vector<1x1152xf32> to vector<16x1152xf32>
      %54 = arith.addf %49, %53 : vector<16x1152xf32>
      %55 = vector.shape_cast %54 : vector<16x1152xf32> to vector<2x8x1152xf32>
      %56 = arith.index_cast %arg14 : i32 to index
      %c0_23 = arith.constant 0 : index
      %c0_24 = arith.constant 0 : index
      %57 = vector.load %arg5[%56, %c0_23, %c0_24] : memref<12x384x192xbf16, #tpu.memory_space<vmem>>, vector<1x384x192xbf16>
      %58 = vector.shape_cast %57 : vector<1x384x192xbf16> to vector<384x192xbf16>
      %cst_25 = arith.constant 0.000000e+00 : f32
      %59 = vector.broadcast %cst_25 : f32 to vector<16x192xf32>
      %60 = vector.extract_strided_slice %55 {offsets = [0, 0, 0], sizes = [2, 8, 128], strides = [1, 1, 1]} : vector<2x8x1152xf32> to vector<2x8x128xf32>
      %61 = vector.extract_strided_slice %55 {offsets = [0, 0, 384], sizes = [2, 8, 128], strides = [1, 1, 1]} : vector<2x8x1152xf32> to vector<2x8x128xf32>
      %62 = vector.extract_strided_slice %55 {offsets = [0, 0, 768], sizes = [2, 8, 128], strides = [1, 1, 1]} : vector<2x8x1152xf32> to vector<2x8x128xf32>
      %63 = arith.truncf %60 : vector<2x8x128xf32> to vector<2x8x128xbf16>
      %64 = arith.truncf %61 : vector<2x8x128xf32> to vector<2x8x128xbf16>
      "tpu.trace_start"() <{level = 10 : i32, message = "bqd,bkd->bqk"}> : () -> ()
      %cst_26 = arith.constant dense<0.000000e+00> : vector<2x8x8xf32>
      %65 = tpu.matmul %63, %64, %cst_26 {dimension_numbers = #tpu.dot_dimension_numbers<[2], [2], [1], [1], [0, 0, 0, 1, 1, 1], [0], [0]>} : vector<2x8x128xbf16>, vector<2x8x128xbf16>, vector<2x8x8xf32> -> vector<2x8x8xf32>
      "tpu.trace_stop"() : () -> ()
      %cst_27 = arith.constant 1.250000e-01 : f32
      %66 = vector.broadcast %cst_27 : f32 to vector<2x8x8xf32>
      %67 = arith.mulf %65, %66 : vector<2x8x8xf32>
      %68 = vector.broadcast %5 : vector<1x1x8xf32> to vector<2x8x8xf32>
      %69 = arith.addf %67, %68 : vector<2x8x8xf32>
      %cst_28 = arith.constant dense<0xFF800000> : vector<2x8xf32>
      %70 = vector.multi_reduction <maximumf>, %69, %cst_28 [2] : vector<2x8x8xf32> to vector<2x8xf32>
      %71 = vector.shape_cast %70 : vector<2x8xf32> to vector<2x8x1xf32>
      %72 = vector.broadcast %71 : vector<2x8x1xf32> to vector<2x8x8xf32>
      %73 = arith.subf %69, %72 : vector<2x8x8xf32>
      %74 = math.exp %73 : vector<2x8x8xf32>
      %cst_29 = arith.constant dense<0.000000e+00> : vector<2x8xf32>
      %75 = vector.multi_reduction <add>, %74, %cst_29 [2] : vector<2x8x8xf32> to vector<2x8xf32>
      %76 = vector.shape_cast %75 : vector<2x8xf32> to vector<2x8x1xf32>
      %77 = tpu.reciprocal %76 {approx = true} : vector<2x8x1xf32> -> vector<2x8x1xf32>
      %78 = vector.broadcast %77 : vector<2x8x1xf32> to vector<2x8x8xf32>
      %79 = arith.mulf %74, %78 : vector<2x8x8xf32>
      %80 = arith.truncf %79 : vector<2x8x8xf32> to vector<2x8x8xbf16>
      %81 = arith.truncf %62 : vector<2x8x128xf32> to vector<2x8x128xbf16>
      "tpu.trace_start"() <{level = 10 : i32, message = "bqk,bkd->bqd"}> : () -> ()
      %cst_30 = arith.constant dense<0.000000e+00> : vector<2x8x128xf32>
      %82 = tpu.matmul %80, %81, %cst_30 {dimension_numbers = #tpu.dot_dimension_numbers<[2], [1], [1], [2], [0, 0, 0, 1, 1, 2], [0], [0]>} : vector<2x8x8xbf16>, vector<2x8x128xbf16>, vector<2x8x128xf32> -> vector<2x8x128xf32>
      "tpu.trace_stop"() : () -> ()
      %83 = vector.shape_cast %82 : vector<2x8x128xf32> to vector<16x128xf32>
      %84 = arith.truncf %83 : vector<16x128xf32> to vector<16x128xbf16>
      %85 = vector.extract_strided_slice %58 {offsets = [0, 0], sizes = [128, 192], strides = [1, 1]} : vector<384x192xbf16> to vector<128x192xbf16>
      %cst_31 = arith.constant dense<0.000000e+00> : vector<16x192xf32>
      %86 = tpu.matmul %84, %85, %cst_31 {dimension_numbers = #tpu.dot_dimension_numbers<[1], [0], [0], [1], [0, 0, 1, 1], [], []>} : vector<16x128xbf16>, vector<128x192xbf16>, vector<16x192xf32> -> vector<16x192xf32>
      %87 = arith.addf %59, %86 : vector<16x192xf32>
      %88 = vector.extract_strided_slice %55 {offsets = [0, 0, 128], sizes = [2, 8, 128], strides = [1, 1, 1]} : vector<2x8x1152xf32> to vector<2x8x128xf32>
      %89 = vector.extract_strided_slice %55 {offsets = [0, 0, 512], sizes = [2, 8, 128], strides = [1, 1, 1]} : vector<2x8x1152xf32> to vector<2x8x128xf32>
      %90 = vector.extract_strided_slice %55 {offsets = [0, 0, 896], sizes = [2, 8, 128], strides = [1, 1, 1]} : vector<2x8x1152xf32> to vector<2x8x128xf32>
      %91 = arith.truncf %88 : vector<2x8x128xf32> to vector<2x8x128xbf16>
      %92 = arith.truncf %89 : vector<2x8x128xf32> to vector<2x8x128xbf16>
      "tpu.trace_start"() <{level = 10 : i32, message = "bqd,bkd->bqk"}> : () -> ()
      %cst_32 = arith.constant dense<0.000000e+00> : vector<2x8x8xf32>
      %93 = tpu.matmul %91, %92, %cst_32 {dimension_numbers = #tpu.dot_dimension_numbers<[2], [2], [1], [1], [0, 0, 0, 1, 1, 1], [0], [0]>} : vector<2x8x128xbf16>, vector<2x8x128xbf16>, vector<2x8x8xf32> -> vector<2x8x8xf32>
      "tpu.trace_stop"() : () -> ()
      %cst_33 = arith.constant 1.250000e-01 : f32
      %94 = vector.broadcast %cst_33 : f32 to vector<2x8x8xf32>
      %95 = arith.mulf %93, %94 : vector<2x8x8xf32>
      %96 = vector.broadcast %5 : vector<1x1x8xf32> to vector<2x8x8xf32>
      %97 = arith.addf %95, %96 : vector<2x8x8xf32>
      %cst_34 = arith.constant dense<0xFF800000> : vector<2x8xf32>
      %98 = vector.multi_reduction <maximumf>, %97, %cst_34 [2] : vector<2x8x8xf32> to vector<2x8xf32>
      %99 = vector.shape_cast %98 : vector<2x8xf32> to vector<2x8x1xf32>
      %100 = vector.broadcast %99 : vector<2x8x1xf32> to vector<2x8x8xf32>
      %101 = arith.subf %97, %100 : vector<2x8x8xf32>
      %102 = math.exp %101 : vector<2x8x8xf32>
      %cst_35 = arith.constant dense<0.000000e+00> : vector<2x8xf32>
      %103 = vector.multi_reduction <add>, %102, %cst_35 [2] : vector<2x8x8xf32> to vector<2x8xf32>
      %104 = vector.shape_cast %103 : vector<2x8xf32> to vector<2x8x1xf32>
      %105 = tpu.reciprocal %104 {approx = true} : vector<2x8x1xf32> -> vector<2x8x1xf32>
      %106 = vector.broadcast %105 : vector<2x8x1xf32> to vector<2x8x8xf32>
      %107 = arith.mulf %102, %106 : vector<2x8x8xf32>
      %108 = arith.truncf %107 : vector<2x8x8xf32> to vector<2x8x8xbf16>
      %109 = arith.truncf %90 : vector<2x8x128xf32> to vector<2x8x128xbf16>
      "tpu.trace_start"() <{level = 10 : i32, message = "bqk,bkd->bqd"}> : () -> ()
      %cst_36 = arith.constant dense<0.000000e+00> : vector<2x8x128xf32>
      %110 = tpu.matmul %108, %109, %cst_36 {dimension_numbers = #tpu.dot_dimension_numbers<[2], [1], [1], [2], [0, 0, 0, 1, 1, 2], [0], [0]>} : vector<2x8x8xbf16>, vector<2x8x128xbf16>, vector<2x8x128xf32> -> vector<2x8x128xf32>
      "tpu.trace_stop"() : () -> ()
      %111 = vector.shape_cast %110 : vector<2x8x128xf32> to vector<16x128xf32>
      %112 = arith.truncf %111 : vector<16x128xf32> to vector<16x128xbf16>
      %113 = vector.extract_strided_slice %58 {offsets = [128, 0], sizes = [128, 192], strides = [1, 1]} : vector<384x192xbf16> to vector<128x192xbf16>
      %cst_37 = arith.constant dense<0.000000e+00> : vector<16x192xf32>
      %114 = tpu.matmul %112, %113, %cst_37 {dimension_numbers = #tpu.dot_dimension_numbers<[1], [0], [0], [1], [0, 0, 1, 1], [], []>} : vector<16x128xbf16>, vector<128x192xbf16>, vector<16x192xf32> -> vector<16x192xf32>
      %115 = arith.addf %87, %114 : vector<16x192xf32>
      %116 = vector.extract_strided_slice %55 {offsets = [0, 0, 256], sizes = [2, 8, 128], strides = [1, 1, 1]} : vector<2x8x1152xf32> to vector<2x8x128xf32>
      %117 = vector.extract_strided_slice %55 {offsets = [0, 0, 640], sizes = [2, 8, 128], strides = [1, 1, 1]} : vector<2x8x1152xf32> to vector<2x8x128xf32>
      %118 = vector.extract_strided_slice %55 {offsets = [0, 0, 1024], sizes = [2, 8, 128], strides = [1, 1, 1]} : vector<2x8x1152xf32> to vector<2x8x128xf32>
      %119 = arith.truncf %116 : vector<2x8x128xf32> to vector<2x8x128xbf16>
      %120 = arith.truncf %117 : vector<2x8x128xf32> to vector<2x8x128xbf16>
      "tpu.trace_start"() <{level = 10 : i32, message = "bqd,bkd->bqk"}> : () -> ()
      %cst_38 = arith.constant dense<0.000000e+00> : vector<2x8x8xf32>
      %121 = tpu.matmul %119, %120, %cst_38 {dimension_numbers = #tpu.dot_dimension_numbers<[2], [2], [1], [1], [0, 0, 0, 1, 1, 1], [0], [0]>} : vector<2x8x128xbf16>, vector<2x8x128xbf16>, vector<2x8x8xf32> -> vector<2x8x8xf32>
      "tpu.trace_stop"() : () -> ()
      %cst_39 = arith.constant 1.250000e-01 : f32
      %122 = vector.broadcast %cst_39 : f32 to vector<2x8x8xf32>
      %123 = arith.mulf %121, %122 : vector<2x8x8xf32>
      %124 = vector.broadcast %5 : vector<1x1x8xf32> to vector<2x8x8xf32>
      %125 = arith.addf %123, %124 : vector<2x8x8xf32>
      %cst_40 = arith.constant dense<0xFF800000> : vector<2x8xf32>
      %126 = vector.multi_reduction <maximumf>, %125, %cst_40 [2] : vector<2x8x8xf32> to vector<2x8xf32>
      %127 = vector.shape_cast %126 : vector<2x8xf32> to vector<2x8x1xf32>
      %128 = vector.broadcast %127 : vector<2x8x1xf32> to vector<2x8x8xf32>
      %129 = arith.subf %125, %128 : vector<2x8x8xf32>
      %130 = math.exp %129 : vector<2x8x8xf32>
      %cst_41 = arith.constant dense<0.000000e+00> : vector<2x8xf32>
      %131 = vector.multi_reduction <add>, %130, %cst_41 [2] : vector<2x8x8xf32> to vector<2x8xf32>
      %132 = vector.shape_cast %131 : vector<2x8xf32> to vector<2x8x1xf32>
      %133 = tpu.reciprocal %132 {approx = true} : vector<2x8x1xf32> -> vector<2x8x1xf32>
      %134 = vector.broadcast %133 : vector<2x8x1xf32> to vector<2x8x8xf32>
      %135 = arith.mulf %130, %134 : vector<2x8x8xf32>
      %136 = arith.truncf %135 : vector<2x8x8xf32> to vector<2x8x8xbf16>
      %137 = arith.truncf %118 : vector<2x8x128xf32> to vector<2x8x128xbf16>
      "tpu.trace_start"() <{level = 10 : i32, message = "bqk,bkd->bqd"}> : () -> ()
      %cst_42 = arith.constant dense<0.000000e+00> : vector<2x8x128xf32>
      %138 = tpu.matmul %136, %137, %cst_42 {dimension_numbers = #tpu.dot_dimension_numbers<[2], [1], [1], [2], [0, 0, 0, 1, 1, 2], [0], [0]>} : vector<2x8x8xbf16>, vector<2x8x128xbf16>, vector<2x8x128xf32> -> vector<2x8x128xf32>
      "tpu.trace_stop"() : () -> ()
      %139 = vector.shape_cast %138 : vector<2x8x128xf32> to vector<16x128xf32>
      %140 = arith.truncf %139 : vector<16x128xf32> to vector<16x128xbf16>
      %141 = vector.extract_strided_slice %58 {offsets = [256, 0], sizes = [128, 192], strides = [1, 1]} : vector<384x192xbf16> to vector<128x192xbf16>
      %cst_43 = arith.constant dense<0.000000e+00> : vector<16x192xf32>
      %142 = tpu.matmul %140, %141, %cst_43 {dimension_numbers = #tpu.dot_dimension_numbers<[1], [0], [0], [1], [0, 0, 1, 1], [], []>} : vector<16x128xbf16>, vector<128x192xbf16>, vector<16x192xf32> -> vector<16x192xf32>
      %143 = arith.addf %115, %142 : vector<16x192xf32>
      %144 = arith.addf %arg15, %143 : vector<16x192xf32>
      %145 = arith.index_cast %arg14 : i32 to index
      %c0_44 = arith.constant 0 : index
      %c0_45 = arith.constant 0 : index
      %146 = vector.load %arg6[%145, %c0_44, %c0_45] : memref<12x1x192xf32, #tpu.memory_space<vmem>>, vector<1x1x192xf32>
      %147 = vector.shape_cast %146 : vector<1x1x192xf32> to vector<1x192xf32>
      %148 = vector.broadcast %147 : vector<1x192xf32> to vector<16x192xf32>
      %149 = arith.addf %144, %148 : vector<16x192xf32>
      %150 = arith.index_cast %arg14 : i32 to index
      %c0_46 = arith.constant 0 : index
      %c0_47 = arith.constant 0 : index
      %151 = vector.load %arg7[%150, %c0_46, %c0_47] : memref<12x1x192xf32, #tpu.memory_space<vmem>>, vector<1x1x192xf32>
      %152 = vector.shape_cast %151 : vector<1x1x192xf32> to vector<1x192xf32>
      %153 = arith.index_cast %arg14 : i32 to index
      %c0_48 = arith.constant 0 : index
      %c0_49 = arith.constant 0 : index
      %154 = vector.load %arg8[%153, %c0_48, %c0_49] : memref<12x1x192xf32, #tpu.memory_space<vmem>>, vector<1x1x192xf32>
      %155 = vector.shape_cast %154 : vector<1x1x192xf32> to vector<1x192xf32>
      %cst_50 = arith.constant dense<0.000000e+00> : vector<16xf32>
      %156 = vector.multi_reduction <add>, %149, %cst_50 [1] : vector<16x192xf32> to vector<16xf32>
      %157 = vector.shape_cast %156 : vector<16xf32> to vector<16x1xf32>
      %cst_51 = arith.constant 1.920000e+02 : f32
      %158 = vector.broadcast %cst_51 : f32 to vector<16x1xf32>
      %159 = arith.divf %157, %158 : vector<16x1xf32>
      %160 = vector.broadcast %159 : vector<16x1xf32> to vector<16x192xf32>
      %161 = arith.subf %149, %160 : vector<16x192xf32>
      %162 = arith.mulf %161, %161 : vector<16x192xf32>
      %cst_52 = arith.constant dense<0.000000e+00> : vector<16xf32>
      %163 = vector.multi_reduction <add>, %162, %cst_52 [1] : vector<16x192xf32> to vector<16xf32>
      %164 = vector.shape_cast %163 : vector<16xf32> to vector<16x1xf32>
      %cst_53 = arith.constant 1.920000e+02 : f32
      %165 = vector.broadcast %cst_53 : f32 to vector<16x1xf32>
      %166 = arith.divf %164, %165 : vector<16x1xf32>
      %cst_54 = arith.constant 9.99999996E-13 : f32
      %167 = vector.broadcast %cst_54 : f32 to vector<16x1xf32>
      %168 = arith.addf %166, %167 : vector<16x1xf32>
      %169 = math.rsqrt %168 : vector<16x1xf32>
      %170 = vector.broadcast %169 : vector<16x1xf32> to vector<16x192xf32>
      %171 = arith.mulf %161, %170 : vector<16x192xf32>
      %172 = vector.broadcast %152 : vector<1x192xf32> to vector<16x192xf32>
      %173 = arith.mulf %171, %172 : vector<16x192xf32>
      %174 = vector.broadcast %155 : vector<1x192xf32> to vector<16x192xf32>
      %175 = arith.addf %173, %174 : vector<16x192xf32>
      %176 = arith.truncf %175 : vector<16x192xf32> to vector<16x192xbf16>
      %177 = arith.index_cast %arg14 : i32 to index
      %c0_55 = arith.constant 0 : index
      %c0_56 = arith.constant 0 : index
      %178 = vector.load %arg9[%177, %c0_55, %c0_56] : memref<12x192x768xbf16, #tpu.memory_space<vmem>>, vector<1x192x768xbf16>
      %179 = vector.shape_cast %178 : vector<1x192x768xbf16> to vector<192x768xbf16>
      %cst_57 = arith.constant dense<0.000000e+00> : vector<16x768xf32>
      %180 = tpu.matmul %176, %179, %cst_57 {dimension_numbers = #tpu.dot_dimension_numbers<[1], [0], [0], [1], [0, 0, 1, 1], [], []>} : vector<16x192xbf16>, vector<192x768xbf16>, vector<16x768xf32> -> vector<16x768xf32>
      %181 = arith.index_cast %arg14 : i32 to index
      %c0_58 = arith.constant 0 : index
      %c0_59 = arith.constant 0 : index
      %182 = vector.load %arg10[%181, %c0_58, %c0_59] : memref<12x1x768xf32, #tpu.memory_space<vmem>>, vector<1x1x768xf32>
      %183 = vector.shape_cast %182 : vector<1x1x768xf32> to vector<1x768xf32>
      %184 = vector.broadcast %183 : vector<1x768xf32> to vector<16x768xf32>
      %185 = arith.addf %180, %184 : vector<16x768xf32>
      %cst_60 = arith.constant 5.000000e-01 : f32
      %186 = vector.broadcast %cst_60 : f32 to vector<16x768xf32>
      %187 = arith.mulf %186, %185 : vector<16x768xf32>
      %cst_61 = arith.constant 0.707106769 : f32
      %188 = vector.broadcast %cst_61 : f32 to vector<16x768xf32>
      %189 = arith.mulf %185, %188 : vector<16x768xf32>
      %190 = math.absf %189 : vector<16x768xf32>
      %cst_62 = arith.constant 0.327591091 : f32
      %191 = vector.broadcast %cst_62 : f32 to vector<16x768xf32>
      %192 = arith.mulf %191, %190 : vector<16x768xf32>
      %cst_63 = arith.constant 1.000000e+00 : f32
      %193 = vector.broadcast %cst_63 : f32 to vector<16x768xf32>
      %194 = arith.addf %193, %192 : vector<16x768xf32>
      %cst_64 = arith.constant 1.000000e+00 : f32
      %195 = vector.broadcast %cst_64 : f32 to vector<16x768xf32>
      %196 = arith.divf %195, %194 : vector<16x768xf32>
      %cst_65 = arith.constant 1.06140542 : f32
      %197 = vector.broadcast %cst_65 : f32 to vector<16x768xf32>
      %198 = arith.mulf %197, %196 : vector<16x768xf32>
      %cst_66 = arith.constant -1.45315206 : f32
      %199 = vector.broadcast %cst_66 : f32 to vector<16x768xf32>
      %200 = arith.addf %198, %199 : vector<16x768xf32>
      %201 = arith.mulf %200, %196 : vector<16x768xf32>
      %cst_67 = arith.constant 1.42141378 : f32
      %202 = vector.broadcast %cst_67 : f32 to vector<16x768xf32>
      %203 = arith.addf %201, %202 : vector<16x768xf32>
      %204 = arith.mulf %203, %196 : vector<16x768xf32>
      %cst_68 = arith.constant -0.284496725 : f32
      %205 = vector.broadcast %cst_68 : f32 to vector<16x768xf32>
      %206 = arith.addf %204, %205 : vector<16x768xf32>
      %207 = arith.mulf %206, %196 : vector<16x768xf32>
      %cst_69 = arith.constant 0.254829586 : f32
      %208 = vector.broadcast %cst_69 : f32 to vector<16x768xf32>
      %209 = arith.addf %207, %208 : vector<16x768xf32>
      %210 = arith.mulf %209, %196 : vector<16x768xf32>
      %cst_70 = arith.constant 0.000000e+00 : f32
      %211 = vector.broadcast %cst_70 : f32 to vector<16x768xf32>
      %212 = arith.subf %211, %190 : vector<16x768xf32>
      %213 = arith.mulf %212, %190 : vector<16x768xf32>
      %214 = math.exp %213 : vector<16x768xf32>
      %215 = arith.mulf %210, %214 : vector<16x768xf32>
      %cst_71 = arith.constant 1.000000e+00 : f32
      %216 = vector.broadcast %cst_71 : f32 to vector<16x768xf32>
      %217 = arith.subf %216, %215 : vector<16x768xf32>
      %cst_72 = arith.constant 0.000000e+00 : f32
      %218 = vector.broadcast %cst_72 : f32 to vector<16x768xf32>
      %219 = arith.cmpf oge, %189, %218 : vector<16x768xf32>
      %cst_73 = arith.constant 0.000000e+00 : f32
      %220 = vector.broadcast %cst_73 : f32 to vector<16x768xf32>
      %221 = arith.subf %220, %217 : vector<16x768xf32>
      %222 = arith.select %219, %217, %221 : vector<16x768xi1>, vector<16x768xf32>
      %cst_74 = arith.constant 1.000000e+00 : f32
      %223 = vector.broadcast %cst_74 : f32 to vector<16x768xf32>
      %224 = arith.addf %223, %222 : vector<16x768xf32>
      %225 = arith.mulf %187, %224 : vector<16x768xf32>
      %226 = arith.truncf %225 : vector<16x768xf32> to vector<16x768xbf16>
      %227 = arith.index_cast %arg14 : i32 to index
      %c0_75 = arith.constant 0 : index
      %c0_76 = arith.constant 0 : index
      %228 = vector.load %arg11[%227, %c0_75, %c0_76] : memref<12x768x192xbf16, #tpu.memory_space<vmem>>, vector<1x768x192xbf16>
      %229 = vector.shape_cast %228 : vector<1x768x192xbf16> to vector<768x192xbf16>
      %cst_77 = arith.constant dense<0.000000e+00> : vector<16x192xf32>
      %230 = tpu.matmul %226, %229, %cst_77 {dimension_numbers = #tpu.dot_dimension_numbers<[1], [0], [0], [1], [0, 0, 1, 1], [], []>} : vector<16x768xbf16>, vector<768x192xbf16>, vector<16x192xf32> -> vector<16x192xf32>
      %231 = arith.index_cast %arg14 : i32 to index
      %c0_78 = arith.constant 0 : index
      %c0_79 = arith.constant 0 : index
      %232 = vector.load %arg12[%231, %c0_78, %c0_79] : memref<12x1x192xf32, #tpu.memory_space<vmem>>, vector<1x1x192xf32>
      %233 = vector.shape_cast %232 : vector<1x1x192xf32> to vector<1x192xf32>
      %234 = vector.broadcast %233 : vector<1x192xf32> to vector<16x192xf32>
      %235 = arith.addf %230, %234 : vector<16x192xf32>
      %236 = arith.addf %149, %235 : vector<16x192xf32>
      scf.yield %236 : vector<16x192xf32>
    }
    %c12_i32_2 = arith.constant 12 : i32
    %9 = vector.shape_cast %8 : vector<16x192xf32> to vector<2x8x192xf32>
    %10 = tpu.iota {dimensions = array<i32: 1>} : vector<2x8x192xi32>
    %c5_i32_3 = arith.constant 5 : i32
    %11 = vector.broadcast %c5_i32_3 : i32 to vector<2x8x192xi32>
    %12 = arith.cmpi slt, %10, %11 : vector<2x8x192xi32>
    %cst_4 = arith.constant 0.000000e+00 : f32
    %13 = vector.broadcast %cst_4 : f32 to vector<2x8x192xf32>
    %14 = arith.select %12, %9, %13 : vector<2x8x192xi1>, vector<2x8x192xf32>
    %cst_5 = arith.constant dense<0.000000e+00> : vector<2x192xf32>
    %15 = vector.multi_reduction <add>, %14, %cst_5 [1] : vector<2x8x192xf32> to vector<2x192xf32>
    %cst_6 = arith.constant 2.000000e-01 : f32
    %16 = vector.broadcast %cst_6 : f32 to vector<2x192xf32>
    %17 = arith.mulf %15, %16 : vector<2x192xf32>
    %c0_7 = arith.constant 0 : index
    %c0_8 = arith.constant 0 : index
    %18 = vector.load %arg13[%c0_7, %c0_8] : memref<2x192xf32, #tpu.memory_space<vmem>>, vector<2x192xf32>
    tpu.vector_store %arg13[%c0_7, %c0_8], %17 {strides = array<i32>} : memref<2x192xf32, #tpu.memory_space<vmem>>, vector<2x192xf32>,
    return
  }
}

</mosaic_0001>

<bundles_post_ra>
// kernel: vit_backbone_forward.1
= control target key start
LH: loop header
LB: loop body
LE: loop exit
PB: predicated region body
PF: predicated region fallthrough
CT: control target
= control target key end

     0   :  { %18 = vsyncpa [#allocation3], 0  ;;  %v46_v0 = vlaneseq  ;;  %v5120_v6 = vmov -1e+30   ;;  %s5219_s16 = smov 0   ;;  %s6162_s0 = inlined_call_operand.vmem [shape: f32[16,192], index: 0, kind: input, shape index: {}]   ;;  %s6163_s1 = inlined_call_operand.vmem [shape: f32[12,1,192], index: 1, kind: input, shape index: {}]   ;;  %s6164_s2 = inlined_call_operand.vmem [shape: f32[12,1,192], index: 2, kind: input, shape index: {}]   ;;  %s6165_s3 = inlined_call_operand.vmem [shape: bf16[12,192,1152], index: 3, kind: input, shape index: {}]   ;;  %s6166_s4 = inlined_call_operand.vmem [shape: f32[12,1,1152], index: 4, kind: input, shape index: {}]   ;;  %s6167_s5 = inlined_call_operand.vmem [shape: bf16[12,384,192], index: 5, kind: input, shape index: {}]   ;;  %s6168_s6 = inlined_call_operand.vmem [shape: f32[12,1,192], index: 6, kind: input, shape index: {}]   ;;  %s6169_s7 = inlined_call_operand.vmem [shape: f32[12,1,192], index: 7, kind: input, shape index: {}]   ;;  %s6170_s8 = inlined_call_operand.vmem [shape: f32[12,1,192], index: 8, kind: input, shape index: {}]   ;;  %s6171_s9 = inlined_call_operand.vmem [shape: bf16[12,192,768], index: 9, kind: input, shape index: {}]   ;;  %s6172_s10 = inlined_call_operand.vmem [shape: f32[12,1,768], index: 10, kind: input, shape index: {}]   ;;  %s6173_s11 = inlined_call_operand.vmem [shape: bf16[12,768,192], index: 11, kind: input, shape index: {}]   ;;  %s6174_s12 = inlined_call_operand.vmem [shape: f32[12,1,192], index: 12, kind: input, shape index: {}]   ;;  %s6175_s13 = inlined_call_operand.hbm [shape: f32[2,192], index: 13, kind: output, shape index: {}]  }
   0x1   :  { %v50_v1 = vld [vmem:[%s6162_s0] sm:$0xff]   ;;  %v51_v2 = vld [vmem:[%s6162_s0 + $0x8] sm:$0xff]   ;;  %v52_v3 = vld [vmem:[%s6162_s0 + $0x10] sm:$0xff]  }
   0x2   :  { %v53_v4 = vld [vmem:[%s6162_s0 + $0x18] sm:$0xff]   ;;  %v47_v5 = vand.u32 127, %v46_v0 }
   0x4   :  { %vm48_vm0 = vcmp.lt.s32.totalorder %v47_v5, 5 }
   0x5   :  { %v5209_v7 = vsel %vm48_vm0, 0.0, %v5120_v6 }
   0x6 LB: > { %vm69_vm1 = vcmask 523264   ;;  %s4352_s0 = smul.u32 864, %s5118_s16  ;;  %s5321_s20 = sshll.u32 %s5118_s16, 1  ;;  %vm5123_vm2 = vmmov 0   ;;  %vm1250_vm3 = vcmask 1043456   ;;  %vm1220_vm4 = vcmask 64512   ;;  %s5118_s16 = sphi %s5219_s16, %s59_s16   ;;  %v5114_v1 = vphi %v50_v1, %v6179_v1   ;;  %v5110_v2 = vphi %v51_v2, %v6178_v2   ;;  %v5106_v3 = vphi %v52_v3, %v6177_v3   ;;  %v5102_v4 = vphi %v53_v4, %v6176_v4  }
   0x7   : > { %v70_v8 = vsel %vm69_vm1, %v5110_v2, 0.0  ;;  %v74_v9 = vsel %vm69_vm1, %v5102_v4, 0.0  ;;  %s65_s23 = scalar_lea.vmem %s6163_s1, %s5321_s20  ;;  %s67_s26 = scalar_lea.vmem %s6164_s2, %s5321_s20 }
   0x8   : > { %v71_v10 = vadd.f32 %v5114_v1, %v70_v8  ;;  %v75_v11 = vadd.f32 %v5106_v3, %v74_v9  ;;  %s5246_s19 = scalar_lea.vmem %s6165_s3, %s4352_s0  ;;  %s262_s27 = smul.u32 9, %s5118_s16 }
   0x9   : > { %v4498_v12 = vld [vmem:[%s5246_s19 + $0x1fc] ss:$36 sps:$4 sm:$0xff]   ;;  %v4500_v13 = vld [vmem:[%s5246_s19 + $0x204] ss:$36 sps:$4 sm:$0xff]   ;;  %v4504_v16 = vld [vmem:[%s5246_s19 + $0x1b4] ss:$36 sps:$4 sm:$0xff]   ;;  %s2132_s21 = scalar_lea.vmem %s6168_s6, %s5321_s20  ;;  %s2149_s15 = scalar_lea.vmem %s6169_s7, %s5321_s20 }
   0xa   : > { %72 = vadd.xlane.f32.xlu0 %v71_v10  ;;  %868 = vmatprep.subr.bf16.mxu0 %v4498_v12  ;;  %v4502_v14 = vld [vmem:[%s5246_s19 + $0x1f8] ss:$36 sps:$4 sm:$0xff]   ;;  %v4503_v15 = vld [vmem:[%s5246_s19 + $0x200] ss:$36 sps:$4 sm:$0xff]   ;;  %v4508_v18 = vld [vmem:[%s5246_s19 + $0x1b0] ss:$36 sps:$4 sm:$0xff]   ;;  %s5447_s30 = scalar_lea.vmem %s6166_s4, %s262_s27  ;;  %s2151_s18 = scalar_lea.vmem %s6170_s8, %s5321_s20 }
   0xb   : > { %911 = vmatprep.subr.bf16.mxu1 %v4500_v13  ;;  %869 = vmatpush1.bf16.msra.mxu0 %v4502_v14  ;;  %v4506_v17 = vld [vmem:[%s5246_s19 + $0x1bc] ss:$36 sps:$4 sm:$0xff]   ;;  %v4510_v20 = vld [vmem:[%s5246_s19 + $0x16c] ss:$36 sps:$4 sm:$0xff]   ;;  %v4512_v21 = vld [vmem:[%s5246_s19 + $0x174] ss:$36 sps:$4 sm:$0xff]  }
   0xc   : > { %912 = vmatpush1.bf16.msra.mxu1 %v4503_v15  ;;  %870 = vmatprep.subr.bf16.mxu0 %v4504_v16  ;;  %v4509_v19 = vld [vmem:[%s5246_s19 + $0x1b8] ss:$36 sps:$4 sm:$0xff]   ;;  %v4514_v22 = vld [vmem:[%s5246_s19 + $0x168] ss:$36 sps:$4 sm:$0xff]   ;;  %v4515_v23 = vld [vmem:[%s5246_s19 + $0x170] ss:$36 sps:$4 sm:$0xff]  }
   0xd   : > { %913 = vmatprep.subr.bf16.mxu1 %v4506_v17  ;;  %v4516_v24 = vld [vmem:[%s5246_s19 + $0x124] ss:$36 sps:$4 sm:$0xff]   ;;  %v4518_v25 = vld [vmem:[%s5246_s19 + $0x12c] ss:$36 sps:$4 sm:$0xff]   ;;  %v4522_v28 = vld [vmem:[%s5246_s19 + $0xdc] ss:$36 sps:$4 sm:$0xff]  }
   0xe   : > { %76 = vadd.xlane.f32.xlu0 %v75_v11  ;;  %v4520_v26 = vld [vmem:[%s5246_s19 + $0x120] ss:$36 sps:$4 sm:$0xff]   ;;  %v4521_v27 = vld [vmem:[%s5246_s19 + $0x128] ss:$36 sps:$4 sm:$0xff]   ;;  %v4526_v30 = vld [vmem:[%s5246_s19 + $0xd8] ss:$36 sps:$4 sm:$0xff]  }
   0xf   : > { %871 = vmatpush1.bf16.msra.mxu0 %v4508_v18  ;;  %v4524_v29 = vld [vmem:[%s5246_s19 + $0xe4] ss:$36 sps:$4 sm:$0xff]   ;;  %v4528_v48 = vld [vmem:[%s5246_s19 + $0x94] ss:$36 sps:$4 sm:$0xff]   ;;  %v4530_v49 = vld [vmem:[%s5246_s19 + $0x9c] ss:$36 sps:$4 sm:$0xff]  }
  0x10   : > { %914 = vmatpush1.bf16.msra.mxu1 %v4509_v19  ;;  %872 = vmatprep.subr.bf16.mxu0 %v4510_v20  ;;  %v4527_v31 = vld [vmem:[%s5246_s19 + $0xe0] ss:$36 sps:$4 sm:$0xff]   ;;  %v4532_v50 = vld [vmem:[%s5246_s19 + $0x90] ss:$36 sps:$4 sm:$0xff]   ;;  %v4533_v51 = vld [vmem:[%s5246_s19 + $0x98] ss:$36 sps:$4 sm:$0xff]  }
  0x11   : > { %915 = vmatprep.subr.bf16.mxu1 %v4512_v21  ;;  %v4534_v52 = vld [vmem:[%s5246_s19 + $0x4c] ss:$36 sps:$4 sm:$0xff]   ;;  %v4536_v53 = vld [vmem:[%s5246_s19 + $0x54] ss:$36 sps:$4 sm:$0xff]   ;;  %v4540_v56 = vld [vmem:[%s5246_s19 + $0x4] ss:$36 sps:$4 sm:$0xff]  }
  0x12   : > { %v4538_v54 = vld [vmem:[%s5246_s19 + $0x48] ss:$36 sps:$4 sm:$0xff]   ;;  %v4539_v55 = vld [vmem:[%s5246_s19 + $0x50] ss:$36 sps:$4 sm:$0xff]   ;;  %v4544_v58 = vld [vmem:[%s5246_s19] ss:$36 sps:$4 sm:$0xff]  }
  0x13   : > { %873 = vmatpush1.bf16.msra.mxu0 %v4514_v22  ;;  %v4542_v57 = vld [vmem:[%s5246_s19 + $0xc] ss:$36 sps:$4 sm:$0xff]   ;;  %v4546_v60 = vld [vmem:[%s5246_s19 + $0x31c] ss:$36 sps:$4 sm:$0xff]   ;;  %v4548_v61 = vld [vmem:[%s5246_s19 + $0x324] ss:$36 sps:$4 sm:$0xff]  }
  0x14   : > { %916 = vmatpush1.bf16.msra.mxu1 %v4515_v23  ;;  %874 = vmatprep.subr.bf16.mxu0 %v4516_v24  ;;  %v4545_v59 = vld [vmem:[%s5246_s19 + $0x8] ss:$36 sps:$4 sm:$0xff]   ;;  %v4550_v62 = vld [vmem:[%s5246_s19 + $0x318] ss:$36 sps:$4 sm:$0xff]   ;;  %v4551_v63 = vld [vmem:[%s5246_s19 + $0x320] ss:$36 sps:$4 sm:$0xff]  }
  0x15   : > { %917 = vmatprep.subr.bf16.mxu1 %v4518_v25  ;;  %v4552_v5 = vld [vmem:[%s5246_s19 + $0x2d4] ss:$36 sps:$4 sm:$0xff]   ;;  %v4554_v6 = vld [vmem:[%s5246_s19 + $0x2dc] ss:$36 sps:$4 sm:$0xff]   ;;  %v4558_v10 = vld [vmem:[%s5246_s19 + $0x28c] ss:$36 sps:$4 sm:$0xff]  }
  0x16   : > { %v4556_v8 = vld [vmem:[%s5246_s19 + $0x2d0] ss:$36 sps:$4 sm:$0xff]   ;;  %v4557_v9 = vld [vmem:[%s5246_s19 + $0x2d8] ss:$36 sps:$4 sm:$0xff]   ;;  %v4562_v12 = vld [vmem:[%s5246_s19 + $0x288] ss:$36 sps:$4 sm:$0xff]  }
  0x17   : > { %875 = vmatpush1.bf16.msra.mxu0 %v4520_v26  ;;  %v4560_v11 = vld [vmem:[%s5246_s19 + $0x294] ss:$36 sps:$4 sm:$0xff]   ;;  %v4564_v14 = vld [vmem:[%s5246_s19 + $0x244] ss:$36 sps:$4 sm:$0xff]   ;;  %v4566_v15 = vld [vmem:[%s5246_s19 + $0x24c] ss:$36 sps:$4 sm:$0xff]  }
  0x18   : > { %918 = vmatpush1.bf16.msra.mxu1 %v4521_v27  ;;  %876 = vmatprep.subr.bf16.mxu0 %v4522_v28  ;;  %v4563_v13 = vld [vmem:[%s5246_s19 + $0x290] ss:$36 sps:$4 sm:$0xff]   ;;  %v4568_v16 = vld [vmem:[%s5246_s19 + $0x240] ss:$36 sps:$4 sm:$0xff]   ;;  %v4569_v17 = vld [vmem:[%s5246_s19 + $0x248] ss:$36 sps:$4 sm:$0xff]  }
  0x19   : > { %919 = vmatprep.subr.bf16.mxu1 %v4524_v29  ;;  %v4572_v18 = vld [vmem:[%s5246_s19 + $0x20c] ss:$36 sps:$4 sm:$0xff]   ;;  %v4575_v19 = vld [vmem:[%s5246_s19 + $0x214] ss:$36 sps:$4 sm:$0xff]   ;;  %v5324_v26 = vshrl.u32 %v46_v0, 7  ;;  %s4353_s14 = smul.u32 384, %s5118_s16 }
  0x1a   : > { %v66_v29 = vld [vmem:[%s65_s23] sm:$0x3]  ;;  %s4354_s22 = smul.u32 576, %s5118_s16 }
  0x1b   : > { %877 = vmatpush1.bf16.msra.mxu0 %v4526_v30  ;;  %v5331_v27 = vsub.s32 1, %v5324_v26  ;;  %v5334_v28 = vsub.s32 0, %v5324_v26  ;;  %s5559_s17 = scalar_lea.vmem %s6167_s5, %s4353_s14 }
  0x1c   : > { %920 = vmatpush1.bf16.msra.mxu1 %v4527_v31  ;;  %878 = vmatprep.subr.bf16.mxu0 %v4528_v48  ;;  %s5686_s25 = scalar_lea.vmem %s6171_s9, %s4354_s22 }
  0x1d   : > { %921 = vmatprep.subr.bf16.mxu1 %v4530_v49 }
  0x1f   : > { %879 = vmatpush1.bf16.msra.mxu0 %v4532_v50 }
  0x20   : > { %922 = vmatpush1.bf16.msra.mxu1 %v4533_v51  ;;  %880 = vmatprep.subr.bf16.mxu0 %v4534_v52  ;;  %v4570_v52 = vld [vmem:[%s5246_s19 + $0x208] ss:$36 sps:$4 sm:$0xff]  }
  0x21   : > { %923 = vmatprep.subr.bf16.mxu1 %v4536_v53 }
  0x23   : > { %881 = vmatpush1.bf16.msra.mxu0 %v4538_v54  ;;  %v4581_v54 = vld [vmem:[%s5246_s19 + $0x1cc] ss:$36 sps:$4 sm:$0xff]  }
  0x24   : > { %924 = vmatpush1.bf16.msra.mxu1 %v4539_v55  ;;  %882 = vmatprep.subr.bf16.mxu0 %v4540_v56  ;;  %v4576_v55 = vld [vmem:[%s5246_s19 + $0x1c0] ss:$36 sps:$4 sm:$0xff]   ;;  %v4579_v56 = vld [vmem:[%s5246_s19 + $0x1c8] ss:$36 sps:$4 sm:$0xff]  }
  0x25   : > { %925 = vmatprep.subr.bf16.mxu1 %v4542_v57  ;;  %v4584_v57 = vld [vmem:[%s5246_s19 + $0x17c] ss:$36 sps:$4 sm:$0xff]  }
  0x27   : > { %883 = vmatpush1.bf16.msra.mxu0 %v4544_v58  ;;  %v4587_v58 = vld [vmem:[%s5246_s19 + $0x184] ss:$36 sps:$4 sm:$0xff]  }
  0x28   : > { %926 = vmatpush1.bf16.msra.mxu1 %v4545_v59  ;;  %892 = vmatprep.subr.bf16.mxu0 %v4546_v60  ;;  %v4582_v59 = vld [vmem:[%s5246_s19 + $0x178] ss:$36 sps:$4 sm:$0xff]   ;;  %v4585_v60 = vld [vmem:[%s5246_s19 + $0x180] ss:$36 sps:$4 sm:$0xff]  }
  0x29   : > { %935 = vmatprep.subr.bf16.mxu1 %v4548_v61  ;;  %v4590_v61 = vld [vmem:[%s5246_s19 + $0x134] ss:$36 sps:$4 sm:$0xff]  }
  0x2b   : > { %893 = vmatpush2.bf16.msra.mxu0 %v4550_v62  ;;  %v4593_v62 = vld [vmem:[%s5246_s19 + $0x13c] ss:$36 sps:$4 sm:$0xff]  }
  0x2c   : > { %936 = vmatpush2.bf16.msra.mxu1 %v4551_v63  ;;  %894 = vmatprep.subr.bf16.mxu0 %v4552_v5  ;;  %v4588_v63 = vld [vmem:[%s5246_s19 + $0x130] ss:$36 sps:$4 sm:$0xff]   ;;  %v4591_v5 = vld [vmem:[%s5246_s19 + $0x138] ss:$36 sps:$4 sm:$0xff]  }
  0x2d   : > { %937 = vmatprep.subr.bf16.mxu1 %v4554_v6  ;;  %v4596_v6 = vld [vmem:[%s5246_s19 + $0xec] ss:$36 sps:$4 sm:$0xff]  }
  0x2f   : > { %895 = vmatpush2.bf16.msra.mxu0 %v4556_v8  ;;  %v4599_v8 = vld [vmem:[%s5246_s19 + $0xf4] ss:$36 sps:$4 sm:$0xff]  }
  0x30   : > { %938 = vmatpush2.bf16.msra.mxu1 %v4557_v9  ;;  %896 = vmatprep.subr.bf16.mxu0 %v4558_v10  ;;  %v4594_v9 = vld [vmem:[%s5246_s19 + $0xe8] ss:$36 sps:$4 sm:$0xff]   ;;  %v4597_v10 = vld [vmem:[%s5246_s19 + $0xf0] ss:$36 sps:$4 sm:$0xff]  }
  0x31   : > { %939 = vmatprep.subr.bf16.mxu1 %v4560_v11  ;;  %v4602_v11 = vld [vmem:[%s5246_s19 + $0xa4] ss:$36 sps:$4 sm:$0xff]  }
  0x33   : > { %897 = vmatpush2.bf16.msra.mxu0 %v4562_v12  ;;  %v4605_v12 = vld [vmem:[%s5246_s19 + $0xac] ss:$36 sps:$4 sm:$0xff]  }
  0x34   : > { %940 = vmatpush2.bf16.msra.mxu1 %v4563_v13  ;;  %898 = vmatprep.subr.bf16.mxu0 %v4564_v14  ;;  %v4600_v13 = vld [vmem:[%s5246_s19 + $0xa0] ss:$36 sps:$4 sm:$0xff]   ;;  %v4603_v14 = vld [vmem:[%s5246_s19 + $0xa8] ss:$36 sps:$4 sm:$0xff]  }
  0x35   : > { %941 = vmatprep.subr.bf16.mxu1 %v4566_v15  ;;  %v4608_v15 = vld [vmem:[%s5246_s19 + $0x5c] ss:$36 sps:$4 sm:$0xff]  }
  0x37   : > { %899 = vmatpush2.bf16.msra.mxu0 %v4568_v16  ;;  %v4611_v16 = vld [vmem:[%s5246_s19 + $0x64] ss:$36 sps:$4 sm:$0xff]  }
  0x38   : > { %942 = vmatpush2.bf16.msra.mxu1 %v4569_v17  ;;  %954 = vmatprep.subr.bf16.mxu0 %v4572_v18  ;;  %v4606_v17 = vld [vmem:[%s5246_s19 + $0x58] ss:$36 sps:$4 sm:$0xff]   ;;  %v4609_v18 = vld [vmem:[%s5246_s19 + $0x60] ss:$36 sps:$4 sm:$0xff]  }
  0x39   : > { %997 = vmatprep.subr.bf16.mxu1 %v4575_v19  ;;  %v4614_v19 = vld [vmem:[%s5246_s19 + $0x14] ss:$36 sps:$4 sm:$0xff]  }
  0x93   : > { %v73_v32 = vpop.xlane.xlu0 %72 }
  0x94   : > { %v79_v33 = vmul.f32 0.0052083335, %v73_v32 }
  0x96   : > { %v5269_v34 = vsub.f32 %v5114_v1, %v79_v33  ;;  %v5272_v35 = vsub.f32 %v5110_v2, %v79_v33  ;;  %v68_v33 = vld [vmem:[%s67_s26] sm:$0x3]  ;;  %s4355_s26 = smul.u32 768, %s5118_s16 }
  0x97   : > { %v77_v36 = vpop.xlane.xlu0 %76 }
  0x98   : > { %v80_v37 = vmul.f32 0.0052083335, %v77_v36  ;;  %v85_v38 = vmul.f32 %v5269_v34, %v5269_v34  ;;  %v86_v39 = vmul.f32 %v5272_v35, %v5272_v35  ;;  %v115_v36 = vrot.slane %v66_v29, %v5331_v27  ;;  %s5763_s29 = scalar_lea.vmem %s6173_s11, %s4355_s26  ;;  %s3251_s26 = scalar_lea.vmem %s6174_s12, %s5321_s20 }
  0x9a   : > { %v5279_v40 = vsub.f32 %v5106_v3, %v80_v37  ;;  %v5282_v41 = vsub.f32 %v5102_v4, %v80_v37  ;;  %v89_v42 = vsel %vm69_vm1, %v86_v39, 0.0  ;;  %v111_v37 = vrot.slane %v66_v29, %v5334_v28  ;;  %v4621_v29 = vld [vmem:[%s5246_s19 + $0x330] ss:$36 sps:$4 sm:$0xff]  }
  0x9b   : > { %v90_v43 = vadd.f32 %v89_v42, %v85_v38  ;;  %v130_v39 = vrot.slane %v68_v33, %v5331_v27  ;;  %v126_v42 = vrot.slane %v68_v33, %v5334_v28  ;;  %v4627_v33 = vld [vmem:[%s5246_s19 + $0x2e8] ss:$36 sps:$4 sm:$0xff]  }
  0x9c   : > { %v87_v44 = vmul.f32 %v5279_v40, %v5279_v40  ;;  %v88_v45 = vmul.f32 %v5282_v41, %v5282_v41 }
  0x9d   : > { %91 = vadd.xlane.f32.xlu1 %v90_v43 }
  0x9e   : > { %v93_v46 = vsel %vm69_vm1, %v88_v45, 0.0 }
  0x9f   : > { %v94_v47 = vadd.f32 %v93_v46, %v87_v44 }
  0xa1   : > { %95 = vadd.xlane.f32.xlu1 %v94_v47 }
 0x126   : > { %v92_v20 = vpop.xlane.xlu1 %91 }
 0x127   : > { %v97_v21 = vmul.f32 0.0052083335, %v92_v20  ;;  %v4617_v20 = vld [vmem:[%s5246_s19 + $0x1c] ss:$36 sps:$4 sm:$0xff]  }
 0x129   : > { %v99_v22 = vadd.f32 1e-12, %v97_v21  ;;  %v4612_v21 = vld [vmem:[%s5246_s19 + $0x10] ss:$36 sps:$4 sm:$0xff]  }
 0x12a   : > { %v96_v23 = vpop.xlane.xlu1 %95 }
 0x12b   : > { %4978 = vrsqrt.f32 %v99_v22  ;;  %v98_v24 = vmul.f32 0.0052083335, %v96_v23  ;;  %v4615_v22 = vld [vmem:[%s5246_s19 + $0x18] ss:$36 sps:$4 sm:$0xff]   ;;  %v4620_v23 = vld [vmem:[%s5246_s19 + $0x32c] ss:$36 sps:$4 sm:$0xff]  }
 0x12d   : > { %v100_v25 = vadd.f32 1e-12, %v98_v24  ;;  %v4623_v24 = vld [vmem:[%s5246_s19 + $0x334] ss:$36 sps:$4 sm:$0xff]  }
 0x12f   : > { %4980 = vrsqrt.f32 %v100_v25  ;;  %v4618_v25 = vld [vmem:[%s5246_s19 + $0x328] ss:$36 sps:$4 sm:$0xff]  }
 0x138   : > { %v4979_v30 = vpop.eup %4978 }
 0x139   : > { %v103_v31 = vmul.f32 %v4979_v30, %v5269_v34  ;;  %v104_v32 = vmul.f32 %v4979_v30, %v5272_v35  ;;  %v4626_v30 = vld [vmem:[%s5246_s19 + $0x2e4] ss:$36 sps:$4 sm:$0xff]  }
 0x13b   : > { %v119_v34 = vmul.f32 %v115_v36, %v104_v32  ;;  %v118_v35 = vmul.f32 %v111_v37, %v103_v31  ;;  %v4629_v31 = vld [vmem:[%s5246_s19 + $0x2ec] ss:$36 sps:$4 sm:$0xff]   ;;  %v4624_v32 = vld [vmem:[%s5246_s19 + $0x2e0] ss:$36 sps:$4 sm:$0xff]  }
 0x13c   : > { %v4981_v38 = vpop.eup %4980 }
 0x13d   : > { %v105_v43 = vmul.f32 %v4981_v38, %v5279_v40  ;;  %v106_v44 = vmul.f32 %v4981_v38, %v5282_v41  ;;  %v134_v47 = vadd.f32 %v130_v39, %v119_v34  ;;  %v133_v49 = vadd.f32 %v126_v42, %v118_v35  ;;  %v4573_v40 = vld [vmem:[%s5246_s19 + $0x210] ss:$36 sps:$4 sm:$0xff]   ;;  %v4578_v41 = vld [vmem:[%s5246_s19 + $0x1c4] ss:$36 sps:$4 sm:$0xff]   ;;  %v4630_v38 = vld [vmem:[%s5246_s19 + $0x298] ss:$36 sps:$4 sm:$0xff]  }
 0x13e   : > { %v4639_v34 = vld [vmem:[%s5246_s19 + $0x258] ss:$36 sps:$4 sm:$0xff]  }
 0x13f   : > { %v121_v45 = vmul.f32 %v115_v36, %v106_v44  ;;  %v120_v46 = vmul.f32 %v111_v37, %v105_v43  ;;  %v4632_v36 = vld [vmem:[%s5246_s19 + $0x29c] ss:$36 sps:$4 sm:$0xff]   ;;  %v4635_v37 = vld [vmem:[%s5246_s19 + $0x2a4] ss:$36 sps:$4 sm:$0xff]   ;;  %v4636_v44 = vld [vmem:[%s5246_s19 + $0x250] ss:$36 sps:$4 sm:$0xff]  }
 0x140   : > { %v4641_v43 = vld [vmem:[%s5246_s19 + $0x25c] ss:$36 sps:$4 sm:$0xff]  }
 0x141   : > { %v136_v48 = vadd.f32 %v130_v39, %v121_v45  ;;  %v135_v50 = vadd.f32 %v126_v42, %v120_v46  ;;  %v4633_v39 = vld [vmem:[%s5246_s19 + $0x2a0] ss:$36 sps:$4 sm:$0xff]   ;;  %v4638_v42 = vld [vmem:[%s5246_s19 + $0x254] ss:$36 sps:$4 sm:$0xff]   ;;  %v5121_v45 = vmov 0  }
 0x142   : > { %v4642_v35 = vld [vmem:[%s5246_s19 + $0x218] ss:$36 sps:$4 sm:$0xff]   ;;  %v4643_v46 = vld [vmem:[%s5246_s19 + $0x1d0] ss:$36 sps:$4 sm:$0xff]  }
 0x143   : > { %v5348_v51 = vpack.c.bf16 %v136_v48, %v134_v47  ;;  %v5352_v53 = vpack.c.bf16 %v135_v50, %v133_v49  ;;  %v4644_v47 = vld [vmem:[%s5246_s19 + $0x188] ss:$36 sps:$4 sm:$0xff]   ;;  %v4645_v48 = vld [vmem:[%s5246_s19 + $0x140] ss:$36 sps:$4 sm:$0xff]   ;;  %v4646_v49 = vld [vmem:[%s5246_s19 + $0xf8] ss:$36 sps:$4 sm:$0xff]  }
 0x144   : > { %v4647_v50 = vld [vmem:[%s5246_s19 + $0xb0] ss:$36 sps:$4 sm:$0xff]  }
 0x145   : > { %4119 = vmatprep.mubr.msk.bf16.mxu0 %vm69_vm1, %v5348_v51  ;;  %4120 = vmatprep.mubr.msk.bf16.mxu1 %vm69_vm1, %v5348_v51 }
 0x146   : > { %901 = vmatmul.mubr.bf16.vlgmr.msra.gmra.mxu0 %v5352_v53  ;;  %944 = vmatmul.mubr.bf16.vlgmr.msra.gmra.mxu1 %v5352_v53 }
 0x147   : > { %955 = vmatpush1.bf16.msra.mxu0 %v4570_v52  ;;  %998 = vmatpush1.bf16.msra.mxu1 %v4573_v40  ;;  %v5122_v52 = vmov 0.0   ;;  %v4649_v40 = vld [vmem:[%s5246_s19 + $0x20] ss:$36 sps:$4 sm:$0xff]  }
 0x148   : > { %4121 = vmatprep.mubr.msk.bf16.mxu0 %vm69_vm1, %v5348_v51  ;;  %4122 = vmatprep.mubr.msk.bf16.mxu1 %vm69_vm1, %v5348_v51 }
 0x149   : > { %956 = vmatprep.subr.bf16.mxu0 %v4578_v41  ;;  %999 = vmatprep.subr.bf16.mxu1 %v4581_v54  ;;  %v4650_v41 = vld [vmem:[%s5246_s19 + $0x338] ss:$36 sps:$4 sm:$0xff]   ;;  %v4651_v54 = vld [vmem:[%s5246_s19 + $0x2f0] ss:$36 sps:$4 sm:$0xff]  }
 0x14b   : > { %957 = vmatpush1.bf16.msra.mxu0 %v4576_v55  ;;  %1000 = vmatpush1.bf16.msra.mxu1 %v4579_v56  ;;  %v4652_v55 = vld [vmem:[%s5246_s19 + $0x2a8] ss:$36 sps:$4 sm:$0xff]   ;;  %v4653_v56 = vld [vmem:[%s5246_s19 + $0x260] ss:$36 sps:$4 sm:$0xff]  }
 0x14c   : > { %958 = vmatprep.subr.bf16.mxu0 %v4584_v57  ;;  %1001 = vmatprep.subr.bf16.mxu1 %v4587_v58  ;;  %v282_v57 = vsub.s32 3, %v5324_v26  ;;  %v5451_v58 = vld [vmem:[%s5447_s30] sm:$0xff] }
 0x14f   : > { %959 = vmatpush1.bf16.msra.mxu0 %v4582_v59  ;;  %1002 = vmatpush1.bf16.msra.mxu1 %v4585_v60  ;;  %v278_v59 = vsub.s32 2, %v5324_v26 }
 0x150   : > { %960 = vmatprep.subr.bf16.mxu0 %v4590_v61  ;;  %1003 = vmatprep.subr.bf16.mxu1 %v4593_v62 }
 0x153   : > { %961 = vmatpush1.bf16.msra.mxu0 %v4588_v63  ;;  %1004 = vmatpush1.bf16.msra.mxu1 %v4591_v5  ;;  %v5462_v63 = vrot.slane %v5451_v58, %v278_v59 }
 0x154   : > { %962 = vmatprep.subr.bf16.mxu0 %v4596_v6  ;;  %1005 = vmatprep.subr.bf16.mxu1 %v4599_v8  ;;  %v271_v6 = vrot.slane %v5451_v58, %v5334_v28 }
 0x157   : > { %963 = vmatpush1.bf16.msra.mxu0 %v4594_v9  ;;  %1006 = vmatpush1.bf16.msra.mxu1 %v4597_v10 }
 0x158   : > { %964 = vmatprep.subr.bf16.mxu0 %v4602_v11  ;;  %1007 = vmatprep.subr.bf16.mxu1 %v4605_v12 }
 0x15b   : > { %965 = vmatpush1.bf16.msra.mxu0 %v4600_v13  ;;  %1008 = vmatpush1.bf16.msra.mxu1 %v4603_v14 }
 0x15c   : > { %966 = vmatprep.subr.bf16.mxu0 %v4608_v15  ;;  %1009 = vmatprep.subr.bf16.mxu1 %v4611_v16 }
 0x15f   : > { %967 = vmatpush1.bf16.msra.mxu0 %v4606_v17  ;;  %1010 = vmatpush1.bf16.msra.mxu1 %v4609_v18 }
 0x160   : > { %968 = vmatprep.subr.bf16.mxu0 %v4614_v19  ;;  %1011 = vmatprep.subr.bf16.mxu1 %v4617_v20  ;;  %v294_v20 = vsub.s32 6, %v5324_v26 }
 0x163   : > { %969 = vmatpush1.bf16.msra.mxu0 %v4612_v21  ;;  %1012 = vmatpush1.bf16.msra.mxu1 %v4615_v22  ;;  %v298_v21 = vsub.s32 7, %v5324_v26  ;;  %v295_v22 = vrot.slane %v5451_v58, %v294_v20 }
 0x164   : > { %978 = vmatprep.subr.bf16.mxu0 %v4620_v23  ;;  %1021 = vmatprep.subr.bf16.mxu1 %v4623_v24 }
 0x165   : > { %v299_v24 = vrot.slane %v5451_v58, %v298_v21 }
 0x167   : > { %979 = vmatpush2.bf16.msra.mxu0 %v4618_v25  ;;  %1022 = vmatpush2.bf16.msra.mxu1 %v4621_v29 }
 0x168   : > { %980 = vmatprep.subr.bf16.mxu0 %v4626_v30  ;;  %1023 = vmatprep.subr.bf16.mxu1 %v4629_v31  ;;  %v290_v31 = vsub.s32 5, %v5324_v26 }
 0x16b   : > { %981 = vmatpush2.bf16.msra.mxu0 %v4624_v32  ;;  %1024 = vmatpush2.bf16.msra.mxu1 %v4627_v33 }
 0x16c   : > { %982 = vmatprep.subr.bf16.mxu0 %v4632_v36  ;;  %1025 = vmatprep.subr.bf16.mxu1 %v4635_v37 }
 0x16f   : > { %983 = vmatpush2.bf16.msra.mxu0 %v4630_v38  ;;  %1026 = vmatpush2.bf16.msra.mxu1 %v4633_v39 }
 0x170   : > { %984 = vmatprep.subr.bf16.mxu0 %v4638_v42  ;;  %1027 = vmatprep.subr.bf16.mxu1 %v4641_v43  ;;  %v5494_v43 = vrot.slane %v5451_v58, %v290_v31 }
 0x173   : > { %985 = vmatpush2.bf16.msra.mxu0 %v4636_v44  ;;  %1028 = vmatpush2.bf16.msra.mxu1 %v4639_v34 }
 0x174   : > { %1040 = vmatprep.subr.bf16.mxu0 %v5121_v45  ;;  %4386 = vmatprep.subr.bf16.mxu1 %v5122_v52 }
 0x176   : > { %987 = vmatmul.mubr.bf16.vlgmr.msra.gmra.mxu0 %v5352_v53  ;;  %1030 = vmatmul.mubr.bf16.vlgmr.msra.gmra.mxu1 %v5352_v53 }
 0x177   : > { %1041 = vmatpush1.bf16.msra.mxu0 %v4642_v35  ;;  %4123 = vmatprep.mubr.msk.bf16.mxu0 %vm69_vm1, %v5348_v51  ;;  %v4648_v51 = vld [vmem:[%s5246_s19 + $0x68] ss:$36 sps:$4 sm:$0xff]   ;;  %s2296_s19 = smul.u32 6, %s5118_s16  ;;  %s59_s16 = sadd.s32 1, %s5118_s16  }
 0x178   : > { %1042 = vmatprep.subr.bf16.mxu0 %v5121_v45  ;;  %4388 = vmatprep.mubr.msk.bf16.mxu1 %vm5123_vm2, %v5122_v52  ;;  %p56_p0 = scmp.ge.s32.totalorder %s59_s16, 12  }
 0x179   : > { %s2297_s23 = scalar_lea.vmem %s6172_s10, %s2296_s19  ;;  %s5125_s1 = smov (%p56_p0), [#allocation2]  }
 0x17a   :  { %s3959_s2 = sshll.u32 (%p56_p0), %s5125_s1, 4  ;;  %s3960_s2 = int_to_ptr.vmem [resolvable:$true] %s3959_s2 }
 0x17b   : > { %1043 = vmatpush1.bf16.msra.mxu0 %v4643_v46  ;;  %s5058_s3 = scalar_lea.vmem (%p56_p0), %s3960_s2, 64  ;;  %p5063_p2 = scmp.lt.s32.totalorder (%p56_p0), %s3960_s2, %s3960_s2 }
 0x17c   : > { %1044 = vmatprep.subr.bf16.mxu0 %v5121_v45  ;;  %p5059_p1 = scmp.ne.s32.totalorder (%p56_p0), %s3960_s2, %s5058_s3  ;;  %p5064_p3 = scmp.lt.s32.totalorder (%p56_p0), %s5058_s3, %s5058_s3 }
 0x17e   :  { %p5065_p4 = por (%p56_p0), %p5064_p3, %p5063_p2 }
 0x17f   : > { %1045 = vmatpush1.bf16.msra.mxu0 %v4644_v47 }
 0x180   : > { %1046 = vmatprep.subr.bf16.mxu0 %v5121_v45  ;;  %p5066_p5 = pnand (%p56_p0), %p5065_p4, %p5059_p1 }
 0x183   : > { %1047 = vmatpush1.bf16.msra.mxu0 %v4645_v48 }
 0x184   : > { %1048 = vmatprep.subr.bf16.mxu0 %v5121_v45 }
 0x187   : > { %1049 = vmatpush1.bf16.msra.mxu0 %v4646_v49 }
 0x188   : > { %1050 = vmatprep.subr.bf16.mxu0 %v5121_v45 }
 0x18b   : > { %1051 = vmatpush1.bf16.msra.mxu0 %v4647_v50 }
 0x18c   : > { %1052 = vmatprep.subr.bf16.mxu0 %v5121_v45 }
 0x18f   : > { %1053 = vmatpush1.bf16.msra.mxu0 %v4648_v51 }
 0x190   : > { %1054 = vmatprep.subr.bf16.mxu0 %v5121_v45 }
 0x193   : > { %1055 = vmatpush1.bf16.msra.mxu0 %v4649_v40 }
 0x194   : > { %1064 = vmatprep.subr.bf16.mxu0 %v5121_v45 }
 0x197   : > { %1065 = vmatpush2.bf16.msra.mxu0 %v4650_v41 }
 0x198   : > { %1066 = vmatprep.subr.bf16.mxu0 %v5121_v45 }
 0x19b   : > { %1067 = vmatpush2.bf16.msra.mxu0 %v4651_v54  ;;  %v4010_v54 = vld [vmem:[%s5447_s30 + $0x8] ss:$0 sm:$0xff] }
 0x19c   : > { %1068 = vmatprep.subr.bf16.mxu0 %v5121_v45 }
 0x19f   : > { %1069 = vmatpush2.bf16.msra.mxu0 %v4652_v55 }
 0x1a0   : > { %1070 = vmatprep.subr.bf16.mxu0 %v5121_v45 }
 0x1a3   : > { %1071 = vmatpush2.bf16.msra.mxu0 %v4653_v56 }
 0x1a4   : > { %4380 = vmatprep.subr.bf16.mxu0 %v5122_v52 }
 0x1a6   : > { %1073 = vmatmul.mubr.bf16.vlgmr.msra.gmra.mxu0 %v5352_v53  ;;  %v283_v53 = vrot.slane %v5451_v58, %v282_v57 }
 0x1a7   : > { %4382 = vmatprep.mubr.msk.bf16.mxu0 %vm5123_vm2, %v5122_v52 }
 0x206   : > { %v5457_v60 = vpop.f32.mrf.mxu1  ;;  %v902_v61 = vpop.f32.mrf.mxu0 }
 0x207   : > { %v903_v14 = vadd.f32 %v902_v61, %v271_v6 }
 0x208   : > { %v947_v62 = vpop.f32.mrf.mxu1  ;;  %v5466_v9 = vpop.f32.mrf.mxu0 }
 0x209   : > { %v948_v5 = vadd.f32 %v947_v62, %v283_v53  ;;  %v1132_v17 = vpack.c.bf16 %v903_v14, %v903_v14 }
 0x20a   : > { %v949_v8 = vpop.f32.mrf.mxu1  ;;  %v906_v15 = vpop.f32.mrf.mxu0 }
 0x20b   : > { %v1134_v10 = vpack.c.bf16 %v948_v5, %v948_v5  ;;  %v5469_v11 = vadd.f32 %v949_v8, %v5462_v63  ;;  %v907_v18 = vadd.f32 %v906_v15, %v271_v6 }
 0x20c   : > { %v951_v12 = vpop.f32.mrf.mxu1  ;;  %v5480_v23 = vpop.f32.mrf.mxu0 }
 0x20d   : > { %v952_v13 = vadd.f32 %v951_v12, %v283_v53  ;;  %4381 = vmatpush3.bf16.xpose.msra.mxu0 %v1134_v10  ;;  %v1133_v19 = vpack.c.bf16 %v907_v18, %v907_v18 }
 0x20e   : > { %4416 = vmatprep.subr.bf16.mxu0 %v5122_v52 }
 0x20f   : > { %v1135_v16 = vpack.c.bf16 %v952_v13, %v952_v13 }
 0x211   : > { %4387 = vmatpush3.bf16.xpose.msra.mxu1 %v1135_v16 }
 0x212   : > { %4392 = vmatprep.subr.bf16.mxu1 %v5122_v52 }
 0x214   : > { %4383 = vmatmul.mubr.bf16.vlgmr.msra.gmra.mxu0 %v1132_v17 }
 0x215   : > { %4418 = vmatprep.mubr.msk.bf16.mxu0 %vm5123_vm2, %v5122_v52 }
 0x218   : > { %4389 = vmatmul.mubr.bf16.vlgmr.msra.gmra.mxu1 %v1133_v19 }
 0x219   : > { %4394 = vmatprep.mubr.msk.bf16.mxu1 %vm5123_vm2, %v5122_v52 }
 0x236   : > { %v5483_v25 = vpop.f32.mrf.mxu0  ;;  %v1031_v29 = vpop.f32.mrf.mxu1 }
 0x237   : > { %v1032_v30 = vadd.f32 %v1031_v29, %v295_v22 }
 0x238   : > { %v5486_v32 = vpop.f32.mrf.mxu0  ;;  %v1033_v33 = vpop.f32.mrf.mxu1 }
 0x239   : > { %v1245_v36 = vpack.c.bf16 %v1032_v30, %v1032_v30  ;;  %v1034_v37 = vadd.f32 %v1033_v33, %v299_v24 }
 0x23a   : > { %v5488_v38 = vpop.f32.mrf.mxu0  ;;  %v1035_v39 = vpop.f32.mrf.mxu1 }
 0x23b   : > { %v1252_v42 = vsel %vm1250_vm3, %v1245_v36, 0  ;;  %v1453_v44 = vpack.c.bf16 %v1034_v37, %v1034_v37  ;;  %v1036_v34 = vadd.f32 %v1035_v39, %v295_v22 }
 0x23c   : > { %v994_v35 = vpop.f32.mrf.mxu0  ;;  %v1037_v46 = vpop.f32.mrf.mxu1  ;;  %4393 = vmatpush3.bf16.msra.mxu1 %v1252_v42 }
 0x23d   : > { %v1459_v47 = vsel %vm1250_vm3, %v1453_v44, 0  ;;  %v5498_v48 = vadd.f32 %v994_v35, %v5494_v43  ;;  %v1038_v49 = vadd.f32 %v1037_v46, %v299_v24  ;;  %4398 = vmatprep.subr.bf16.mxu1 %v5122_v52  ;;  %v1246_v50 = vpack.c.bf16 %v1036_v34, %v1036_v34 }
 0x23e   : > { %4417 = vmatpush3.bf16.msra.mxu0 %v1459_v47 }
 0x23f   : > { %v1454_v51 = vpack.c.bf16 %v1038_v49, %v1038_v49  ;;  %4428 = vmatprep.subr.bf16.mxu0 %v5122_v52  ;;  %v1298_v40 = vsel %vm1250_vm3, %v1246_v50, 0 }
 0x241   : > { %v5504_v41 = vsel %vm1250_vm3, %v1454_v51, 0 }
 0x266   : > { %v1074_v55 = vpop.f32.mrf.mxu0 }
 0x267   : > { %v1075_v56 = vadd.f32 %v4010_v54, %v1074_v55  ;;  %v286_v55 = vsub.s32 4, %v5324_v26 }
 0x268   : > { %v1076_v53 = vpop.f32.mrf.mxu0 }
 0x269   : > { %v1906_v61 = vpack.c.bf16 %v1075_v56, %v1075_v56 }
 0x26a   : > { %v1077_v62 = vpop.f32.mrf.mxu0 }
 0x26b   : > { %v5508_v5 = vsel %vm1250_vm3, %v1906_v61, 0  ;;  %v1078_v6 = vadd.f32 %v4010_v54, %v1077_v62  ;;  %v287_v62 = vrot.slane %v5451_v58, %v286_v55 }
 0x26c   : > { %v1079_v8 = vpop.f32.mrf.mxu0 }
 0x26d   : > { %v1907_v10 = vpack.c.bf16 %v1078_v6, %v1078_v6  ;;  %v989_v8 = vadd.f32 %v5483_v25, %v287_v62 }
 0x26f   : > { %v5511_v12 = vsel %vm1250_vm3, %v1907_v10, 0  ;;  %v275_v10 = vrot.slane %v5451_v58, %v5331_v27  ;;  %vm3942_vm3 = vcmask (%p56_p0), 1043459  }
 0x271   : > { %v909_v58 = vadd.f32 %v5480_v23, %v275_v10 }
 0x273   : > { %v1342_v25 = vpack.c.bf16 %v909_v58, %v909_v58 }
 0x2d4   : > { %v1170_v13 = vpop.f32.mrf.mxu0 }
 0x2d5   : > { %v1216_v14 = vmul.f32 0.125, %v1170_v13 }
 0x2d6   : > { %v4384_v15 = vpop.f32.mrf.mxu0 }
 0x2d7   : > { %v1218_v16 = vadd.f32 %v1216_v14, %v5209_v7  ;;  %v1343_v14 = vpack.c.bf16 %v989_v8, %v989_v8  ;;  %v993_v15 = vadd.f32 %v5488_v38, %v287_v62 }
 0x2d8   : > { %v1173_v17 = vpop.f32.mrf.mxu0  ;;  %v1210_v18 = vpop.f32.mrf.mxu1 }
 0x2d9   : > { %v1217_v19 = vmul.f32 0.125, %v1210_v18  ;;  %v1221_v20 = vsel %vm1220_vm4, %v1218_v16, -inf  ;;  %v1344_v17 = vpack.c.bf16 %v993_v15, %v993_v15 }
 0x2da   : > { %v4390_v21 = vpop.f32.mrf.mxu1  ;;  %1222 = vmax.xlane.f32.xlu0 %v1221_v20  ;;  %v4385_v22 = vpop.f32.mrf.mxu0 }
 0x2db   : > { %v1219_v24 = vadd.f32 %v1217_v19, %v5209_v7 }
 0x2dc   : > { %v1213_v29 = vpop.f32.mrf.mxu1 }
 0x2dd   : > { %v1224_v30 = vsel %vm1220_vm4, %v1219_v24, -inf }
 0x2de   : > { %1225 = vmax.xlane.f32.xlu1 %v1224_v30  ;;  %v4391_v33 = vpop.f32.mrf.mxu1 }
 0x363   : > { %v1223_v36 = vpop.xlane.xlu0 %1222 }
 0x364   : > { %v1227_v37 = vsub.f32 %v1218_v16, %v1223_v36 }
 0x366   : > { %v1229_v39 = vmul.f32 1.442695, %v1227_v37 }
 0x367   : > { %v1226_v42 = vpop.xlane.xlu1 %1225 }
 0x368   : > { %4982 = vpow2.f32 %v1229_v39  ;;  %v1228_v44 = vsub.f32 %v1219_v24, %v1226_v42 }
 0x36a   : > { %v1231_v34 = vmul.f32 1.442695, %v1228_v44 }
 0x36c   : > { %4984 = vpow2.f32 %v1231_v34 }
 0x375   : > { %v4983_v35 = vpop.eup %4982 }
 0x376   : > { %v1233_v46 = vsel %vm1220_vm4, %v4983_v35, 0.0 }
 0x377   : > { %1234 = vadd.xlane.f32.xlu0 %v1233_v46 }
 0x379   : > { %v4985_v47 = vpop.eup %4984 }
 0x37a   : > { %v1236_v49 = vsel %vm1220_vm4, %v4985_v47, 0.0 }
 0x37b   : > { %1237 = vadd.xlane.f32.xlu1 %v1236_v49 }
 0x400   : > { %v1235_v50 = vpop.xlane.xlu0 %1234 }
 0x401   : > { %4986 = vrcp.f32 %v1235_v50 }
 0x404   : > { %v1238_v51 = vpop.xlane.xlu1 %1237 }
 0x405   : > { %4988 = vrcp.f32 %v1238_v51 }
 0x40e   : > { %v4987_v54 = vpop.eup %4986 }
 0x40f   : > { %v1241_v56 = vmul.f32 %v4987_v54, %v4983_v35 }
 0x411   : > { %v1243_v53 = vpack.c.bf16 %v1241_v56, %v1241_v56 }
 0x412   : > { %v4989_v61 = vpop.eup %4988 }
 0x413   : > { %4395 = vmatmul.mubr.msk.bf16.vlgmr.msra.gmra.mxu1 %vm1220_vm4, %v1243_v53  ;;  %v1242_v6 = vmul.f32 %v4989_v61, %v4985_v47 }
 0x414   : > { %4399 = vmatpush3.bf16.msra.mxu1 %v1298_v40  ;;  %4400 = vmatprep.mubr.msk.bf16.mxu1 %vm5123_vm2, %v5122_v52  ;;  %v905_v40 = vadd.f32 %v5466_v9, %v275_v10 }
 0x415   : > { %4404 = vmatprep.subr.bf16.mxu1 %v5122_v52  ;;  %v1244_v13 = vpack.c.bf16 %v1242_v6, %v1242_v6 }
 0x416   : > { %v1341_v16 = vpack.c.bf16 %v905_v40, %v905_v40 }
 0x41b   : > { %4401 = vmatmul.mubr.msk.bf16.vlgmr.msra.gmra.mxu1 %vm1220_vm4, %v1244_v13  ;;  %v4656_v13 = vld [vmem:[%s5559_s17 + $0xf4] ss:$8 sps:$4 sm:$0xff]  }
 0x41c   : > { %4405 = vmatpush3.bf16.xpose.msra.mxu1 %v1343_v14  ;;  %4406 = vmatprep.mubr.msk.bf16.mxu1 %vm5123_vm2, %v5122_v52 }
 0x41d   : > { %4410 = vmatprep.subr.bf16.mxu1 %v5122_v52 }
 0x423   : > { %4407 = vmatmul.mubr.bf16.vlgmr.msra.gmra.mxu1 %v1341_v16  ;;  %v991_v16 = vadd.f32 %v5486_v32, %v5494_v43  ;;  %v4654_v32 = vld [vmem:[%s5559_s17 + $0xf0] ss:$8 sps:$4 sm:$0xff]  }
 0x424   : > { %4411 = vmatpush3.bf16.xpose.msra.mxu1 %v1344_v17  ;;  %4412 = vmatprep.mubr.msk.bf16.mxu1 %vm5123_vm2, %v5122_v52 }
 0x425   : > { %4422 = vmatprep.subr.bf16.mxu1 %v5122_v52 }
 0x42b   : > { %4413 = vmatmul.mubr.bf16.vlgmr.msra.gmra.mxu1 %v1342_v25  ;;  %v1796_v25 = vpack.c.bf16 %v991_v16, %v991_v16 }
 0x42c   : > { %4423 = vmatpush3.bf16.msra.mxu1 %v5504_v41  ;;  %4424 = vmatprep.mubr.msk.bf16.mxu1 %vm5123_vm2, %v5122_v52 }
 0x42d   : > { %1628 = vmatprep.subr.bf16.mxu1 %v4656_v13 }
 0x4d3   : > { %v5543_v9 = vpop.f32.mrf.mxu1 }
 0x4d5   : > { %v4396_v38 = vpop.f32.mrf.mxu1 }
 0x4d6   : > { %v946_v38 = vadd.f32 %v5457_v60, %v5462_v63  ;;  %v4657_v60 = vld [vmem:[%s5559_s17 + $0xe0] ss:$8 sps:$4 sm:$0xff]   ;;  %v4662_v63 = vld [vmem:[%s5559_s17 + $0xd4] ss:$8 sps:$4 sm:$0xff]  }
 0x4d7   : > { %v1291_v18 = vpop.f32.mrf.mxu1 }
 0x4d8   : > { %v1794_v43 = vpack.c.bf16 %v946_v38, %v946_v38  ;;  %v4687_v38 = vld [vmem:[%s5559_s17 + $0x40] ss:$8 sps:$4 sm:$0xff]  }
 0x4d9   : > { %v4397_v19 = vpop.f32.mrf.mxu1 }
 0x4db   : > { %v5545_v20 = vpop.f32.mrf.mxu1 }
 0x4dc   : > { %v1340_v21 = vpack.c.bf16 %v5545_v20, %v5543_v9 }
 0x4dd   : > { %v4402_v23 = vpop.f32.mrf.mxu1 }
 0x4df   : > { %v1337_v22 = vpop.f32.mrf.mxu1 }
 0x4e0   : > { %v4659_v22 = vld [vmem:[%s5559_s17 + $0xe4] ss:$8 sps:$4 sm:$0xff]  }
 0x4e1   : > { %v4403_v24 = vpop.f32.mrf.mxu1 }
 0x4e2   : > { %v4660_v24 = vld [vmem:[%s5559_s17 + $0xd0] ss:$8 sps:$4 sm:$0xff]  }
 0x4e3   : > { %v1379_v29 = vpop.f32.mrf.mxu1 }
 0x4e4   : > { %v1425_v30 = vmul.f32 0.125, %v1379_v29  ;;  %v4665_v29 = vld [vmem:[%s5559_s17 + $0xc4] ss:$8 sps:$4 sm:$0xff]  }
 0x4e5   : > { %v4408_v33 = vpop.f32.mrf.mxu1 }
 0x4e6   : > { %v1427_v41 = vadd.f32 %v1425_v30, %v5209_v7  ;;  %v4668_v30 = vld [vmem:[%s5559_s17 + $0xb4] ss:$8 sps:$4 sm:$0xff]   ;;  %v4666_v33 = vld [vmem:[%s5559_s17 + $0xb0] ss:$8 sps:$4 sm:$0xff]  }
 0x4e7   : > { %v1382_v36 = vpop.f32.mrf.mxu1 }
 0x4e8   : > { %v1429_v37 = vsel %vm1220_vm4, %v1427_v41, -inf  ;;  %v4669_v36 = vld [vmem:[%s5559_s17 + $0xa0] ss:$8 sps:$4 sm:$0xff]  }
 0x4e9   : > { %1430 = vmax.xlane.f32.xlu0 %v1429_v37  ;;  %v4409_v39 = vpop.f32.mrf.mxu1  ;;  %v4672_v37 = vld [vmem:[%s5559_s17 + $0x90] ss:$8 sps:$4 sm:$0xff]  }
 0x4ea   : > { %v4674_v39 = vld [vmem:[%s5559_s17 + $0x94] ss:$8 sps:$4 sm:$0xff]  }
 0x4eb   : > { %v1419_v42 = vpop.f32.mrf.mxu1 }
 0x4ec   : > { %v1426_v44 = vmul.f32 0.125, %v1419_v42  ;;  %v4675_v42 = vld [vmem:[%s5559_s17 + $0x80] ss:$8 sps:$4 sm:$0xff]  }
 0x4ed   : > { %v4414_v34 = vpop.f32.mrf.mxu1 }
 0x4ee   : > { %v1428_v35 = vadd.f32 %v1426_v44, %v5209_v7  ;;  %v4677_v44 = vld [vmem:[%s5559_s17 + $0x84] ss:$8 sps:$4 sm:$0xff]   ;;  %v4680_v34 = vld [vmem:[%s5559_s17 + $0x74] ss:$8 sps:$4 sm:$0xff]  }
 0x4ef   : > { %v1422_v46 = vpop.f32.mrf.mxu1 }
 0x4f0   : > { %v1432_v47 = vsel %vm1220_vm4, %v1428_v35, -inf }
 0x4f1   : > { %1433 = vmax.xlane.f32.xlu1 %v1432_v47  ;;  %v4415_v49 = vpop.f32.mrf.mxu1 }
 0x572   : > { %v1431_v50 = vpop.xlane.xlu0 %1430 }
 0x573   : > { %v1435_v51 = vsub.f32 %v1427_v41, %v1431_v50  ;;  %v4671_v41 = vld [vmem:[%s5559_s17 + $0xa4] ss:$8 sps:$4 sm:$0xff]  }
 0x575   : > { %v1437_v54 = vmul.f32 1.442695, %v1435_v51 }
 0x577   : > { %4990 = vpow2.f32 %v1437_v54  ;;  %v4678_v54 = vld [vmem:[%s5559_s17 + $0x70] ss:$8 sps:$4 sm:$0xff]  }
 0x57a   : > { %v1434_v56 = vpop.xlane.xlu1 %1433 }
 0x57b   : > { %v1436_v53 = vsub.f32 %v1428_v35, %v1434_v56 }
 0x57d   : > { %v1439_v61 = vmul.f32 1.442695, %v1436_v53 }
 0x57f   : > { %4992 = vpow2.f32 %v1439_v61  ;;  %v4683_v61 = vld [vmem:[%s5559_s17 + $0x64] ss:$8 sps:$4 sm:$0xff]  }
 0x584   : > { %v4991_v62 = vpop.eup %4990 }
 0x585   : > { %v1441_v6 = vsel %vm1220_vm4, %v4991_v62, 0.0 }
 0x586   : > { %1442 = vadd.xlane.f32.xlu0 %v1441_v6 }
 0x58c   : > { %v4993_v8 = vpop.eup %4992 }
 0x58d   : > { %v1444_v10 = vsel %vm1220_vm4, %v4993_v8, 0.0 }
 0x58e   : > { %1445 = vadd.xlane.f32.xlu1 %v1444_v10 }
 0x60f   : > { %v1443_v14 = vpop.xlane.xlu0 %1442 }
 0x610   : > { %4994 = vrcp.f32 %v1443_v14  ;;  %v4681_v14 = vld [vmem:[%s5559_s17 + $0x60] ss:$8 sps:$4 sm:$0xff]  }
 0x617   : > { %v1446_v40 = vpop.xlane.xlu1 %1445 }
 0x618   : > { %4996 = vrcp.f32 %v1446_v40 }
 0x61d   : > { %v4995_v15 = vpop.eup %4994 }
 0x61e   : > { %v1449_v17 = vmul.f32 %v4995_v15, %v4991_v62  ;;  %v4686_v15 = vld [vmem:[%s5559_s17 + $0x54] ss:$8 sps:$4 sm:$0xff]  }
 0x620   : > { %v1451_v58 = vpack.c.bf16 %v1449_v17, %v1449_v17 }
 0x622   : > { %4419 = vmatmul.mubr.msk.bf16.vlgmr.msra.gmra.mxu0 %vm1220_vm4, %v1451_v58  ;;  %v4684_v58 = vld [vmem:[%s5559_s17 + $0x50] ss:$8 sps:$4 sm:$0xff]  }
 0x623   : > { %4429 = vmatpush3.bf16.xpose.msra.mxu0 %v1796_v25  ;;  %4430 = vmatprep.mubr.msk.bf16.mxu0 %vm5123_vm2, %v5122_v52  ;;  %v4689_v25 = vld [vmem:[%s5559_s17 + $0x44] ss:$8 sps:$4 sm:$0xff]  }
 0x624   : > { %4440 = vmatprep.subr.bf16.mxu0 %v5122_v52 }
 0x625   : > { %v4997_v18 = vpop.eup %4996 }
 0x626   : > { %v1450_v19 = vmul.f32 %v4997_v18, %v4993_v8  ;;  %v4692_v18 = vld [vmem:[%s5559_s17 + $0x34] ss:$8 sps:$4 sm:$0xff]  }
 0x628   : > { %v1452_v23 = vpack.c.bf16 %v1450_v19, %v1450_v19  ;;  %v4690_v19 = vld [vmem:[%s5559_s17 + $0x30] ss:$8 sps:$4 sm:$0xff]  }
 0x62a   : > { %4425 = vmatmul.mubr.msk.bf16.vlgmr.msra.gmra.mxu1 %vm1220_vm4, %v1452_v23  ;;  %4431 = vmatmul.mubr.bf16.vlgmr.msra.gmra.mxu0 %v1794_v43  ;;  %v4693_v43 = vld [vmem:[%s5559_s17 + $0x20] ss:$8 sps:$4 sm:$0xff]   ;;  %v4698_v23 = vld [vmem:[%s5559_s17 + $0x14] ss:$8 sps:$4 sm:$0xff]  }
 0x62b   : > { %4441 = vmatpush3.bf16.msra.mxu0 %v5508_v5  ;;  %1629 = vmatpush1.bf16.msra.mxu1 %v4654_v32  ;;  %v4663_v5 = vld [vmem:[%s5559_s17 + $0xc0] ss:$8 sps:$4 sm:$0xff]   ;;  %v4695_v32 = vld [vmem:[%s5559_s17 + $0x24] ss:$8 sps:$4 sm:$0xff]  }
 0x62c   : > { %1630 = vmatprep.subr.bf16.mxu1 %v4659_v22  ;;  %1660 = vmatprep.mubr.bf16.mxu1 %v5121_v45  ;;  %v4696_v22 = vld [vmem:[%s5559_s17 + $0x10] ss:$8 sps:$4 sm:$0xff]  }
 0x62d   : > { %4442 = vmatprep.mubr.msk.bf16.mxu0 %vm5123_vm2, %v5122_v52 }
 0x62f   : > { %1631 = vmatpush1.bf16.msra.mxu1 %v4657_v60  ;;  %v4701_v60 = vld [vmem:[%s5559_s17 + $0x4] ss:$8 sps:$4 sm:$0xff]  }
 0x630   : > { %1632 = vmatprep.subr.bf16.mxu1 %v4662_v63  ;;  %v4699_v63 = vld [vmem:[%s5559_s17] ss:$8 sps:$4 sm:$0xff]  }
 0x633   : > { %1633 = vmatpush1.bf16.msra.mxu1 %v4660_v24  ;;  %v1797_v24 = vpack.c.bf16 %v5498_v48, %v5498_v48 }
 0x634   : > { %1634 = vmatprep.subr.bf16.mxu1 %v4665_v29  ;;  %v1795_v29 = vpack.c.bf16 %v5469_v11, %v5469_v11 }
 0x637   : > { %1635 = vmatpush1.bf16.msra.mxu1 %v4663_v5 }
 0x638   : > { %1636 = vmatprep.subr.bf16.mxu1 %v4668_v30 }
 0x63b   : > { %1637 = vmatpush1.bf16.msra.mxu1 %v4666_v33 }
 0x63c   : > { %1638 = vmatprep.subr.bf16.mxu1 %v4671_v41 }
 0x63f   : > { %1639 = vmatpush1.bf16.msra.mxu1 %v4669_v36 }
 0x640   : > { %1640 = vmatprep.subr.bf16.mxu1 %v4674_v39 }
 0x643   : > { %1641 = vmatpush1.bf16.msra.mxu1 %v4672_v37 }
 0x644   : > { %1642 = vmatprep.subr.bf16.mxu1 %v4677_v44 }
 0x647   : > { %1643 = vmatpush1.bf16.msra.mxu1 %v4675_v42 }
 0x648   : > { %1751 = vmatprep.subr.bf16.mxu1 %v4680_v34 }
 0x6e2   : > { %v1495_v35 = vpop.f32.mrf.mxu0 }
 0x6e4   : > { %v4420_v46 = vpop.f32.mrf.mxu0 }
 0x6e6   : > { %v1498_v47 = vpop.f32.mrf.mxu0 }
 0x6e8   : > { %v4421_v49 = vpop.f32.mrf.mxu0 }
 0x6ea   : > { %v1541_v50 = vpop.f32.mrf.mxu1  ;;  %v1832_v51 = vpop.f32.mrf.mxu0 }
 0x6eb   : > { %v1547_v56 = vpack.c.bf16 %v1541_v50, %v1495_v35  ;;  %v1878_v53 = vmul.f32 0.125, %v1832_v51 }
 0x6ec   : > { %v4426_v62 = vpop.f32.mrf.mxu1  ;;  %v4432_v6 = vpop.f32.mrf.mxu0 }
 0x6ed   : > { %v1880_v8 = vadd.f32 %v1878_v53, %v5209_v7  ;;  %1661 = vmatmul.mubr.bf16.vlgmr.msra.gmra.mxu1 %v1547_v56 }
 0x6ee   : > { %1752 = vmatpush1.bf16.msra.mxu1 %v4678_v54  ;;  %v1544_v10 = vpop.f32.mrf.mxu1  ;;  %v1835_v13 = vpop.f32.mrf.mxu0  ;;  %1783 = vmatprep.mubr.bf16.mxu1 %v5121_v45 }
 0x6ef   : > { %1753 = vmatprep.subr.bf16.mxu1 %v4683_v61  ;;  %v1882_v40 = vsel %vm1220_vm4, %v1880_v8, -inf }
 0x6f0   : > { %v4427_v16 = vpop.f32.mrf.mxu1  ;;  %1883 = vmax.xlane.f32.xlu0 %v1882_v40  ;;  %v4433_v17 = vpop.f32.mrf.mxu0  ;;  %v4702_v40 = vld [vmem:[%s5559_s17 + $0x170] ss:$8 sps:$4 sm:$0xff]  }
 0x6f1   : > { %v4707_v16 = vld [vmem:[%s5559_s17 + $0x164] ss:$8 sps:$4 sm:$0xff]   ;;  %v4710_v17 = vld [vmem:[%s5559_s17 + $0x154] ss:$8 sps:$4 sm:$0xff]  }
 0x6f2   : > { %1754 = vmatpush1.bf16.msra.mxu1 %v4681_v14 }
 0x6f3   : > { %1755 = vmatprep.subr.bf16.mxu1 %v4686_v15  ;;  %v4704_v15 = vld [vmem:[%s5559_s17 + $0x174] ss:$8 sps:$4 sm:$0xff]  }
 0x6f4   : > { %2081 = vmatprep.subr.bf16.mxu0 %v4704_v15  ;;  %v4732_v15 = vld [vmem:[%s5686_s25 + $0x120] ss:$24 sps:$4 sm:$0xff]  }
 0x6f6   : > { %1756 = vmatpush1.bf16.msra.mxu1 %v4684_v58  ;;  %v4708_v58 = vld [vmem:[%s5559_s17 + $0x150] ss:$8 sps:$4 sm:$0xff]  }
 0x6f7   : > { %1757 = vmatprep.subr.bf16.mxu1 %v4689_v25  ;;  %v4713_v25 = vld [vmem:[%s5559_s17 + $0x144] ss:$8 sps:$4 sm:$0xff]  }
 0x6fa   : > { %1758 = vmatpush1.bf16.msra.mxu1 %v4687_v38  ;;  %v4711_v38 = vld [vmem:[%s5559_s17 + $0x140] ss:$8 sps:$4 sm:$0xff]  }
 0x6fb   : > { %1759 = vmatprep.subr.bf16.mxu1 %v4692_v18  ;;  %v4716_v18 = vld [vmem:[%s5559_s17 + $0x134] ss:$8 sps:$4 sm:$0xff]  }
 0x6fe   : > { %1760 = vmatpush1.bf16.msra.mxu1 %v4690_v19  ;;  %v4714_v19 = vld [vmem:[%s5559_s17 + $0x130] ss:$8 sps:$4 sm:$0xff]  }
 0x6ff   : > { %1761 = vmatprep.subr.bf16.mxu1 %v4695_v32  ;;  %v4719_v32 = vld [vmem:[%s5559_s17 + $0x124] ss:$8 sps:$4 sm:$0xff]  }
 0x702   : > { %1762 = vmatpush1.bf16.msra.mxu1 %v4693_v43  ;;  %v4717_v43 = vld [vmem:[%s5559_s17 + $0x120] ss:$8 sps:$4 sm:$0xff]  }
 0x703   : > { %1763 = vmatprep.subr.bf16.mxu1 %v4698_v23  ;;  %v4722_v23 = vld [vmem:[%s5559_s17 + $0x114] ss:$8 sps:$4 sm:$0xff]  }
 0x706   : > { %1764 = vmatpush1.bf16.msra.mxu1 %v4696_v22  ;;  %v4720_v22 = vld [vmem:[%s5559_s17 + $0x110] ss:$8 sps:$4 sm:$0xff]  }
 0x707   : > { %1765 = vmatprep.subr.bf16.mxu1 %v4701_v60  ;;  %v4725_v60 = vld [vmem:[%s5559_s17 + $0x104] ss:$8 sps:$4 sm:$0xff]  }
 0x70a   : > { %1766 = vmatpush1.bf16.msra.mxu1 %v4699_v63  ;;  %v4723_v63 = vld [vmem:[%s5559_s17 + $0x100] ss:$8 sps:$4 sm:$0xff]  }
 0x70b   : > { %4434 = vmatprep.subr.bf16.mxu1 %v5122_v52 }
 0x70d   : > { %1784 = vmatmul.mubr.bf16.vlgmr.msra.gmra.mxu1 %v1340_v21 }
 0x70e   : > { %4435 = vmatpush3.bf16.xpose.msra.mxu1 %v1797_v24  ;;  %4436 = vmatprep.mubr.msk.bf16.mxu1 %vm5123_vm2, %v5122_v52 }
 0x70f   : > { %4446 = vmatprep.subr.bf16.mxu1 %v5122_v52 }
 0x715   : > { %4437 = vmatmul.mubr.bf16.vlgmr.msra.gmra.mxu1 %v1795_v29 }
 0x716   : > { %4447 = vmatpush3.bf16.msra.mxu1 %v5511_v12  ;;  %4448 = vmatprep.mubr.msk.bf16.mxu1 %vm5123_vm2, %v5122_v52  ;;  %vm3879_vm2 = vcmp.lt.s32.totalorder (%p56_p0), %v5324_v26, 5 }
 0x779   : > { %v1884_v48 = vpop.xlane.xlu0 %1883 }
 0x77a   : > { %v1888_v5 = vsub.f32 %v1880_v8, %v1884_v48 }
 0x77c   : > { %v1890_v30 = vmul.f32 1.442695, %v1888_v5 }
 0x77e   : > { %4998 = vpow2.f32 %v1890_v30 }
 0x78b   : > { %v4999_v9 = vpop.eup %4998 }
 0x78c   : > { %v1894_v20 = vsel %vm1220_vm4, %v4999_v9, 0.0 }
 0x78d   : > { %1895 = vadd.xlane.f32.xlu0 %v1894_v20 }
 0x7ad   : > { %v1662_v21 = vpop.f32.mrf.mxu1 }
 0x7af   : > { %v1664_v33 = vpop.f32.mrf.mxu1 }
 0x7b1   : > { %v1666_v41 = vpop.f32.mrf.mxu1 }
 0x7b3   : > { %v1668_v36 = vpop.f32.mrf.mxu1 }
 0x7cd   : > { %v1785_v37 = vpop.f32.mrf.mxu1 }
 0x7ce   : > { %v5624_v11 = vadd.f32 %v1785_v37, %v1662_v21 }
 0x7cf   : > { %v1787_v39 = vpop.f32.mrf.mxu1 }
 0x7d0   : > { %v5626_v12 = vadd.f32 %v1787_v39, %v1664_v33 }
 0x7d1   : > { %v1789_v42 = vpop.f32.mrf.mxu1 }
 0x7d2   : > { %v5628_v52 = vadd.f32 %v1789_v42, %v1666_v41 }
 0x7d3   : > { %v1791_v44 = vpop.f32.mrf.mxu1 }
 0x7d4   : > { %v5630_v34 = vadd.f32 %v1791_v44, %v1668_v36 }
 0x7d5   : > { %v1872_v35 = vpop.f32.mrf.mxu1 }
 0x7d6   : > { %v1879_v46 = vmul.f32 0.125, %v1872_v35  ;;  %v2133_v35 = vld [vmem:[%s2132_s21] sm:$0x3] }
 0x7d7   : > { %v4438_v47 = vpop.f32.mrf.mxu1 }
 0x7d8   : > { %v1881_v49 = vadd.f32 %v1879_v46, %v5209_v7 }
 0x7d9   : > { %v1875_v50 = vpop.f32.mrf.mxu1 }
 0x7da   : > { %v1885_v51 = vsel %vm1220_vm4, %v1881_v49, -inf }
 0x7db   : > { %1886 = vmax.xlane.f32.xlu1 %v1885_v51  ;;  %v4439_v54 = vpop.f32.mrf.mxu1  ;;  %v2138_v51 = vrot.slane %v2133_v35, %v5334_v28 }
 0x816   : > { %v1896_v56 = vpop.xlane.xlu0 %1895 }
 0x817   : > { %5000 = vrcp.f32 %v1896_v56 }
 0x824   : > { %v5001_v53 = vpop.eup %5000 }
 0x825   : > { %v1902_v61 = vmul.f32 %v5001_v53, %v4999_v9 }
 0x827   : > { %v1904_v62 = vpack.c.bf16 %v1902_v61, %v1902_v61 }
 0x829   : > { %4443 = vmatmul.mubr.msk.bf16.vlgmr.msra.gmra.mxu0 %vm1220_vm4, %v1904_v62 }
 0x82a   : > { %2113 = vmatprep.mubr.bf16.mxu0 %v5121_v45  ;;  %2082 = vmatpush1.bf16.msra.mxu0 %v4702_v40  ;;  %v4705_v45 = vld [vmem:[%s5559_s17 + $0x160] ss:$8 sps:$4 sm:$0xff]   ;;  %v4731_v40 = vld [vmem:[%s5686_s25 + $0x15c] ss:$24 sps:$4 sm:$0xff]  }
 0x82b   : > { %2083 = vmatprep.subr.bf16.mxu0 %v4707_v16  ;;  %v4734_v16 = vld [vmem:[%s5686_s25 + $0x124] ss:$24 sps:$4 sm:$0xff]  }
 0x82e   : > { %2084 = vmatpush1.bf16.msra.mxu0 %v4705_v45  ;;  %v4735_v45 = vld [vmem:[%s5686_s25 + $0x128] ss:$24 sps:$4 sm:$0xff]  }
 0x82f   : > { %2085 = vmatprep.subr.bf16.mxu0 %v4710_v17  ;;  %v4737_v17 = vld [vmem:[%s5686_s25 + $0x12c] ss:$24 sps:$4 sm:$0xff]  }
 0x832   : > { %2086 = vmatpush1.bf16.msra.mxu0 %v4708_v58  ;;  %v4740_v58 = vld [vmem:[%s5686_s25 + $0xf4] ss:$24 sps:$4 sm:$0xff]  }
 0x833   : > { %2087 = vmatprep.subr.bf16.mxu0 %v4713_v25  ;;  %v4738_v25 = vld [vmem:[%s5686_s25 + $0xf0] ss:$24 sps:$4 sm:$0xff]  }
 0x836   : > { %2088 = vmatpush1.bf16.msra.mxu0 %v4711_v38  ;;  %v4743_v38 = vld [vmem:[%s5686_s25 + $0xfc] ss:$24 sps:$4 sm:$0xff]  }
 0x837   : > { %2089 = vmatprep.subr.bf16.mxu0 %v4716_v18  ;;  %v4741_v18 = vld [vmem:[%s5686_s25 + $0xf8] ss:$24 sps:$4 sm:$0xff]  }
 0x83a   : > { %2090 = vmatpush1.bf16.msra.mxu0 %v4714_v19  ;;  %v4746_v19 = vld [vmem:[%s5686_s25 + $0xc4] ss:$24 sps:$4 sm:$0xff]  }
 0x83b   : > { %2091 = vmatprep.subr.bf16.mxu0 %v4719_v32  ;;  %v4749_v32 = vld [vmem:[%s5686_s25 + $0xcc] ss:$24 sps:$4 sm:$0xff]  }
 0x83e   : > { %2092 = vmatpush1.bf16.msra.mxu0 %v4717_v43  ;;  %v4744_v43 = vld [vmem:[%s5686_s25 + $0xc0] ss:$24 sps:$4 sm:$0xff]  }
 0x83f   : > { %2093 = vmatprep.subr.bf16.mxu0 %v4722_v23  ;;  %v4747_v23 = vld [vmem:[%s5686_s25 + $0xc8] ss:$24 sps:$4 sm:$0xff]  }
 0x842   : > { %2094 = vmatpush1.bf16.msra.mxu0 %v4720_v22  ;;  %v4752_v22 = vld [vmem:[%s5686_s25 + $0x94] ss:$24 sps:$4 sm:$0xff]  }
 0x843   : > { %2095 = vmatprep.subr.bf16.mxu0 %v4725_v60  ;;  %v4755_v60 = vld [vmem:[%s5686_s25 + $0x9c] ss:$24 sps:$4 sm:$0xff]  }
 0x846   : > { %2096 = vmatpush1.bf16.msra.mxu0 %v4723_v63  ;;  %v4750_v63 = vld [vmem:[%s5686_s25 + $0x90] ss:$24 sps:$4 sm:$0xff]  }
 0x847   : > { %2736 = vmatprep.subr.bf16.mxu0 %v4731_v40  ;;  %v4780_v40 = vld [vmem:[%s5686_s25 + $0x1e0] ss:$24 sps:$4 sm:$0xff]  }
 0x864   : > { %v1887_v6 = vpop.xlane.xlu1 %1886 }
 0x865   : > { %v1889_v8 = vsub.f32 %v1881_v49, %v1887_v6  ;;  %v2142_v49 = vrot.slane %v2133_v35, %v5331_v27 }
 0x867   : > { %v1892_v10 = vmul.f32 1.442695, %v1889_v8 }
 0x869   : > { %5002 = vpow2.f32 %v1892_v10 }
 0x876   : > { %v5003_v13 = vpop.eup %5002 }
 0x877   : > { %v1897_v14 = vsel %vm1220_vm4, %v5003_v13, 0.0 }
 0x878   : > { %1898 = vadd.xlane.f32.xlu1 %v1897_v14  ;;  %v4729_v14 = vld [vmem:[%s5686_s25 + $0x158] ss:$24 sps:$4 sm:$0xff]  }
 0x8e9   : > { %v1948_v24 = vpop.f32.mrf.mxu0 }
 0x8eb   : > { %v4444_v29 = vpop.f32.mrf.mxu0 }
 0x8ed   : > { %v1951_v48 = vpop.f32.mrf.mxu0 }
 0x8ef   : > { %v4445_v5 = vpop.f32.mrf.mxu0 }
 0x901   : > { %v1899_v30 = vpop.xlane.xlu1 %1898 }
 0x902   : > { %5004 = vrcp.f32 %v1899_v30 }
 0x90f   : > { %v5005_v9 = vpop.eup %5004 }
 0x910   : > { %v1903_v20 = vmul.f32 %v5005_v9, %v5003_v13 }
 0x912   : > { %v1905_v21 = vpack.c.bf16 %v1903_v20, %v1903_v20 }
 0x914   : > { %4449 = vmatmul.mubr.msk.bf16.vlgmr.msra.gmra.mxu1 %vm1220_vm4, %v1905_v21  ;;  %vm3949_vm4 = vcmask (%p56_p0), 1041408  }
 0x9d4   : > { %v1994_v33 = vpop.f32.mrf.mxu1 }
 0x9d5   : > { %v2000_v41 = vpack.c.bf16 %v1994_v33, %v1948_v24  ;;  %v4753_v24 = vld [vmem:[%s5686_s25 + $0x98] ss:$24 sps:$4 sm:$0xff]  }
 0x9d6   : > { %v4450_v36 = vpop.f32.mrf.mxu1 }
 0x9d7   : > { %2114 = vmatmul.mubr.bf16.vlgmr.msra.gmra.mxu0 %v2000_v41 }
 0x9d8   : > { %v1997_v37 = vpop.f32.mrf.mxu1  ;;  %2737 = vmatpush1.bf16.msra.mxu0 %v4729_v14  ;;  %v4785_v14 = vld [vmem:[%s5686_s25 + $0x1ec] ss:$24 sps:$4 sm:$0xff]  }
 0x9d9   : > { %2738 = vmatprep.subr.bf16.mxu0 %v4737_v17  ;;  %v4786_v17 = vld [vmem:[%s5686_s25 + $0x1b0] ss:$24 sps:$4 sm:$0xff]  }
 0x9da   : > { %v4451_v39 = vpop.f32.mrf.mxu1 }
 0x9dc   : > { %2739 = vmatpush1.bf16.msra.mxu0 %v4735_v45  ;;  %v4791_v45 = vld [vmem:[%s5686_s25 + $0x1bc] ss:$24 sps:$4 sm:$0xff]  }
 0x9dd   : > { %2740 = vmatprep.subr.bf16.mxu0 %v4743_v38  ;;  %v4797_v38 = vld [vmem:[%s5686_s25 + $0x18c] ss:$24 sps:$4 sm:$0xff]  }
 0x9e0   : > { %2741 = vmatpush1.bf16.msra.mxu0 %v4741_v18  ;;  %v4792_v18 = vld [vmem:[%s5686_s25 + $0x180] ss:$24 sps:$4 sm:$0xff]  }
 0x9e1   : > { %2742 = vmatprep.subr.bf16.mxu0 %v4749_v32  ;;  %v4800_v32 = vld [vmem:[%s5686_s25 + $0x164] ss:$24 sps:$4 sm:$0xff]  }
 0x9e4   : > { %2743 = vmatpush1.bf16.msra.mxu0 %v4747_v23 }
 0x9e5   : > { %2744 = vmatprep.subr.bf16.mxu0 %v4755_v60 }
 0x9e8   : > { %2745 = vmatpush1.bf16.msra.mxu0 %v4753_v24 }
 0xa97   : > { %v2115_v42 = vpop.f32.mrf.mxu0 }
 0xa98   : > { %v2124_v44 = vadd.f32 %v2115_v42, %v5624_v11 }
 0xa99   : > { %v2117_v46 = vpop.f32.mrf.mxu0 }
 0xa9a   : > { %v2125_v47 = vadd.f32 %v2117_v46, %v5626_v12  ;;  %v2128_v50 = vadd.f32 %v5114_v1, %v2124_v44 }
 0xa9b   : > { %v2119_v54 = vpop.f32.mrf.mxu0 }
 0xa9c   : > { %v2129_v56 = vadd.f32 %v5110_v2, %v2125_v47  ;;  %v2126_v53 = vadd.f32 %v2119_v54, %v5628_v52  ;;  %v5668_v6 = vadd.f32 %v2138_v51, %v2128_v50  ;;  %v4758_v47 = vld [vmem:[%s5686_s25 + $0x64] ss:$24 sps:$4 sm:$0xff]   ;;  %v4764_v54 = vld [vmem:[%s5686_s25 + $0x34] ss:$24 sps:$4 sm:$0xff]  }
 0xa9d   : > { %v2121_v61 = vpop.f32.mrf.mxu0  ;;  %v4761_v50 = vld [vmem:[%s5686_s25 + $0x6c] ss:$24 sps:$4 sm:$0xff]  }
 0xa9e   : > { %v5665_v62 = vadd.f32 %v2142_v49, %v2129_v56  ;;  %v2127_v11 = vadd.f32 %v2121_v61, %v5630_v34  ;;  %v2130_v12 = vadd.f32 %v5106_v3, %v2126_v53  ;;  %v4726_v3 = vld [vmem:[%s5686_s25 + $0x150] ss:$24 sps:$4 sm:$0xff]   ;;  %2746 = vmatprep.subr.bf16.mxu0 %v4761_v50  ;;  %v4767_v53 = vld [vmem:[%s5686_s25 + $0x3c] ss:$24 sps:$4 sm:$0xff]  }
 0xa9f   : > { %v4762_v56 = vld [vmem:[%s5686_s25 + $0x30] ss:$24 sps:$4 sm:$0xff]  }
 0xaa0   : > { %v2131_v8 = vadd.f32 %v5102_v4, %v2127_v11  ;;  %v2153_v1 = vsel %vm69_vm1, %v5665_v62, 0.0  ;;  %v5677_v13 = vadd.f32 %v2138_v51, %v2130_v12  ;;  %v4728_v4 = vld [vmem:[%s5686_s25 + $0x154] ss:$24 sps:$4 sm:$0xff]   ;;  %v4759_v51 = vld [vmem:[%s5686_s25 + $0x68] ss:$24 sps:$4 sm:$0xff]  }
 0xaa1   : > { %v2154_v10 = vadd.f32 %v2153_v1, %v5668_v6  ;;  %2693 = vmatprep.subr.bf16.mxu1 %v4728_v4  ;;  %2747 = vmatpush1.bf16.msra.mxu0 %v4759_v51  ;;  %v4765_v61 = vld [vmem:[%s5686_s25 + $0x38] ss:$24 sps:$4 sm:$0xff]   ;;  %v4770_v12 = vld [vmem:[%s5686_s25 + $0x4] ss:$24 sps:$4 sm:$0xff]  }
 0xaa2   : > { %v5675_v2 = vadd.f32 %v2142_v49, %v2131_v8  ;;  %2694 = vmatpush1.bf16.msra.mxu1 %v4726_v3  ;;  %v4756_v49 = vld [vmem:[%s5686_s25 + $0x60] ss:$24 sps:$4 sm:$0xff]   ;;  %2748 = vmatprep.subr.bf16.mxu0 %v4767_v53  ;;  %v4773_v1 = vld [vmem:[%s5686_s25 + $0xc] ss:$24 sps:$4 sm:$0xff]  }
 0xaa3   : > { %2155 = vadd.xlane.f32.xlu0 %v2154_v10  ;;  %2695 = vmatprep.subr.bf16.mxu1 %v4734_v16  ;;  %v4768_v11 = vld [vmem:[%s5686_s25] ss:$24 sps:$4 sm:$0xff]   ;;  %v4776_v10 = vld [vmem:[%s5686_s25 + $0x214] ss:$24 sps:$4 sm:$0xff]   ;;  %v4782_v4 = vld [vmem:[%s5686_s25 + $0x1e4] ss:$24 sps:$4 sm:$0xff]  }
 0xaa4   : > { %v2157_v52 = vsel %vm69_vm1, %v5675_v2, 0.0  ;;  %v4771_v8 = vld [vmem:[%s5686_s25 + $0x8] ss:$24 sps:$4 sm:$0xff]   ;;  %v4777_v3 = vld [vmem:[%s5686_s25 + $0x218] ss:$24 sps:$4 sm:$0xff]  }
 0xaa5   : > { %v2158_v34 = vadd.f32 %v2157_v52, %v5677_v13  ;;  %2749 = vmatpush1.bf16.msra.mxu0 %v4765_v61  ;;  %v4779_v52 = vld [vmem:[%s5686_s25 + $0x21c] ss:$24 sps:$4 sm:$0xff]  }
 0xaa6   : > { %2696 = vmatpush1.bf16.msra.mxu1 %v4732_v15  ;;  %2750 = vmatprep.subr.bf16.mxu0 %v4773_v1  ;;  %v4783_v15 = vld [vmem:[%s5686_s25 + $0x1e8] ss:$24 sps:$4 sm:$0xff]   ;;  %v4788_v16 = vld [vmem:[%s5686_s25 + $0x1b4] ss:$24 sps:$4 sm:$0xff]   ;;  %v4834_v1 = vld [vmem:[%s5763_s29 + $0x70] ss:$8 sps:$4 sm:$0xff]  }
 0xaa7   : > { %2159 = vadd.xlane.f32.xlu1 %v2158_v34  ;;  %2697 = vmatprep.subr.bf16.mxu1 %v4740_v58  ;;  %v4774_v34 = vld [vmem:[%s5686_s25 + $0x210] ss:$24 sps:$4 sm:$0xff]  }
 0xaa8   : > { %v4789_v58 = vld [vmem:[%s5686_s25 + $0x1b8] ss:$24 sps:$4 sm:$0xff]  }
 0xaa9   : > { %2751 = vmatpush1.bf16.msra.mxu0 %v4771_v8  ;;  %v4803_v8 = vld [vmem:[%s5686_s25 + $0x134] ss:$24 sps:$4 sm:$0xff]  }
 0xaaa   : > { %2698 = vmatpush1.bf16.msra.mxu1 %v4738_v25  ;;  %2760 = vmatprep.subr.bf16.mxu0 %v4779_v52  ;;  %v4794_v25 = vld [vmem:[%s5686_s25 + $0x184] ss:$24 sps:$4 sm:$0xff]   ;;  %v4809_v52 = vld [vmem:[%s5686_s25 + $0xd4] ss:$24 sps:$4 sm:$0xff]  }
 0xaab   : > { %2699 = vmatprep.subr.bf16.mxu1 %v4746_v19  ;;  %v4795_v19 = vld [vmem:[%s5686_s25 + $0x188] ss:$24 sps:$4 sm:$0xff]  }
 0xaad   : > { %2761 = vmatpush2.bf16.msra.mxu0 %v4777_v3  ;;  %v4812_v3 = vld [vmem:[%s5686_s25 + $0xa4] ss:$24 sps:$4 sm:$0xff]  }
 0xaae   : > { %2700 = vmatpush1.bf16.msra.mxu1 %v4744_v43  ;;  %2762 = vmatprep.subr.bf16.mxu0 %v4785_v14  ;;  %v4836_v43 = vld [vmem:[%s5763_s29 + $0x74] ss:$8 sps:$4 sm:$0xff]  }
 0xaaf   : > { %2701 = vmatprep.subr.bf16.mxu1 %v4752_v22  ;;  %v4815_v14 = vld [vmem:[%s5686_s25 + $0x74] ss:$24 sps:$4 sm:$0xff]  }
 0xab1   : > { %2763 = vmatpush2.bf16.msra.mxu0 %v4783_v15  ;;  %v4818_v15 = vld [vmem:[%s5686_s25 + $0x44] ss:$24 sps:$4 sm:$0xff]  }
 0xab2   : > { %2702 = vmatpush1.bf16.msra.mxu1 %v4750_v63  ;;  %2764 = vmatprep.subr.bf16.mxu0 %v4791_v45  ;;  %v4821_v45 = vld [vmem:[%s5686_s25 + $0x14] ss:$24 sps:$4 sm:$0xff]  }
 0xab3   : > { %2703 = vmatprep.subr.bf16.mxu1 %v4758_v47 }
 0xab5   : > { %2765 = vmatpush2.bf16.msra.mxu0 %v4789_v58  ;;  %v4824_v58 = vld [vmem:[%s5686_s25 + $0x224] ss:$24 sps:$4 sm:$0xff]  }
 0xab6   : > { %2704 = vmatpush1.bf16.msra.mxu1 %v4756_v49  ;;  %2766 = vmatprep.subr.bf16.mxu0 %v4797_v38  ;;  %v4827_v38 = vld [vmem:[%s5686_s25 + $0x1f4] ss:$24 sps:$4 sm:$0xff]  }
 0xab7   : > { %2705 = vmatprep.subr.bf16.mxu1 %v4764_v54 }
 0xab9   : > { %2767 = vmatpush2.bf16.msra.mxu0 %v4795_v19  ;;  %v4830_v19 = vld [vmem:[%s5686_s25 + $0x1c4] ss:$24 sps:$4 sm:$0xff]  }
 0xaba   : > { %2706 = vmatpush1.bf16.msra.mxu1 %v4762_v56  ;;  %3744 = vmatprep.subr.bf16.mxu0 %v4836_v43  ;;  %v4833_v43 = vld [vmem:[%s5686_s25 + $0x194] ss:$24 sps:$4 sm:$0xff]  }
 0xabb   : > { %2707 = vmatprep.subr.bf16.mxu1 %v4770_v12 }
 0xabe   : > { %2708 = vmatpush1.bf16.msra.mxu1 %v4768_v11  ;;  %v4798_v11 = vld [vmem:[%s5686_s25 + $0x160] ss:$24 sps:$4 sm:$0xff]  }
 0xabf   : > { %2717 = vmatprep.subr.bf16.mxu1 %v4776_v10  ;;  %v4804_v10 = vld [vmem:[%s5686_s25 + $0x100] ss:$24 sps:$4 sm:$0xff]  }
 0xac2   : > { %2718 = vmatpush2.bf16.msra.mxu1 %v4774_v34  ;;  %v4807_v34 = vld [vmem:[%s5686_s25 + $0xd0] ss:$24 sps:$4 sm:$0xff]  }
 0xac3   : > { %2719 = vmatprep.subr.bf16.mxu1 %v4782_v4  ;;  %v4810_v4 = vld [vmem:[%s5686_s25 + $0xa0] ss:$24 sps:$4 sm:$0xff]  }
 0xac6   : > { %2720 = vmatpush2.bf16.msra.mxu1 %v4780_v40  ;;  %v4813_v40 = vld [vmem:[%s5686_s25 + $0x70] ss:$24 sps:$4 sm:$0xff]  }
 0xac7   : > { %2721 = vmatprep.subr.bf16.mxu1 %v4788_v16  ;;  %v4816_v16 = vld [vmem:[%s5686_s25 + $0x40] ss:$24 sps:$4 sm:$0xff]  }
 0xaca   : > { %2722 = vmatpush2.bf16.msra.mxu1 %v4786_v17  ;;  %v4819_v17 = vld [vmem:[%s5686_s25 + $0x10] ss:$24 sps:$4 sm:$0xff]  }
 0xacb   : > { %2723 = vmatprep.subr.bf16.mxu1 %v4794_v25  ;;  %v4822_v25 = vld [vmem:[%s5686_s25 + $0x220] ss:$24 sps:$4 sm:$0xff]  }
 0xace   : > { %2724 = vmatpush2.bf16.msra.mxu1 %v4792_v18  ;;  %v4825_v18 = vld [vmem:[%s5686_s25 + $0x1f0] ss:$24 sps:$4 sm:$0xff]  }
 0xacf   : > { %2779 = vmatprep.subr.bf16.mxu1 %v4800_v32  ;;  %v4828_v32 = vld [vmem:[%s5686_s25 + $0x1c0] ss:$24 sps:$4 sm:$0xff]  }
 0xb2c   : > { %v2156_v29 = vpop.xlane.xlu0 %2155 }
 0xb2d   : > { %v2161_v48 = vmul.f32 0.0052083335, %v2156_v29 }
 0xb2f   : > { %v5709_v5 = vsub.f32 %v5668_v6, %v2161_v48  ;;  %v5712_v30 = vsub.f32 %v5665_v62, %v2161_v48  ;;  %v2150_v48 = vld [vmem:[%s2149_s15] sm:$0x3] }
 0xb30   : > { %v2160_v9 = vpop.xlane.xlu1 %2159 }
 0xb31   : > { %v2162_v20 = vmul.f32 0.0052083335, %v2160_v9  ;;  %v2167_v21 = vmul.f32 %v5709_v5, %v5709_v5  ;;  %v2168_v33 = vmul.f32 %v5712_v30, %v5712_v30 }
 0xb33   : > { %v5719_v41 = vsub.f32 %v5677_v13, %v2162_v20  ;;  %v5722_v36 = vsub.f32 %v5675_v2, %v2162_v20  ;;  %v2171_v37 = vsel %vm69_vm1, %v2168_v33, 0.0  ;;  %v2152_v20 = vld [vmem:[%s2151_s18] sm:$0x3]  ;;  %v2197_v33 = vrot.slane %v2150_v48, %v5331_v27 }
 0xb34   : > { %v2172_v39 = vadd.f32 %v2171_v37, %v2167_v21 }
 0xb35   : > { %v2169_v42 = vmul.f32 %v5719_v41, %v5719_v41  ;;  %v2170_v44 = vmul.f32 %v5722_v36, %v5722_v36 }
 0xb36   : > { %2173 = vadd.xlane.f32.xlu0 %v2172_v39  ;;  %v2193_v39 = vrot.slane %v2150_v48, %v5334_v28  ;;  %v4843_v48 = vld [vmem:[%s5763_s29 + $0x160] ss:$8 sps:$4 sm:$0xff]  }
 0xb37   : > { %v2175_v35 = vsel %vm69_vm1, %v2170_v44, 0.0  ;;  %v2212_v44 = vrot.slane %v2152_v20, %v5331_v27 }
 0xb38   : > { %v2176_v46 = vadd.f32 %v2175_v35, %v2169_v42  ;;  %v2208_v35 = vrot.slane %v2152_v20, %v5334_v28  ;;  %v4846_v20 = vld [vmem:[%s5763_s29 + $0x50] ss:$8 sps:$4 sm:$0xff]  }
 0xb3a   : > { %2177 = vadd.xlane.f32.xlu1 %v2176_v46 }
 0xbbf   : > { %v2174_v23 = vpop.xlane.xlu0 %2173 }
 0xbc0   : > { %v2179_v22 = vmul.f32 0.0052083335, %v2174_v23  ;;  %v4831_v23 = vld [vmem:[%s5686_s25 + $0x190] ss:$24 sps:$4 sm:$0xff]  }
 0xbc2   : > { %v2181_v60 = vadd.f32 1e-12, %v2179_v22  ;;  %v4839_v22 = vld [vmem:[%s5763_s29 + $0x174] ss:$8 sps:$4 sm:$0xff]  }
 0xbc3   : > { %v2178_v63 = vpop.xlane.xlu1 %2177 }
 0xbc4   : > { %5006 = vrsqrt.f32 %v2181_v60  ;;  %v2180_v24 = vmul.f32 0.0052083335, %v2178_v63  ;;  %v4837_v60 = vld [vmem:[%s5763_s29 + $0x170] ss:$8 sps:$4 sm:$0xff]   ;;  %v4842_v63 = vld [vmem:[%s5763_s29 + $0x64] ss:$8 sps:$4 sm:$0xff]  }
 0xbc6   : > { %v2182_v29 = vadd.f32 1e-12, %v2180_v24  ;;  %v4840_v24 = vld [vmem:[%s5763_s29 + $0x60] ss:$8 sps:$4 sm:$0xff]  }
 0xbc8   : > { %5008 = vrsqrt.f32 %v2182_v29  ;;  %v4845_v29 = vld [vmem:[%s5763_s29 + $0x164] ss:$8 sps:$4 sm:$0xff]  }
 0xbd1   : > { %v5007_v9 = vpop.eup %5006 }
 0xbd2   : > { %v2186_v21 = vmul.f32 %v5007_v9, %v5712_v30  ;;  %v2185_v37 = vmul.f32 %v5007_v9, %v5709_v5  ;;  %v4848_v9 = vld [vmem:[%s5763_s29 + $0x54] ss:$8 sps:$4 sm:$0xff]  }
 0xbd4   : > { %v2201_v47 = vmul.f32 %v2197_v33, %v2186_v21  ;;  %v2200_v30 = vmul.f32 %v2193_v39, %v2185_v37  ;;  %v4851_v21 = vld [vmem:[%s5763_s29 + $0x154] ss:$8 sps:$4 sm:$0xff]   ;;  %v4854_v37 = vld [vmem:[%s5763_s29 + $0x44] ss:$8 sps:$4 sm:$0xff]  }
 0xbd5   : > { %v5009_v42 = vpop.eup %5008 }
 0xbd6   : > { %v2188_v46 = vmul.f32 %v5009_v42, %v5722_v36  ;;  %v2187_v49 = vmul.f32 %v5009_v42, %v5719_v41  ;;  %v2216_v5 = vadd.f32 %v2212_v44, %v2201_v47  ;;  %v2215_v56 = vadd.f32 %v2208_v35, %v2200_v30  ;;  %v4801_v41 = vld [vmem:[%s5686_s25 + $0x130] ss:$24 sps:$4 sm:$0xff]   ;;  %v4806_v36 = vld [vmem:[%s5686_s25 + $0x104] ss:$24 sps:$4 sm:$0xff]  }
 0xbd7   : > { %v4857_v42 = vld [vmem:[%s5763_s29 + $0x144] ss:$8 sps:$4 sm:$0xff]   ;;  %v4863_v47 = vld [vmem:[%s5763_s29 + $0x134] ss:$8 sps:$4 sm:$0xff]  }
 0xbd8   : > { %v2203_v50 = vmul.f32 %v2197_v33, %v2188_v46  ;;  %v2202_v51 = vmul.f32 %v2193_v39, %v2187_v49  ;;  %v4849_v33 = vld [vmem:[%s5763_s29 + $0x150] ss:$8 sps:$4 sm:$0xff]   ;;  %v4852_v39 = vld [vmem:[%s5763_s29 + $0x40] ss:$8 sps:$4 sm:$0xff]   ;;  %v4866_v30 = vld [vmem:[%s5763_s29 + $0x24] ss:$8 sps:$4 sm:$0xff]  }
 0xbd9   : > { %v4858_v46 = vld [vmem:[%s5763_s29 + $0x30] ss:$8 sps:$4 sm:$0xff]  }
 0xbda   : > { %v2218_v54 = vadd.f32 %v2212_v44, %v2203_v50  ;;  %v2217_v53 = vadd.f32 %v2208_v35, %v2202_v51  ;;  %v4855_v44 = vld [vmem:[%s5763_s29 + $0x140] ss:$8 sps:$4 sm:$0xff]   ;;  %v4860_v35 = vld [vmem:[%s5763_s29 + $0x34] ss:$8 sps:$4 sm:$0xff]   ;;  %v4861_v49 = vld [vmem:[%s5763_s29 + $0x130] ss:$8 sps:$4 sm:$0xff]  }
 0xbdb   : > { %v4864_v50 = vld [vmem:[%s5763_s29 + $0x20] ss:$8 sps:$4 sm:$0xff]   ;;  %v4869_v51 = vld [vmem:[%s5763_s29 + $0x124] ss:$8 sps:$4 sm:$0xff]  }
 0xbdc   : > { %v2220_v61 = vpack.c.bf16 %v2218_v54, %v2216_v5  ;;  %v2219_v12 = vpack.c.bf16 %v2217_v53, %v2215_v56  ;;  %v4867_v5 = vld [vmem:[%s5763_s29 + $0x120] ss:$8 sps:$4 sm:$0xff]   ;;  %v4872_v54 = vld [vmem:[%s5763_s29 + $0x14] ss:$8 sps:$4 sm:$0xff]   ;;  %v4870_v56 = vld [vmem:[%s5763_s29 + $0x10] ss:$8 sps:$4 sm:$0xff]  }
 0xbdd   : > { %v4875_v53 = vld [vmem:[%s5763_s29 + $0x114] ss:$8 sps:$4 sm:$0xff]  }
 0xbde   : > { %4252 = vmatprep.mubr.msk.bf16.mxu1 %vm69_vm1, %v2220_v61  ;;  %4253 = vmatprep.mubr.msk.bf16.mxu0 %vm69_vm1, %v2220_v61 }
 0xbdf   : > { %2726 = vmatmul.mubr.bf16.vlgmr.msra.gmra.mxu1 %v2219_v12  ;;  %2769 = vmatmul.mubr.bf16.vlgmr.msra.gmra.mxu0 %v2219_v12 }
 0xbe0   : > { %2780 = vmatpush1.bf16.msra.mxu1 %v4798_v11  ;;  %4254 = vmatprep.mubr.msk.bf16.mxu1 %vm69_vm1, %v2220_v61  ;;  %v4873_v61 = vld [vmem:[%s5763_s29 + $0x110] ss:$8 sps:$4 sm:$0xff]   ;;  %v4878_v11 = vld [vmem:[%s5763_s29 + $0x4] ss:$8 sps:$4 sm:$0xff]  }
 0xbe1   : > { %2781 = vmatprep.subr.bf16.mxu1 %v4803_v8  ;;  %3745 = vmatpush1.bf16.msra.mxu0 %v4834_v1  ;;  %v4881_v8 = vld [vmem:[%s5763_s29 + $0x104] ss:$8 sps:$4 sm:$0xff]   ;;  %v4879_v1 = vld [vmem:[%s5763_s29 + $0x100] ss:$8 sps:$4 sm:$0xff]  }
 0xbe2   : > { %3746 = vmatprep.subr.bf16.mxu0 %v4842_v63  ;;  %v4915_v63 = vld [vmem:[%s5763_s29 + $0x1a0] ss:$8 sps:$4 sm:$0xff]  }
 0xbe4   : > { %2782 = vmatpush1.bf16.msra.mxu1 %v4801_v41  ;;  %v4884_v41 = vld [vmem:[%s5763_s29 + $0xf4] ss:$8 sps:$4 sm:$0xff]  }
 0xbe5   : > { %2783 = vmatprep.subr.bf16.mxu1 %v4806_v36  ;;  %3747 = vmatpush1.bf16.msra.mxu0 %v4840_v24  ;;  %v4882_v36 = vld [vmem:[%s5763_s29 + $0xf0] ss:$8 sps:$4 sm:$0xff]   ;;  %v4920_v24 = vld [vmem:[%s5763_s29 + $0x94] ss:$8 sps:$4 sm:$0xff]  }
 0xbe6   : > { %3748 = vmatprep.subr.bf16.mxu0 %v4848_v9  ;;  %v4921_v9 = vld [vmem:[%s5763_s29 + $0x190] ss:$8 sps:$4 sm:$0xff]  }
 0xbe8   : > { %2784 = vmatpush1.bf16.msra.mxu1 %v4804_v10  ;;  %v4887_v10 = vld [vmem:[%s5763_s29 + $0x1f4] ss:$8 sps:$4 sm:$0xff]  }
 0xbe9   : > { %2785 = vmatprep.subr.bf16.mxu1 %v4809_v52  ;;  %3749 = vmatpush1.bf16.msra.mxu0 %v4846_v20  ;;  %v4885_v52 = vld [vmem:[%s5763_s29 + $0x1f0] ss:$8 sps:$4 sm:$0xff]   ;;  %v4926_v20 = vld [vmem:[%s5763_s29 + $0x84] ss:$8 sps:$4 sm:$0xff]  }
 0xbea   : > { %3750 = vmatprep.subr.bf16.mxu0 %v4854_v37  ;;  %v4927_v37 = vld [vmem:[%s5763_s29 + $0x180] ss:$8 sps:$4 sm:$0xff]  }
 0xbec   : > { %2786 = vmatpush1.bf16.msra.mxu1 %v4807_v34  ;;  %v4890_v34 = vld [vmem:[%s5763_s29 + $0xe4] ss:$8 sps:$4 sm:$0xff]  }
 0xbed   : > { %2787 = vmatprep.subr.bf16.mxu1 %v4812_v3  ;;  %3751 = vmatpush1.bf16.msra.mxu0 %v4852_v39  ;;  %v4888_v3 = vld [vmem:[%s5763_s29 + $0xe0] ss:$8 sps:$4 sm:$0xff]   ;;  %v4932_v39 = vld [vmem:[%s5763_s29 + $0x274] ss:$8 sps:$4 sm:$0xff]  }
 0xbee   : > { %3752 = vmatprep.subr.bf16.mxu0 %v4860_v35 }
 0xbf0   : > { %2788 = vmatpush1.bf16.msra.mxu1 %v4810_v4  ;;  %v4893_v4 = vld [vmem:[%s5763_s29 + $0x1e4] ss:$8 sps:$4 sm:$0xff]  }
 0xbf1   : > { %2789 = vmatprep.subr.bf16.mxu1 %v4815_v14  ;;  %3753 = vmatpush1.bf16.msra.mxu0 %v4858_v46  ;;  %v4891_v14 = vld [vmem:[%s5763_s29 + $0x1e0] ss:$8 sps:$4 sm:$0xff]  }
 0xbf2   : > { %3754 = vmatprep.subr.bf16.mxu0 %v4866_v30 }
 0xbf4   : > { %2790 = vmatpush1.bf16.msra.mxu1 %v4813_v40  ;;  %v4896_v40 = vld [vmem:[%s5763_s29 + $0xd4] ss:$8 sps:$4 sm:$0xff]  }
 0xbf5   : > { %2791 = vmatprep.subr.bf16.mxu1 %v4818_v15  ;;  %3755 = vmatpush1.bf16.msra.mxu0 %v4864_v50  ;;  %v4894_v15 = vld [vmem:[%s5763_s29 + $0xd0] ss:$8 sps:$4 sm:$0xff]  }
 0xbf6   : > { %3756 = vmatprep.subr.bf16.mxu0 %v4872_v54 }
 0xbf8   : > { %2792 = vmatpush1.bf16.msra.mxu1 %v4816_v16  ;;  %v4899_v16 = vld [vmem:[%s5763_s29 + $0x1d4] ss:$8 sps:$4 sm:$0xff]  }
 0xbf9   : > { %2793 = vmatprep.subr.bf16.mxu1 %v4821_v45  ;;  %3757 = vmatpush1.bf16.msra.mxu0 %v4870_v56  ;;  %v4897_v45 = vld [vmem:[%s5763_s29 + $0x1d0] ss:$8 sps:$4 sm:$0xff]  }
 0xbfa   : > { %3758 = vmatprep.subr.bf16.mxu0 %v4878_v11 }
 0xbfc   : > { %2794 = vmatpush1.bf16.msra.mxu1 %v4819_v17  ;;  %v4902_v17 = vld [vmem:[%s5763_s29 + $0xc4] ss:$8 sps:$4 sm:$0xff]  }
 0xbfd   : > { %2803 = vmatprep.subr.bf16.mxu1 %v4824_v58  ;;  %v4900_v58 = vld [vmem:[%s5763_s29 + $0xc0] ss:$8 sps:$4 sm:$0xff]  }
 0xc00   : > { %2804 = vmatpush2.bf16.msra.mxu1 %v4822_v25  ;;  %v4905_v25 = vld [vmem:[%s5763_s29 + $0x1c4] ss:$8 sps:$4 sm:$0xff]  }
 0xc01   : > { %2805 = vmatprep.subr.bf16.mxu1 %v4827_v38  ;;  %v4903_v38 = vld [vmem:[%s5763_s29 + $0x1c0] ss:$8 sps:$4 sm:$0xff]  }
 0xc04   : > { %2806 = vmatpush2.bf16.msra.mxu1 %v4825_v18  ;;  %v4908_v18 = vld [vmem:[%s5763_s29 + $0xb4] ss:$8 sps:$4 sm:$0xff]  }
 0xc05   : > { %2807 = vmatprep.subr.bf16.mxu1 %v4830_v19  ;;  %v4906_v19 = vld [vmem:[%s5763_s29 + $0xb0] ss:$8 sps:$4 sm:$0xff]  }
 0xc08   : > { %2808 = vmatpush2.bf16.msra.mxu1 %v4828_v32  ;;  %v4911_v32 = vld [vmem:[%s5763_s29 + $0x1b4] ss:$8 sps:$4 sm:$0xff]  }
 0xc09   : > { %2809 = vmatprep.subr.bf16.mxu1 %v4833_v43  ;;  %v4909_v43 = vld [vmem:[%s5763_s29 + $0x1b0] ss:$8 sps:$4 sm:$0xff]  }
 0xc0c   : > { %2810 = vmatpush2.bf16.msra.mxu1 %v4831_v23  ;;  %v4914_v23 = vld [vmem:[%s5763_s29 + $0xa4] ss:$8 sps:$4 sm:$0xff]  }
 0xc0d   : > { %3787 = vmatprep.subr.bf16.mxu1 %v4839_v22  ;;  %v4912_v22 = vld [vmem:[%s5763_s29 + $0xa0] ss:$8 sps:$4 sm:$0xff]  }
 0xc0f   : > { %2812 = vmatmul.mubr.bf16.vlgmr.msra.gmra.mxu1 %v2219_v12  ;;  %v4876_v12 = vld [vmem:[%s5763_s29] ss:$8 sps:$4 sm:$0xff]  }
 0xc10   : > { %3788 = vmatpush1.bf16.msra.mxu1 %v4837_v60  ;;  %3759 = vmatpush1.bf16.msra.mxu0 %v4876_v12  ;;  %v4917_v60 = vld [vmem:[%s5763_s29 + $0x1a4] ss:$8 sps:$4 sm:$0xff]  }
 0xc11   : > { %3789 = vmatprep.subr.bf16.mxu1 %v4845_v29  ;;  %3760 = vmatprep.subr.bf16.mxu0 %v4884_v41  ;;  %v4918_v29 = vld [vmem:[%s5763_s29 + $0x90] ss:$8 sps:$4 sm:$0xff]  }
 0xc14   : > { %3790 = vmatpush1.bf16.msra.mxu1 %v4843_v48  ;;  %3761 = vmatpush2.bf16.msra.mxu0 %v4882_v36  ;;  %v4923_v48 = vld [vmem:[%s5763_s29 + $0x194] ss:$8 sps:$4 sm:$0xff]  }
 0xc15   : > { %3791 = vmatprep.subr.bf16.mxu1 %v4851_v21  ;;  %3762 = vmatprep.subr.bf16.mxu0 %v4890_v34  ;;  %v4924_v21 = vld [vmem:[%s5763_s29 + $0x80] ss:$8 sps:$4 sm:$0xff]  }
 0xc18   : > { %3792 = vmatpush1.bf16.msra.mxu1 %v4849_v33  ;;  %3763 = vmatpush2.bf16.msra.mxu0 %v4888_v3  ;;  %v4929_v33 = vld [vmem:[%s5763_s29 + $0x184] ss:$8 sps:$4 sm:$0xff]  }
 0xc19   : > { %3793 = vmatprep.subr.bf16.mxu1 %v4857_v42  ;;  %3764 = vmatprep.subr.bf16.mxu0 %v4896_v40  ;;  %v5876_v42 = vld [vmem:[%s2297_s23] sm:$0x3f] }
 0xc1a   : > { %v2311_v35 = vrot.slane %v5876_v42, %v278_v59  ;;  %v2315_v30 = vrot.slane %v5876_v42, %v282_v57 }
 0xc1c   : > { %3794 = vmatpush1.bf16.msra.mxu1 %v4855_v44  ;;  %3765 = vmatpush2.bf16.msra.mxu0 %v4894_v15  ;;  %v2303_v44 = vrot.slane %v5876_v42, %v5334_v28 }
 0xc1d   : > { %3795 = vmatprep.subr.bf16.mxu1 %v4863_v47  ;;  %3766 = vmatprep.subr.bf16.mxu0 %v4902_v17 }
 0xc20   : > { %3796 = vmatpush1.bf16.msra.mxu1 %v4861_v49  ;;  %3767 = vmatpush2.bf16.msra.mxu0 %v4900_v58  ;;  %v2307_v49 = vrot.slane %v5876_v42, %v5331_v27 }
 0xc21   : > { %3797 = vmatprep.subr.bf16.mxu1 %v4869_v51  ;;  %3768 = vmatprep.subr.bf16.mxu0 %v4908_v18 }
 0xc24   : > { %3798 = vmatpush1.bf16.msra.mxu1 %v4867_v5  ;;  %3769 = vmatpush2.bf16.msra.mxu0 %v4906_v19 }
 0xc25   : > { %3799 = vmatprep.subr.bf16.mxu1 %v4875_v53  ;;  %3770 = vmatprep.subr.bf16.mxu0 %v4914_v23 }
 0xc28   : > { %3800 = vmatpush1.bf16.msra.mxu1 %v4873_v61  ;;  %3771 = vmatpush2.bf16.msra.mxu0 %v4912_v22 }
 0xc29   : > { %3801 = vmatprep.subr.bf16.mxu1 %v4881_v8  ;;  %3772 = vmatprep.subr.bf16.mxu0 %v4920_v24 }
 0xc2c   : > { %3802 = vmatpush1.bf16.msra.mxu1 %v4879_v1  ;;  %3773 = vmatpush2.bf16.msra.mxu0 %v4918_v29 }
 0xc2d   : > { %3803 = vmatprep.subr.bf16.mxu1 %v4887_v10  ;;  %3774 = vmatprep.subr.bf16.mxu0 %v4926_v20 }
 0xc30   : > { %3804 = vmatpush2.bf16.msra.mxu1 %v4885_v52  ;;  %3775 = vmatpush2.bf16.msra.mxu0 %v4924_v21 }
 0xc31   : > { %3805 = vmatprep.subr.bf16.mxu1 %v4893_v4  ;;  %3830 = vmatprep.subr.bf16.mxu0 %v4932_v39 }
 0xc34   : > { %3806 = vmatpush2.bf16.msra.mxu1 %v4891_v14 }
 0xc35   : > { %3807 = vmatprep.subr.bf16.mxu1 %v4899_v16 }
 0xc38   : > { %3808 = vmatpush2.bf16.msra.mxu1 %v4897_v45 }
 0xc39   : > { %3809 = vmatprep.subr.bf16.mxu1 %v4905_v25 }
 0xc3c   : > { %3810 = vmatpush2.bf16.msra.mxu1 %v4903_v38 }
 0xc3d   : > { %3811 = vmatprep.subr.bf16.mxu1 %v4911_v32 }
 0xc40   : > { %3812 = vmatpush2.bf16.msra.mxu1 %v4909_v43 }
 0xc41   : > { %3813 = vmatprep.subr.bf16.mxu1 %v4917_v60 }
 0xc44   : > { %3814 = vmatpush2.bf16.msra.mxu1 %v4915_v63 }
 0xc45   : > { %3815 = vmatprep.subr.bf16.mxu1 %v4923_v48 }
 0xc48   : > { %3816 = vmatpush2.bf16.msra.mxu1 %v4921_v9 }
 0xc49   : > { %3817 = vmatprep.subr.bf16.mxu1 %v4929_v33 }
 0xc4c   : > { %3818 = vmatpush2.bf16.msra.mxu1 %v4927_v37 }
 0xc9f   : > { %v2727_v46 = vpop.f32.mrf.mxu1  ;;  %v2770_v47 = vpop.f32.mrf.mxu0 }
 0xca0   : > { %v5888_v50 = vadd.f32 %v2727_v46, %v2303_v44  ;;  %v5890_v51 = vadd.f32 %v2770_v47, %v2311_v35 }
 0xca1   : > { %v2729_v5 = vpop.f32.mrf.mxu1  ;;  %v2772_v54 = vpop.f32.mrf.mxu0 }
 0xca2   : > { %v5893_v56 = vmul.f32 0.70710677, %v5888_v50  ;;  %v5896_v59 = vmul.f32 0.70710677, %v5890_v51  ;;  %v5898_v53 = vadd.f32 %v2729_v5, %v2307_v49  ;;  %v5900_v61 = vadd.f32 %v2772_v54, %v2315_v30 }
 0xca3   : > { %v2731_v36 = vpop.f32.mrf.mxu1  ;;  %v2774_v15 = vpop.f32.mrf.mxu0 }
 0xca4   : > { %v2846_v11 = vand.u32 2147483647, %v5893_v56  ;;  %v2848_v57 = vand.u32 2147483647, %v5896_v59  ;;  %v5905_v12 = vmul.f32 0.70710677, %v5898_v53  ;;  %v5912_v40 = vadd.f32 %v2731_v36, %v2303_v44 }
 0xca5   : > { %v5908_v8 = vmul.f32 0.70710677, %v5900_v61  ;;  %v2733_v16 = vpop.f32.mrf.mxu1  ;;  %v5917_v25 = vadd.f32 %v2774_v15, %v2311_v35  ;;  %v2776_v19 = vpop.f32.mrf.mxu0  ;;  %vm3086_vm5 = vcmp.ge.f32.partialorder %v5893_v56, 0.0  ;;  %vm3088_vm9 = vcmp.ge.f32.partialorder %v5896_v59, 0.0 }
 0xca6   : > { %v2858_v1 = vmul.f32 0.3275911, %v2846_v11  ;;  %v2860_v41 = vmul.f32 0.3275911, %v2848_v57  ;;  %v2847_v10 = vand.u32 2147483647, %v5905_v12  ;;  %v5919_v38 = vadd.f32 %v2733_v16, %v2307_v49 }
 0xca7   : > { %v2849_v52 = vand.u32 2147483647, %v5908_v8  ;;  %v5915_v58 = vmul.f32 0.70710677, %v5912_v40  ;;  %v5923_v32 = vmul.f32 0.70710677, %v5917_v25  ;;  %v5929_v60 = vadd.f32 %v2776_v19, %v2315_v30 }
 0xca8   : > { %v2870_v34 = vadd.f32 1.0, %v2858_v1  ;;  %v2872_v3 = vadd.f32 1.0, %v2860_v41  ;;  %v2859_v4 = vmul.f32 0.3275911, %v2847_v10  ;;  %v5926_v23 = vmul.f32 0.70710677, %v5919_v38 }
 0xca9   : > { %v2861_v14 = vmul.f32 0.3275911, %v2849_v52  ;;  %v2852_v18 = vand.u32 2147483647, %v5915_v58  ;;  %v2854_v22 = vand.u32 2147483647, %v5923_v32 }
 0xcaa   : > { %5010 = vrcp.f32 %v2870_v34  ;;  %v2871_v45 = vadd.f32 1.0, %v2859_v4  ;;  %v3014_v63 = vsub.f32 0.0, %v2846_v11  ;;  %v2853_v29 = vand.u32 2147483647, %v5926_v23 }
 0xcab   : > { %5012 = vrcp.f32 %v2872_v3  ;;  %v2873_v17 = vadd.f32 1.0, %v2861_v14  ;;  %v2864_v43 = vmul.f32 0.3275911, %v2852_v18  ;;  %v2866_v48 = vmul.f32 0.3275911, %v2854_v22 }
 0xcac   : > { %5014 = vrcp.f32 %v2871_v45  ;;  %v5933_v9 = vmul.f32 0.70710677, %v5929_v60  ;;  %v3016_v20 = vsub.f32 0.0, %v2848_v57  ;;  %v2865_v21 = vmul.f32 0.3275911, %v2853_v29 }
 0xcad   : > { %5016 = vrcp.f32 %v2873_v17  ;;  %v2876_v24 = vadd.f32 1.0, %v2864_v43  ;;  %v3015_v33 = vsub.f32 0.0, %v2847_v10  ;;  %v2878_v37 = vadd.f32 1.0, %v2866_v48 }
 0xcae   : > { %v5936_v39 = vand.u32 2147483647, %v5933_v9  ;;  %v3026_v44 = vmul.f32 %v3014_v63, %v2846_v11  ;;  %v2877_v35 = vadd.f32 1.0, %v2865_v21  ;;  %v3017_v47 = vsub.f32 0.0, %v2849_v52 }
 0xcaf   : > { %5018 = vrcp.f32 %v2876_v24  ;;  %v3028_v54 = vmul.f32 %v3016_v20, %v2848_v57  ;;  %v3027_v41 = vmul.f32 %v3015_v33, %v2847_v10  ;;  %v3020_v36 = vsub.f32 0.0, %v2852_v18 }
 0xcb0   : > { %5020 = vrcp.f32 %v2878_v37  ;;  %v2867_v49 = vmul.f32 0.3275911, %v5936_v39  ;;  %v3038_v11 = vmul.f32 1.442695, %v3026_v44  ;;  %v3029_v15 = vmul.f32 %v3017_v47, %v2849_v52 }
 0xcb1   : > { %5022 = vrcp.f32 %v2877_v35  ;;  %v3022_v16 = vsub.f32 0.0, %v2854_v22  ;;  %v3042_v17 = vmul.f32 1.442695, %v3028_v54  ;;  %v3040_v10 = vmul.f32 1.442695, %v3027_v41 }
 0xcb2   : > { %v2879_v34 = vadd.f32 1.0, %v2867_v49  ;;  %v3032_v63 = vmul.f32 %v3020_v36, %v2852_v18  ;;  %v3044_v52 = vmul.f32 1.442695, %v3029_v15  ;;  %v3021_v37 = vsub.f32 0.0, %v2853_v29 }
 0xcb3   : > { %v3034_v33 = vmul.f32 %v3022_v16, %v2854_v22  ;;  %vm3087_vm6 = vcmp.ge.f32.partialorder %v5905_v12, 0.0  ;;  %vm3092_vm7 = vcmp.ge.f32.partialorder %v5915_v58, 0.0  ;;  %vm3089_vm8 = vcmp.ge.f32.partialorder %v5908_v8, 0.0 }
 0xcb4   : > { %5024 = vrcp.f32 %v2879_v34  ;;  %v3050_v18 = vmul.f32 1.442695, %v3032_v63  ;;  %v3033_v34 = vmul.f32 %v3021_v37, %v2853_v29  ;;  %v5971_v29 = vrot.slane %v5876_v42, %v286_v55 }
 0xcb5   : > { %5026 = vpow2.f32 %v3038_v11  ;;  %v3054_v22 = vmul.f32 1.442695, %v3034_v33  ;;  %vm3094_vm10 = vcmp.ge.f32.partialorder %v5923_v32, 0.0  ;;  %vm3093_vm11 = vcmp.ge.f32.partialorder %v5926_v23, 0.0 }
 0xcb6   : > { %5028 = vpow2.f32 %v3042_v17  ;;  %vm3095_vm12 = vcmp.ge.f32.partialorder %v5933_v9, 0.0 }
 0xcb7   : > { %v5938_v46 = vpop.eup %5010  ;;  %5030 = vpow2.f32 %v3040_v10 }
 0xcb8   : > { %v5941_v30 = vpop.eup %5012  ;;  %v2906_v5 = vmul.f32 1.0614054, %v5938_v46  ;;  %5032 = vpow2.f32 %v3044_v52  ;;  %v3052_v52 = vmul.f32 1.442695, %v3033_v34 }
 0xcb9   : > { %v2908_v1 = vmul.f32 1.0614054, %v5941_v30  ;;  %v5945_v4 = vpop.eup %5014  ;;  %5034 = vpow2.f32 %v3050_v18 }
 0xcba   : > { %v2918_v3 = vadd.f32 -1.4531521, %v2906_v5  ;;  %v2907_v19 = vmul.f32 1.0614054, %v5945_v4  ;;  %v5949_v57 = vpop.eup %5016  ;;  %5036 = vpow2.f32 %v3054_v22 }
 0xcbb   : > { %v2920_v14 = vadd.f32 -1.4531521, %v2908_v1  ;;  %v2909_v20 = vmul.f32 1.0614054, %v5949_v57  ;;  %5038 = vpow2.f32 %v3052_v52 }
 0xcbc   : > { %v2930_v45 = vmul.f32 %v5938_v46, %v2918_v3  ;;  %v2919_v48 = vadd.f32 -1.4531521, %v2907_v19  ;;  %v5955_v49 = vpop.eup %5018  ;;  %v3023_v3 = vsub.f32 0.0, %v5936_v39 }
 0xcbd   : > { %v2932_v43 = vmul.f32 %v5941_v30, %v2920_v14  ;;  %v2921_v47 = vadd.f32 -1.4531521, %v2909_v20  ;;  %v2912_v36 = vmul.f32 1.0614054, %v5955_v49  ;;  %v5961_v11 = vpop.eup %5020 }
 0xcbe   : > { %v2942_v24 = vadd.f32 1.4214138, %v2930_v45  ;;  %v2931_v35 = vmul.f32 %v5945_v4, %v2919_v48  ;;  %v5965_v17 = vpop.eup %5022  ;;  %v3035_v55 = vmul.f32 %v3023_v3, %v5936_v39 }
 0xcbf   : > { %v2944_v21 = vadd.f32 1.4214138, %v2932_v43  ;;  %v2933_v41 = vmul.f32 %v5949_v57, %v2921_v47  ;;  %v2924_v45 = vadd.f32 -1.4531521, %v2912_v36  ;;  %v2914_v43 = vmul.f32 1.0614054, %v5961_v11 }
 0xcc0   : > { %v2954_v44 = vmul.f32 %v5938_v46, %v2942_v24  ;;  %v2943_v1 = vadd.f32 1.4214138, %v2931_v35 }
 0xcc1   : > { %v2956_v5 = vmul.f32 %v5941_v30, %v2944_v21  ;;  %v2945_v16 = vadd.f32 1.4214138, %v2933_v41  ;;  %v2936_v48 = vmul.f32 %v5955_v49, %v2924_v45  ;;  %v2926_v20 = vadd.f32 -1.4531521, %v2914_v43  ;;  %v5976_v33 = vpop.eup %5024 }
 0xcc2   : > { %v2966_v54 = vadd.f32 -0.28449672, %v2954_v44  ;;  %v2955_v15 = vmul.f32 %v5945_v4, %v2943_v1  ;;  %v2913_v21 = vmul.f32 1.0614054, %v5965_v17  ;;  %v5027_v34 = vpop.eup %5026 }
 0xcc3   : > { %v2968_v19 = vadd.f32 -0.28449672, %v2956_v5  ;;  %v2957_v24 = vmul.f32 %v5949_v57, %v2945_v16  ;;  %v2948_v35 = vadd.f32 1.4214138, %v2936_v48  ;;  %v2938_v5 = vmul.f32 %v5961_v11, %v2926_v20  ;;  %v5029_v43 = vpop.eup %5028 }
 0xcc4   : > { %v2978_v14 = vmul.f32 %v5938_v46, %v2966_v54  ;;  %v2967_v63 = vadd.f32 -0.28449672, %v2955_v15  ;;  %v2925_v18 = vadd.f32 -1.4531521, %v2913_v21  ;;  %v2915_v54 = vmul.f32 1.0614054, %v5976_v33  ;;  %v5031_v48 = vpop.eup %5030 }
 0xcc5   : > { %v2969_v44 = vadd.f32 -0.28449672, %v2957_v24  ;;  %v2980_v47 = vmul.f32 %v5941_v30, %v2968_v19  ;;  %v2960_v22 = vmul.f32 %v5955_v49, %v2948_v35  ;;  %v3056_v19 = vmul.f32 1.442695, %v3035_v55 }
 0xcc6   : > { %v2990_v10 = vadd.f32 0.2548296, %v2978_v14  ;;  %v2979_v37 = vmul.f32 %v5945_v4, %v2967_v63  ;;  %v2950_v14 = vadd.f32 1.4214138, %v2938_v5  ;;  %v2937_v15 = vmul.f32 %v5965_v17, %v2925_v18 }
 0xcc7   : > { %v2981_v36 = vmul.f32 %v5949_v57, %v2969_v44  ;;  %v2927_v39 = vadd.f32 -1.4531521, %v2915_v54  ;;  %v2972_v45 = vadd.f32 -0.28449672, %v2960_v22  ;;  %v2992_v63 = vadd.f32 0.2548296, %v2980_v47  ;;  %v5033_v47 = vpop.eup %5032 }
 0xcc8   : > { %v3002_v1 = vmul.f32 %v5938_v46, %v2990_v10  ;;  %v2991_v41 = vadd.f32 0.2548296, %v2979_v37  ;;  %v2962_v46 = vmul.f32 %v5961_v11, %v2950_v14  ;;  %v2949_v10 = vadd.f32 1.4214138, %v2937_v15 }
 0xcc9   : > { %v2993_v16 = vadd.f32 0.2548296, %v2981_v36  ;;  %v2939_v24 = vmul.f32 %v5976_v33, %v2927_v39  ;;  %v5991_v20 = vmul.f32 0.5, %v5888_v50  ;;  %v2984_v52 = vmul.f32 %v5955_v49, %v2972_v45  ;;  %v5035_v36 = vpop.eup %5034 }
 0xcca   : > { %v3003_v3 = vmul.f32 %v5945_v4, %v2991_v41  ;;  %v3062_v21 = vmul.f32 %v5027_v34, %v3002_v1  ;;  %v5997_v4 = vrot.slane %v5876_v42, %v290_v31  ;;  %v2974_v44 = vadd.f32 -0.28449672, %v2962_v46 }
 0xccb   : > { %v2961_v35 = vmul.f32 %v5965_v17, %v2949_v10  ;;  %v2951_v55 = vadd.f32 1.4214138, %v2939_v24  ;;  %v6001_v5 = vmul.f32 0.5, %v5898_v53  ;;  %v3005_v50 = vmul.f32 %v5949_v57, %v2993_v16 }
 0xccc   : > { %v3063_v37 = vmul.f32 %v5031_v48, %v3003_v3  ;;  %v2996_v18 = vadd.f32 0.2548296, %v2984_v52  ;;  %5040 = vpow2.f32 %v3056_v19  ;;  %v3004_v1 = vmul.f32 %v5941_v30, %v2992_v63 }
 0xccd   : > { %v6007_v31 = vmul.f32 0.5, %v5900_v61  ;;  %v2986_v42 = vmul.f32 %v5961_v11, %v2974_v44  ;;  %v2973_v41 = vadd.f32 -0.28449672, %v2961_v35  ;;  %v3074_v22 = vsub.f32 1.0, %v3062_v21  ;;  %v5037_v61 = vpop.eup %5036 }
 0xcce   : > { %v6012_v53 = vmul.f32 0.5, %v5912_v40  ;;  %v3008_v57 = vmul.f32 %v5955_v49, %v2996_v18  ;;  %v3075_v34 = vsub.f32 1.0, %v3063_v37  ;;  %v2963_v30 = vmul.f32 %v5976_v33, %v2951_v55 }
 0xccf   : > { %v2813_v54 = vpop.f32.mrf.mxu1  ;;  %v2998_v14 = vadd.f32 0.2548296, %v2986_v42  ;;  %v2985_v15 = vmul.f32 %v5965_v17, %v2973_v41  ;;  %v3065_v39 = vmul.f32 %v5033_v47, %v3005_v50  ;;  %v6019_v16 = vmul.f32 0.5, %v5917_v25 }
 0xcd0   : > { %v3068_v3 = vmul.f32 %v5035_v36, %v3008_v57  ;;  %v3064_v19 = vmul.f32 %v5029_v43, %v3004_v1  ;;  %v2975_v49 = vadd.f32 -0.28449672, %v2963_v30  ;;  %v3098_v46 = vsub.f32 0.0, %v3074_v22  ;;  %v5039_v43 = vpop.eup %5038 }
 0xcd1   : > { %v2815_v45 = vpop.f32.mrf.mxu1  ;;  %v3010_v40 = vmul.f32 %v5961_v11, %v2998_v14  ;;  %v2997_v63 = vadd.f32 0.2548296, %v2985_v15  ;;  %v2829_v24 = vmul.f32 0.5, %v5919_v38  ;;  %v6024_v48 = vadd.f32 %v2813_v54, %v5971_v29 }
 0xcd2   : > { %v3080_v10 = vsub.f32 1.0, %v3068_v3  ;;  %v3099_v21 = vsub.f32 0.0, %v3075_v34  ;;  %v6029_v37 = vadd.f32 %v2815_v45, %v5997_v4  ;;  %v3077_v11 = vsub.f32 1.0, %v3065_v39 }
 0xcd3   : > { %v3070_v52 = vmul.f32 %v5037_v61, %v3010_v40  ;;  %v3009_v25 = vmul.f32 %v5965_v17, %v2997_v63  ;;  %v2987_v35 = vmul.f32 %v5976_v33, %v2975_v49  ;;  %v6034_v38 = vmul.f32 0.70710677, %v6024_v48 }
 0xcd4   : > { %v3104_v44 = vsub.f32 0.0, %v3080_v10  ;;  %v3076_v55 = vsub.f32 1.0, %v3064_v19  ;;  %v3110_v17 = vsel %vm3086_vm5, %v3074_v22, %v3098_v46  ;;  %v3111_v42 = vsel %vm3087_vm6, %v3075_v34, %v3099_v21  ;;  %v2817_v22 = vpop.f32.mrf.mxu1 }
 0xcd5   : > { %v3082_v47 = vsub.f32 1.0, %v3070_v52  ;;  %v3069_v50 = vmul.f32 %v5039_v43, %v3009_v25  ;;  %v2999_v54 = vadd.f32 0.2548296, %v2987_v35  ;;  %v6042_v1 = vand.u32 2147483647, %v6034_v38 }
 0xcd6   : > { %v3116_v18 = vsel %vm3092_vm7, %v3080_v10, %v3104_v44  ;;  %v6047_v57 = vmul.f32 0.70710677, %v6029_v37  ;;  %v3101_v14 = vsub.f32 0.0, %v3077_v11  ;;  %v3100_v30 = vsub.f32 0.0, %v3076_v55  ;;  %v2819_v21 = vpop.f32.mrf.mxu1 }
 0xcd7   : > { %v3106_v41 = vsub.f32 0.0, %v3082_v47  ;;  %v3081_v36 = vsub.f32 1.0, %v3069_v50  ;;  %v3011_v56 = vmul.f32 %v5976_v33, %v2999_v54  ;;  %v2862_v58 = vmul.f32 0.3275911, %v6042_v1  ;;  %v4930_v50 = vld [vmem:[%s5763_s29 + $0x270] ss:$8 sps:$4 sm:$0xff]  }
 0xcd8   : > { %v3128_v61 = vadd.f32 1.0, %v3116_v18  ;;  %v6053_v12 = vand.u32 2147483647, %v6047_v57  ;;  %v3122_v34 = vadd.f32 1.0, %v3110_v17  ;;  %v3123_v3 = vadd.f32 1.0, %v3111_v42 }
 0xcd9   : > { %v5041_v15 = vpop.eup %5040  ;;  %v3105_v39 = vsub.f32 0.0, %v3081_v36  ;;  %v2874_v19 = vadd.f32 1.0, %v2862_v58  ;;  %v3118_v40 = vsel %vm3094_vm10, %v3082_v47, %v3106_v41  ;;  %v6059_v63 = vadd.f32 %v2817_v22, %v5971_v29  ;;  %v4933_v58 = vld [vmem:[%s5763_s29 + $0x260] ss:$8 sps:$4 sm:$0xff]  }
 0xcda   : > { %v3071_v45 = vmul.f32 %v5041_v15, %v3011_v56  ;;  %v2863_v33 = vmul.f32 0.3275911, %v6053_v12  ;;  %v3113_v49 = vsel %vm3089_vm8, %v3077_v11, %v3101_v14  ;;  %v3112_v52 = vsel %vm3088_vm9, %v3076_v55, %v3100_v30 }
 0xcdb   : > { %v3117_v23 = vsel %vm3093_vm11, %v3081_v36, %v3105_v39  ;;  %5042 = vrcp.f32 %v2874_v19  ;;  %v3140_v32 = vmul.f32 %v3128_v61, %v6012_v53  ;;  %v3135_v43 = vmul.f32 %v3123_v3, %v6001_v5  ;;  %v4936_v39 = vld [vmem:[%s5763_s29 + $0x250] ss:$8 sps:$4 sm:$0xff]   ;;  %v4941_v3 = vld [vmem:[%s5763_s29 + $0x244] ss:$8 sps:$4 sm:$0xff]  }
 0xcdc   : > { %v3129_v46 = vadd.f32 1.0, %v3117_v23  ;;  %v3083_v10 = vsub.f32 1.0, %v3071_v45  ;;  %v2875_v25 = vadd.f32 1.0, %v2863_v33  ;;  %v3130_v29 = vadd.f32 1.0, %v3118_v40  ;;  %v4939_v23 = vld [vmem:[%s5763_s29 + $0x240] ss:$8 sps:$4 sm:$0xff]  }
 0xcdd   : > { %v3134_v11 = vmul.f32 %v3122_v34, %v5991_v20  ;;  %v3125_v35 = vadd.f32 1.0, %v3113_v49  ;;  %v6070_v47 = vmul.f32 0.70710677, %v6059_v63  ;;  %v6073_v59 = vadd.f32 %v2819_v21, %v5997_v4  ;;  %v4935_v20 = vld [vmem:[%s5763_s29 + $0x264] ss:$8 sps:$4 sm:$0xff]  }
 0xcde   : > { %v3141_v44 = vmul.f32 %v3129_v46, %v2829_v24  ;;  %v3107_v8 = vsub.f32 0.0, %v3083_v10  ;;  %v3124_v55 = vadd.f32 1.0, %v3112_v52  ;;  %5044 = vrcp.f32 %v2875_v25  ;;  %v4944_v49 = vld [vmem:[%s5763_s29 + $0x234] ss:$8 sps:$4 sm:$0xff]  }
 0xcdf   : > { %v3146_v17 = vpack.c.bf16 %v3140_v32, %v3134_v11  ;;  %v2831_v5 = vmul.f32 0.5, %v5929_v60  ;;  %v2856_v18 = vand.u32 2147483647, %v6070_v47  ;;  %v2824_v54 = vmul.f32 0.5, %v5890_v51 }
 0xce0   : > { %v3119_v53 = vsel %vm3095_vm12, %v3083_v10, %v3107_v8  ;;  %v3147_v9 = vpack.c.bf16 %v3141_v44, %v3135_v43  ;;  %v3142_v42 = vmul.f32 %v3130_v29, %v6019_v16  ;;  %v6082_v4 = vmul.f32 0.70710677, %v6073_v59  ;;  %v4938_v16 = vld [vmem:[%s5763_s29 + $0x254] ss:$8 sps:$4 sm:$0xff]   ;;  %v4942_v43 = vld [vmem:[%s5763_s29 + $0x230] ss:$8 sps:$4 sm:$0xff]  }
 0xce1   : > { %v3131_v24 = vadd.f32 1.0, %v3119_v53  ;;  %v3137_v41 = vmul.f32 %v3125_v35, %v6007_v31  ;;  %v2868_v14 = vmul.f32 0.3275911, %v2856_v18  ;;  %v3136_v56 = vmul.f32 %v3124_v55, %v2824_v54 }
 0xce2   : > { %3776 = vmatprep.mubr.bf16.mxu0 %v3147_v9  ;;  %v2857_v60 = vand.u32 2147483647, %v6082_v4  ;;  %v3019_v30 = vsub.f32 0.0, %v6053_v12  ;;  %v3024_v21 = vsub.f32 0.0, %v2856_v18  ;;  %v3018_v29 = vsub.f32 0.0, %v6042_v1 }
 0xce3   : > { %v3143_v36 = vmul.f32 %v3131_v24, %v2831_v5  ;;  %3777 = vmatmul.mubr.bf16.vlgmr.msra.gmra.mxu0 %v3146_v17  ;;  %v2880_v22 = vadd.f32 1.0, %v2868_v14  ;;  %v3148_v15 = vpack.c.bf16 %v3142_v42, %v3136_v56  ;;  %v4945_v9 = vld [vmem:[%s5763_s29 + $0x220] ss:$8 sps:$4 sm:$0xff]   ;;  %v4950_v17 = vld [vmem:[%s5763_s29 + $0x214] ss:$8 sps:$4 sm:$0xff]   ;;  %vm3091_vm13 = vcmp.ge.f32.partialorder %v6047_v57, 0.0 }
 0xce4   : > { %3831 = vmatpush1.bf16.msra.mxu0 %v4930_v50  ;;  %v2869_v61 = vmul.f32 0.3275911, %v2857_v60  ;;  %v3031_v19 = vmul.f32 %v3019_v30, %v6053_v12  ;;  %v3025_v25 = vsub.f32 0.0, %v2857_v60  ;;  %v4947_v12 = vld [vmem:[%s5763_s29 + $0x224] ss:$8 sps:$4 sm:$0xff]   ;;  %v3036_v8 = vmul.f32 %v3024_v21, %v2856_v18 }
 0xce5   : > { %v3149_v51 = vpack.c.bf16 %v3143_v36, %v3137_v41  ;;  %3832 = vmatprep.subr.bf16.mxu0 %v4935_v20  ;;  %5046 = vrcp.f32 %v2880_v22  ;;  %v3030_v5 = vmul.f32 %v3018_v29, %v6042_v1  ;;  %v4948_v41 = vld [vmem:[%s5763_s29 + $0x210] ss:$8 sps:$4 sm:$0xff]   ;;  %vm3097_vm14 = vcmp.ge.f32.partialorder %v6082_v4, 0.0  ;;  %v4969_v4 = vld [vmem:[%s5763_s29 + $0x2a0] ss:$8 sps:$4 sm:$0xff]  }
 0xce6   : > { %v2881_v31 = vadd.f32 1.0, %v2869_v61  ;;  %v3048_v10 = vmul.f32 1.442695, %v3031_v19  ;;  %v3037_v53 = vmul.f32 %v3025_v25, %v2857_v60  ;;  %v3058_v42 = vmul.f32 1.442695, %v3036_v8 }
 0xce7   : > { %3819 = vmatprep.mubr.bf16.mxu1 %v3149_v51  ;;  %v3046_v22 = vmul.f32 1.442695, %v3030_v5  ;;  %v4954_v21 = vld [vmem:[%s5763_s29 + $0x2f0] ss:$8 sps:$4 sm:$0xff]   ;;  %v4962_v8 = vld [vmem:[%s5763_s29 + $0x2d4] ss:$8 sps:$4 sm:$0xff]  }
 0xce8   : > { %3820 = vmatmul.mubr.bf16.vlgmr.msra.gmra.mxu1 %v3148_v15  ;;  %3833 = vmatpush1.bf16.msra.mxu0 %v4933_v58  ;;  %v6090_v34 = vpop.eup %5042  ;;  %5048 = vrcp.f32 %v2881_v31  ;;  %v3060_v56 = vmul.f32 1.442695, %v3037_v53  ;;  %v4953_v58 = vld [vmem:[%s5763_s29 + $0x204] ss:$8 sps:$4 sm:$0xff]   ;;  %v4951_v31 = vld [vmem:[%s5763_s29 + $0x200] ss:$8 sps:$4 sm:$0xff]  }
 0xce9   : > { %3834 = vmatprep.subr.bf16.mxu0 %v4938_v16  ;;  %v2910_v45 = vmul.f32 1.0614054, %v6090_v34  ;;  %5050 = vpow2.f32 %v3048_v10  ;;  %v4960_v5 = vld [vmem:[%s5763_s29 + $0x2d0] ss:$8 sps:$4 sm:$0xff]   ;;  %v2827_v57 = vmul.f32 0.5, %v6029_v37  ;;  %vm3096_vm15 = vcmp.ge.f32.partialorder %v6070_v47, 0.0 }
 0xcea   : > { %5052 = vpow2.f32 %v3058_v42  ;;  %vm3090_vm0 = vcmp.ge.f32.partialorder %v6034_v38, 0.0  ;;  %v4975_v47 = vld [vmem:[%s5763_s29 + $0x280] ss:$8 sps:$4 sm:$0xff]   ;;  %vm3950_vm5 = vcmask (%p56_p0), 519170   ;;  %vm3944_vm6 = vcmask (%p56_p0), 1045509  }
 0xceb   : > { %v2922_v40 = vadd.f32 -1.4531521, %v2910_v45  ;;  %v5045_v33 = vpop.eup %5044  ;;  %5054 = vpow2.f32 %v3060_v56  ;;  %vm3946_vm7 = vcmask (%p56_p0), 1047559   ;;  %vm3951_vm8 = vmor (%p56_p0), %vm3950_vm5, %vm3949_vm4 }
 0xcec   : > { %3835 = vmatpush1.bf16.msra.mxu0 %v4936_v39  ;;  %v2911_v46 = vmul.f32 1.0614054, %v5045_v33  ;;  %5056 = vpow2.f32 %v3046_v22 }
 0xced   : > { %3836 = vmatprep.subr.bf16.mxu0 %v4941_v3  ;;  %v2934_v52 = vmul.f32 %v6090_v34, %v2922_v40  ;;  %v4956_v3 = vld [vmem:[%s5763_s29 + $0x2f4] ss:$8 sps:$4 sm:$0xff]  }
 0xcee   : > { %v2923_v32 = vadd.f32 -1.4531521, %v2911_v46 }
 0xcef   : > { %v2946_v35 = vadd.f32 1.4214138, %v2934_v52 }
 0xcf0   : > { %3837 = vmatpush1.bf16.msra.mxu0 %v4939_v23  ;;  %v2935_v44 = vmul.f32 %v5045_v33, %v2923_v32  ;;  %v4959_v32 = vld [vmem:[%s5763_s29 + $0x2e4] ss:$8 sps:$4 sm:$0xff]  }
 0xcf1   : > { %3838 = vmatprep.subr.bf16.mxu0 %v4944_v49  ;;  %v2958_v36 = vmul.f32 %v6090_v34, %v2946_v35 }
 0xcf2   : > { %v5047_v11 = vpop.eup %5046  ;;  %v2947_v55 = vadd.f32 1.4214138, %v2935_v44  ;;  %v4957_v44 = vld [vmem:[%s5763_s29 + $0x2e0] ss:$8 sps:$4 sm:$0xff]  }
 0xcf3   : > { %v2916_v50 = vmul.f32 1.0614054, %v5047_v11  ;;  %v2970_v15 = vadd.f32 -0.28449672, %v2958_v36 }
 0xcf4   : > { %3839 = vmatpush1.bf16.msra.mxu0 %v4942_v43  ;;  %v2959_v24 = vmul.f32 %v5045_v33, %v2947_v55 }
 0xcf5   : > { %3840 = vmatprep.subr.bf16.mxu0 %v4947_v12  ;;  %v5049_v20 = vpop.eup %5048  ;;  %v2928_v54 = vadd.f32 -1.4531521, %v2916_v50  ;;  %v2982_v49 = vmul.f32 %v6090_v34, %v2970_v15 }
 0xcf6   : > { %v2971_v18 = vadd.f32 -0.28449672, %v2959_v24  ;;  %v2917_v14 = vmul.f32 1.0614054, %v5049_v20  ;;  %v5051_v40 = vpop.eup %5050 }
 0xcf7   : > { %v2940_v60 = vmul.f32 %v5047_v11, %v2928_v54  ;;  %v2994_v12 = vadd.f32 0.2548296, %v2982_v49  ;;  %v5053_v53 = vpop.eup %5052  ;;  %v4965_v54 = vld [vmem:[%s5763_s29 + $0x2c4] ss:$8 sps:$4 sm:$0xff]  }
 0xcf8   : > { %3841 = vmatpush1.bf16.msra.mxu0 %v4945_v9  ;;  %v2983_v51 = vmul.f32 %v5045_v33, %v2971_v18  ;;  %v2929_v16 = vadd.f32 -1.4531521, %v2917_v14  ;;  %v5055_v24 = vpop.eup %5054  ;;  %v4977_v49 = vld [vmem:[%s5763_s29 + $0x284] ss:$8 sps:$4 sm:$0xff]  }
 0xcf9   : > { %3842 = vmatprep.subr.bf16.mxu0 %v4950_v17  ;;  %v2952_v1 = vadd.f32 1.4214138, %v2940_v60  ;;  %v3006_v9 = vmul.f32 %v6090_v34, %v2994_v12  ;;  %v5057_v36 = vpop.eup %5056  ;;  %v4963_v34 = vld [vmem:[%s5763_s29 + $0x2c0] ss:$8 sps:$4 sm:$0xff]  }
 0xcfa   : > { %v2995_v30 = vadd.f32 0.2548296, %v2983_v51  ;;  %v2941_v61 = vmul.f32 %v5049_v20, %v2929_v16  ;;  %v4966_v16 = vld [vmem:[%s5763_s29 + $0x2b0] ss:$8 sps:$4 sm:$0xff]  }
 0xcfb   : > { %v2964_v39 = vmul.f32 %v5047_v11, %v2952_v1  ;;  %v2833_v1 = vmul.f32 0.5, %v6073_v59 }
 0xcfc   : > { %3843 = vmatpush1.bf16.msra.mxu0 %v4948_v41  ;;  %v3007_v45 = vmul.f32 %v5045_v33, %v2995_v30  ;;  %v2953_v19 = vadd.f32 1.4214138, %v2941_v61  ;;  %v4971_v30 = vld [vmem:[%s5763_s29 + $0x2a4] ss:$8 sps:$4 sm:$0xff]  }
 0xcfd   : > { %3844 = vmatprep.subr.bf16.mxu0 %v4953_v58  ;;  %v2976_v23 = vadd.f32 -0.28449672, %v2964_v39 }
 0xcfe   : > { %v3067_v46 = vmul.f32 %v5051_v40, %v3007_v45  ;;  %v2965_v10 = vmul.f32 %v5049_v20, %v2953_v19  ;;  %v4974_v19 = vld [vmem:[%s5763_s29 + $0x294] ss:$8 sps:$4 sm:$0xff]   ;;  %v4972_v40 = vld [vmem:[%s5763_s29 + $0x290] ss:$8 sps:$4 sm:$0xff]  }
 0xcff   : > { %v2988_v52 = vmul.f32 %v5047_v11, %v2976_v23 }
 0xd00   : > { %3845 = vmatpush1.bf16.msra.mxu0 %v4951_v31  ;;  %v2977_v25 = vadd.f32 -0.28449672, %v2965_v10  ;;  %v3079_v29 = vsub.f32 1.0, %v3067_v46  ;;  %v2832_v10 = vmul.f32 0.5, %v6059_v63 }
 0xd01   : > { %3846 = vmatprep.subr.bf16.mxu0 %v4956_v3  ;;  %v3000_v43 = vadd.f32 0.2548296, %v2988_v52 }
 0xd02   : > { %v2989_v33 = vmul.f32 %v5049_v20, %v2977_v25  ;;  %v3103_v50 = vsub.f32 0.0, %v3079_v29 }
 0xd03   : > { %v3012_v35 = vmul.f32 %v5047_v11, %v3000_v43  ;;  %v3066_v11 = vmul.f32 %v5057_v36, %v3006_v9  ;;  %v3252_v43 = vld [vmem:[%s3251_s26] sm:$0x3] }
 0xd04   : > { %3847 = vmatpush2.bf16.msra.mxu0 %v4954_v21  ;;  %v3001_v55 = vadd.f32 0.2548296, %v2989_v33  ;;  %v3115_v18 = vsel %vm3091_vm13, %v3079_v29, %v3103_v50  ;;  %v2826_v21 = vmul.f32 0.5, %v6024_v48  ;;  %v3257_v29 = vrot.slane %v3252_v43, %v5334_v28 }
 0xd05   : > { %3848 = vmatprep.subr.bf16.mxu0 %v4959_v32  ;;  %v3072_v42 = vmul.f32 %v5053_v53, %v3012_v35  ;;  %v3127_v58 = vadd.f32 1.0, %v3115_v18  ;;  %v3078_v22 = vsub.f32 1.0, %v3066_v11  ;;  %v3261_v33 = vrot.slane %v3252_v43, %v5331_v27 }
 0xd06   : > { %v3013_v17 = vmul.f32 %v5049_v20, %v3001_v55  ;;  %v4968_v20 = vld [vmem:[%s5763_s29 + $0x2b4] ss:$8 sps:$4 sm:$0xff]  }
 0xd07   : > { %v3084_v56 = vsub.f32 1.0, %v3072_v42  ;;  %v3139_v31 = vmul.f32 %v3127_v58, %v2827_v57  ;;  %v3102_v3 = vsub.f32 0.0, %v3078_v22 }
 0xd08   : > { %3849 = vmatpush2.bf16.msra.mxu0 %v4957_v44  ;;  %v3073_v41 = vmul.f32 %v5055_v24, %v3013_v17 }
 0xd09   : > { %3850 = vmatprep.subr.bf16.mxu0 %v4962_v8  ;;  %v3108_v61 = vsub.f32 0.0, %v3084_v56  ;;  %v3114_v59 = vsel %vm3090_vm0, %v3078_v22, %v3102_v3 }
 0xd0a   : > { %v3085_v14 = vsub.f32 1.0, %v3073_v41  ;;  %v3126_v46 = vadd.f32 1.0, %v3114_v59 }
 0xd0b   : > { %v3120_v37 = vsel %vm3096_vm15, %v3084_v56, %v3108_v61 }
 0xd0c   : > { %3851 = vmatpush2.bf16.msra.mxu0 %v4960_v5  ;;  %v3109_v60 = vsub.f32 0.0, %v3085_v14  ;;  %v3132_v23 = vadd.f32 1.0, %v3120_v37  ;;  %v3138_v32 = vmul.f32 %v3126_v46, %v2826_v21 }
 0xd0d   : > { %3852 = vmatprep.subr.bf16.mxu0 %v4965_v54 }
 0xd0e   : > { %v3121_v51 = vsel %vm3097_vm14, %v3085_v14, %v3109_v60  ;;  %v3144_v52 = vmul.f32 %v3132_v23, %v2832_v10 }
 0xd0f   : > { %v3133_v15 = vadd.f32 1.0, %v3121_v51 }
 0xd10   : > { %3853 = vmatpush2.bf16.msra.mxu0 %v4963_v34  ;;  %v3150_v38 = vpack.c.bf16 %v3144_v52, %v3138_v32 }
 0xd11   : > { %3854 = vmatprep.subr.bf16.mxu0 %v4968_v20  ;;  %v3145_v39 = vmul.f32 %v3133_v15, %v2833_v1 }
 0xd13   : > { %v3151_v45 = vpack.c.bf16 %v3145_v39, %v3139_v31 }
 0xd14   : > { %3855 = vmatpush2.bf16.msra.mxu0 %v4966_v16 }
 0xd15   : > { %3856 = vmatprep.subr.bf16.mxu0 %v4971_v30  ;;  %3862 = vmatprep.mubr.bf16.mxu0 %v3151_v45 }
 0xd18   : > { %3857 = vmatpush2.bf16.msra.mxu0 %v4969_v4 }
 0xd19   : > { %3858 = vmatprep.subr.bf16.mxu0 %v4974_v19 }
 0xd1c   : > { %3859 = vmatpush2.bf16.msra.mxu0 %v4972_v40 }
 0xd1d   : > { %3860 = vmatprep.subr.bf16.mxu0 %v4977_v49 }
 0xd20   : > { %3861 = vmatpush2.bf16.msra.mxu0 %v4975_v47 }
 0xd23   : > { %3863 = vmatmul.mubr.bf16.vlgmr.msra.gmra.mxu0 %v3150_v38 }
 0xda3   : > { %v3778_v25 = vpop.f32.mrf.mxu0 }
 0xda4   : > { %v3779_v48 = vadd.f32 %v3778_v25, %v3257_v29 }
 0xda5   : > { %v3780_v12 = vpop.f32.mrf.mxu0 }
 0xda6   : > { %v3781_v35 = vadd.f32 %v3780_v12, %v3261_v33 }
 0xda7   : > { %v3782_v44 = vpop.f32.mrf.mxu0 }
 0xda8   : > { %v3821_v63 = vpop.f32.mrf.mxu1  ;;  %v3783_v9 = vadd.f32 %v3782_v44, %v3257_v29 }
 0xda9   : > { %v3784_v55 = vpop.f32.mrf.mxu0  ;;  %v3822_v53 = vadd.f32 %v3821_v63, %v3779_v48 }
 0xdaa   : > { %v3823_v8 = vpop.f32.mrf.mxu1  ;;  %v3785_v24 = vadd.f32 %v3784_v55, %v3261_v33 }
 0xdab   : > { %v3824_v5 = vadd.f32 %v3823_v8, %v3781_v35 }
 0xdac   : > { %v3825_v50 = vpop.f32.mrf.mxu1 }
 0xdad   : > { %v3826_v41 = vadd.f32 %v3825_v50, %v3783_v9 }
 0xdae   : > { %v3827_v11 = vpop.f32.mrf.mxu1 }
 0xdaf   : > { %v3828_v27 = vadd.f32 %v3827_v11, %v3785_v24 }
 0xde3   : > { %v3864_v17 = vpop.f32.mrf.mxu0 }
 0xde4   : > { %v3865_v54 = vadd.f32 %v3864_v17, %v3822_v53 }
 0xde5   : > { %v3866_v42 = vpop.f32.mrf.mxu0 }
 0xde6   : > { %v3873_v36 = vadd.f32 %v3865_v54, %v5668_v6   ;;  %v3867_v28 = vadd.f32 %v3866_v42, %v3824_v5 }
 0xde7   : > { %v3868_v18 = vpop.f32.mrf.mxu0 }
 0xde8   : > { %v3874_v14 = vadd.f32 %v3867_v28, %v5665_v62   ;;  %v3869_v34 = vadd.f32 %v3868_v18, %v3826_v41  ;;  %v6179_v1 = vmov %v3873_v36  ;;  %v3880_v62 = vsel (%p56_p0), %vm3879_vm2, %v3873_v36, 0.0 }
 0xde9   : > { %v3870_v20 = vpop.f32.mrf.mxu0  ;;  %v3884_v51 = vrot.slane (%p56_p0), %v3880_v62, 4 }
 0xdea   : > { %v3875_v56 = vadd.f32 %v3869_v34, %v5677_v13   ;;  %v3871_v60 = vadd.f32 %v3870_v20, %v3828_v27  ;;  %58 = sbr.rel (!%p56_p0) target bundleno = 6 (0x6), region = 91  ;;  %v3881_v6 = vsel (%p56_p0), %vm3879_vm2, %v3874_v14, 0.0 }
 0xdeb   :  { %v3891_v16 = vsel (%p56_p0), %vm69_vm1, %v3881_v6, 0.0  ;;  %v3885_v61 = vadd.f32 (%p56_p0), %v3884_v51, %v3880_v62 }
 0xdec   : > { %v3876_v58 = vadd.f32 %v3871_v60, %v5675_v2   ;;  %v6177_v3 = vmov %v3875_v56  ;;  %v6178_v2 = vmov %v3874_v14  ;;  %v3882_v13 = vsel (%p56_p0), %vm3879_vm2, %v3875_v56, 0.0 }
 0xded   :  { %v3898_v57 = vrot.slane (%p56_p0), %v3882_v13, 4  ;;  %v3892_v15 = vrot.slane (%p56_p0), %v3891_v16, 4  ;;  %v3886_v19 = vrot.slane (%p56_p0), %v3885_v61, 2  ;;  %v5124_v2 = vmov (%p56_p0), 1983009808  }
 0xdee   : > { %v6176_v4 = vmov %v3876_v58  ;;  %v3883_v22 = vsel (%p56_p0), %vm3879_vm2, %v3876_v58, 0.0  ;;  %v3921_v3 = vunpack.c.l.s4 (%p56_p0), %v5124_v2 }
 0xdef   :  { %v3904_v1 = vsel %vm69_vm1, %v3883_v22, 0.0  ;;  %v3899_v31 = vadd.f32 %v3898_v57, %v3882_v13  ;;  %v3893_v39 = vadd.f32 %v3892_v15, %v3891_v16  ;;  %v3887_v4 = vadd.f32 %v3886_v19, %v3885_v61 }
 0xdf0   :  { %v3905_v30 = vrot.slane %v3904_v1, 4  ;;  %v3922_v21 = vunpack.c.0.s8 %v3921_v3  ;;  %vm3940_vm1 = vcmask 1041409  }
 0xdf1   :  { %v3900_v37 = vrot.slane %v3899_v31, 2  ;;  %v3894_v0 = vrot.slane %v3893_v39, 2  ;;  %v3888_v49 = vrot.slane %v3887_v4, 1 }
 0xdf2   :  { %v3906_v45 = vadd.f32 %v3905_v30, %v3904_v1  ;;  %v3925_v33 = vsub.s32 %v3922_v21, %v5324_v26 }
 0xdf3   :  { %v3901_v59 = vadd.f32 %v3900_v37, %v3899_v31  ;;  %v3895_v40 = vadd.f32 %v3894_v0, %v3893_v39  ;;  %v3889_v52 = vadd.f32 %v3888_v49, %v3887_v4 }
 0xdf4   :  { %v3907_v7 = vrot.slane %v3906_v45, 2 }
 0xdf5   :  { %v3902_v46 = vrot.slane %v3901_v59, 1  ;;  %v3896_v10 = vrot.slane %v3895_v40, 1  ;;  %v3911_v43 = vmul.f32 0.2, %v3889_v52 }
 0xdf6   :  { %v3908_v23 = vadd.f32 %v3907_v7, %v3906_v45 }
 0xdf7   :  { %v3903_v32 = vadd.f32 %v3902_v46, %v3901_v59  ;;  %v3897_v38 = vadd.f32 %v3896_v10, %v3895_v40 }
 0xdf8   :  { %v3909_v47 = vrot.slane %v3908_v23, 1 }
 0xdf9   :  { %v3913_v12 = vmul.f32 0.2, %v3903_v32  ;;  %v3912_v29 = vmul.f32 0.2, %v3897_v38 }
 0xdfa   :  { %v3910_v25 = vadd.f32 %v3909_v47, %v3908_v23 }
 0xdfb   :  { %v3919_v44 = vcombine.low %v3911_v43, %v3912_v29 }
 0xdfc   :  { %v3914_v63 = vmul.f32 0.2, %v3910_v25 }
 0xdfd   :  { %v3926_v8 = vrot.slane %v3919_v44, %v3925_v33 }
 0xdfe   :  { %v3927_v48 = vcombine.low %v3913_v12, %v3914_v63 }
 0xe00   :  { %v3934_v35 = vrot.slane %v3927_v48, %v3925_v33 }
 0xe02   :  { %v3939_v55 = vrot.slane %v3934_v35, 7 }
 0xe04   :  { %v3941_v53 = vsel %vm3940_vm1, %v3939_v55, %v3926_v8 }
 0xe05   :  { %v3943_v9 = vsel %vm3942_vm3, %v3939_v55, %v3941_v53 }
 0xe06   :  { %v3945_v50 = vsel %vm3944_vm6, %v3939_v55, %v3943_v9 }
 0xe07   :  { %v3947_v17 = vsel %vm3946_vm7, %v3939_v55, %v3945_v50 }
 0xe08   :  { %3952 = vst.msk [vmem:[#allocation2] sm:$0xf] %vm3951_vm8, %v3947_v17 }
 0xe09   :  { %5069 = shalt.err (!%p5066_p5)
}
 0xe0a   :  { %3962 = dma.vmem_to_hbm [thread:$0]  %s3960_s2, 64, %s6175_s13, [#allocation3]  }
 0xe0b   :  { %5098 = dma.done.wait [#allocation3], 64  }
 0xe0c   :  { %5099 = vsyncadd [#allocation3], 4294967232 }
 0xe0d   :  { %3966 = vsyncpa [#allocation3], 1 }

</bundles_post_ra>
